<compile_context>
chip_gen: v6e
topology: v6e:2x2x1
jax: 0.10.0
libtpu: 0.0.40
codegen_flags: <defaults>
</compile_context>

<pallas_src>
import functools

import numpy as np
import jax
import jax.numpy as jnp
from jax.experimental import pallas as pl
from jax.experimental.pallas import tpu as pltpu


def _rup(x, m):
    return (x + m - 1) // m * m


# -----------------------------------------------------------------------------
# Pallas kernels
# -----------------------------------------------------------------------------
def _branch_kernel(x_ref, w1_ref, s1_ref, b1_ref, w2_ref, s2_ref, b2_ref,
                   m1_ref, m2_ref, o_ref, xt_ref, y1_ref, *,
                   Cp, Wp, L1g, L2g, num_blocks):
    """All BasicBlocks of one HRNet branch, fused; batch merged onto lanes.

    Layout: padded channels (Cp, multiple of 8) on sublanes; each batch element's
    2-ring zero-padded image, flattened with row stride Wp and zero-padded to a
    128-multiple slab, concatenated along lanes.

    x_ref  : (Cp, N*Lpad) f32          zero-padded input activation.
    w*_ref : (num_blocks, Cp, 9*Cp) bf16  3x3 weights packed as (cout, tap*Cp+cin).
    s*,b*  : (num_blocks, Cp, 1) f32   folded BatchNorm scale / bias.
    m1_ref : (1, L1g) f32  1.0 on valid conv1 pixels (zeros emulate conv2 padding).
    m2_ref : (1, L2g) f32  1.0 on valid conv2 pixels (keeps the zero halo intact).
    o_ref  : (Cp, N*Lpad) f32          running padded activation / final output.
    xt_ref : (9*Cp, L1g) f32 scratch   tap-pack (K = 9*Cp matmul operand).
    y1_ref : (Cp, L1g) f32 scratch     relu(bn1(conv1(x))) incl. 1-pixel halo.
    """
    s0 = 2 * Wp + 2                       # flat offset of valid pixel (0, 0)

    o_ref[...] = x_ref[...]               # running activation; halo stays zero.

    for b in range(num_blocks):
        # ---- conv1 + bn1 + relu (one K=9*Cp dot; halo masked to zero) ----------
        for kh in range(3):
            for kw in range(3):
                t = kh * 3 + kw
                off = kh * Wp + kw
                # xt scratch stays f32 so these sublane writes are tile-aligned;
                # the operand is cast to bf16 once, right before the MXU dot.
                xt_ref[t * Cp:(t + 1) * Cp, :] = o_ref[:, off:off + L1g]
        acc = jnp.dot(w1_ref[b], xt_ref[...].astype(jnp.bfloat16),
                      preferred_element_type=jnp.float32)
        y1_ref[...] = jnp.maximum(acc * s1_ref[b] + b1_ref[b], 0.0) * m1_ref[...]

        # ---- conv2 + bn2 + residual + relu -------------------------------------
        for kh in range(3):
            for kw in range(3):
                t = kh * 3 + kw
                off = kh * Wp + kw
                xt_ref[t * Cp:(t + 1) * Cp, :L2g] = y1_ref[:, off:off + L2g]
        acc = jnp.dot(w2_ref[b], xt_ref[:, :L2g].astype(jnp.bfloat16),
                      preferred_element_type=jnp.float32)
        y2 = acc * s2_ref[b] + b2_ref[b] + o_ref[:, s0:s0 + L2g]
        o_ref[:, s0:s0 + L2g] = jnp.maximum(y2, 0.0) * m2_ref[...]


def _fuse_down_kernel(x_ref, w_ref, s_ref, b_ref, o_ref, xt_ref, *, Cinp, Wq, relu):
    """3x3 / stride-2 / pad-1 conv + folded BN (+ReLU) via 2x2 phase decomposition.

    x_ref : (4, Cinp, Lin) f32   row/col parity phases of the 1-ring-padded input.
    o_ref : (Coutp, Lo) f32      H/2 x W/2 output, row stride Wq (junk stripped
                                 by the wrapper); Lo is a multiple of 128.
    xt_ref: (9*Cinp, Lo) f32     tap-pack scratch.
    """
    Lo = o_ref.shape[-1]
    for kh in range(3):
        for kw in range(3):
            t = kh * 3 + kw
            ph = (kh % 2) * 2 + (kw % 2)
            off = (kh // 2) * Wq + (kw // 2)
            xt_ref[t * Cinp:(t + 1) * Cinp, :] = x_ref[ph, :, off:off + Lo]
    acc = jnp.dot(w_ref[...], xt_ref[...].astype(jnp.bfloat16),
                  preferred_element_type=jnp.float32)
    y = acc * s_ref[...] + b_ref[...]
    if relu:
        y = jnp.maximum(y, 0.0)
    o_ref[...] = y


def _fuse_up_kernel(x_ref, w_ref, s_ref, b_ref, o_ref):
    """1x1 conv + folded BN (j > i fuse path): channel matmul over N*H*W lanes."""
    acc = jnp.dot(w_ref[...], x_ref[...].astype(jnp.bfloat16),
                  preferred_element_type=jnp.float32)
    o_ref[...] = acc * s_ref[...] + b_ref[...]


def _sum_relu_kernel(*refs):
    """Fuse reduction: relu(sum of branch terms)."""
    o_ref = refs[-1]
    acc = refs[0][...]
    for r in refs[1:-1]:
        acc = acc + r[...]
    o_ref[...] = jnp.maximum(acc, 0.0)


# -----------------------------------------------------------------------------
# Parameter packing helpers
# -----------------------------------------------------------------------------
def _fold_bn(scale, bias, cp):
    c = scale.shape[0]
    s = jnp.zeros((cp, 1), jnp.float32).at[:c, 0].set(scale)
    b = jnp.zeros((cp, 1), jnp.float32).at[:c, 0].set(bias)
    return s, b


def _pack_w3x3(w, cinp, coutp):
    """(3,3,Cin,Cout) -> (Coutp, 9*Cinp) bf16, column index = tap*Cinp + cin."""
    _, _, cin, cout = w.shape
    wp = jnp.zeros((coutp, 9, cinp), jnp.float32)
    wp = wp.at[:cout, :, :cin].set(jnp.transpose(w.reshape(9, cin, cout), (2, 0, 1)))
    return wp.reshape(coutp, 9 * cinp).astype(jnp.bfloat16)


# -----------------------------------------------------------------------------
# Pallas wrappers (activations NCHW float32 at module boundaries)
# -----------------------------------------------------------------------------
def branch_pallas(x, blocks):
    """All BasicBlocks of one branch (stride 1, Cin == Cout) in one pallas_call."""
    N, C, H, W = x.shape
    Cp = _rup(C, 8)
    Wp, Hp = W + 4, H + 4
    Lp = Hp * Wp
    Lpad = _rup(Lp, 128)
    L1 = (H + 1) * Wp + W + 2
    L2 = (H - 1) * Wp + W
    s0, s1 = 2 * Wp + 2, Wp + 1
    L1g = (N - 1) * Lpad + L1
    L2g = (N - 1) * Lpad + L2
    nb = len(blocks)

    # Input: channel pad -> 2-ring spatial pad -> flatten -> per-batch lane slab.
    xp = jnp.pad(x, ((0, 0), (0, Cp - C), (2, 2), (2, 2))).reshape(N, Cp, Lp)
    xp = jnp.pad(xp, ((0, 0), (0, 0), (0, Lpad - Lp)))
    xf = xp.transpose(1, 0, 2).reshape(Cp, N * Lpad)

    # Per-block packed weights (bf16) and folded BN params (f32).
    w1 = jnp.stack([_pack_w3x3(blk["w1"], Cp, Cp) for blk in blocks])
    w2 = jnp.stack([_pack_w3x3(blk["w2"], Cp, Cp) for blk in blocks])
    s1l, b1l, s2l, b2l = [], [], [], []
    for blk in blocks:
        s, b = _fold_bn(blk["s1"], blk["b1"], Cp); s1l.append(s); b1l.append(b)
        s, b = _fold_bn(blk["s2"], blk["b2"], Cp); s2l.append(s); b2l.append(b)
    s1p, b1p, s2p, b2p = map(jnp.stack, (s1l, b1l, s2l, b2l))

    # Valid-pixel masks (host constants; TODO(synk): in-kernel iota generation).
    def _mask(l, start):
        q = np.arange(l) + start
        r, c = q // Wp, q % Wp
        return ((r >= 2) & (r <= H + 1) & (c >= 2) & (c <= W + 1)).astype(np.float32)

    m1 = np.zeros((1, L1g), np.float32)
    m2 = np.zeros((1, L2g), np.float32)
    for n in range(N):
        m1[0, n * Lpad:n * Lpad + L1] = _mask(L1, s1)
        m2[0, n * Lpad:n * Lpad + L2] = _mask(L2, s0)
    m1, m2 = jnp.asarray(m1), jnp.asarray(m2)

    kernel = functools.partial(_branch_kernel, Cp=Cp, Wp=Wp, L1g=L1g, L2g=L2g,
                               num_blocks=nb)
    out = pl.pallas_call(
        kernel,
        out_shape=jax.ShapeDtypeStruct((Cp, N * Lpad), jnp.float32),
        scratch_shapes=[pltpu.VMEM((9 * Cp, L1g), jnp.float32),
                        pltpu.VMEM((Cp, L1g), jnp.float32)],
    )(xf, w1, s1p, b1p, w2, s2p, b2p, m1, m2)

    out = out.reshape(Cp, N, Lpad)[:C, :, :Lp].reshape(C, N, Hp, Wp)
    return out[:, :, 2:H + 2, 2:W + 2].transpose(1, 0, 2, 3)


def fuse_down_pallas(x, p, *, relu):
    """3x3 stride-2 pad-1 conv + folded BN (+ReLU)  (fuse layer, j < i path)."""
    N, Cin, H, W = x.shape
    Cout = p["w"].shape[-1]
    Cinp, Coutp = _rup(Cin, 8), _rup(Cout, 8)
    H2, W2 = H // 2, W // 2
    Wq = W2 + 1
    Lq = (H2 + 1) * Wq
    Lqp = _rup(Lq, 128)
    Lo = N * Lqp                       # lane-dense computed output extent
    Lin = Lo + 128                     # tail so all tap reads stay in bounds

    # 1-ring pad + 2x2 phase decomposition (XLA side).
    # TODO(synk): in-kernel strided reads / chained multi-step downsamples.
    xp = jnp.pad(x, ((0, 0), (0, Cinp - Cin), (1, 1), (1, 1)))
    ph = jnp.stack([xp[:, :, a::2, b::2] for a in (0, 1) for b in (0, 1)], axis=0)
    ph = ph.reshape(4, N, Cinp, Lq)
    ph = jnp.pad(ph, ((0, 0), (0, 0), (0, 0), (0, Lqp - Lq)))
    ph = ph.transpose(0, 2, 1, 3).reshape(4, Cinp, N * Lqp)
    ph = jnp.pad(ph, ((0, 0), (0, 0), (0, Lin - N * Lqp)))

    w = _pack_w3x3(p["w"], Cinp, Coutp)
    s, b = _fold_bn(p["s"], p["b"], Coutp)

    kernel = functools.partial(_fuse_down_kernel, Cinp=Cinp, Wq=Wq, relu=relu)
    out = pl.pallas_call(
        kernel,
        out_shape=jax.ShapeDtypeStruct((Coutp, Lo), jnp.float32),
        scratch_shapes=[pltpu.VMEM((9 * Cinp, Lo), jnp.float32)],
    )(ph, w, s, b)

    out = out.reshape(Coutp, N, Lqp)[:Cout, :, :H2 * Wq]
    out = out.reshape(Cout, N, H2, Wq)[:, :, :, :W2]
    return out.transpose(1, 0, 2, 3)


def fuse_up_pallas(x, p):
    """1x1 conv + folded BN (fuse layer, j > i path); batch merged onto lanes."""
    N, Cin, H, W = x.shape
    Cout = p["w"].shape[-1]
    Cinp, Coutp = _rup(Cin, 8), _rup(Cout, 8)
    P = H * W
    xf = jnp.pad(x.reshape(N, Cin, P), ((0, 0), (0, Cinp - Cin), (0, 0)))
    xf = xf.transpose(1, 0, 2).reshape(Cinp, N * P)
    w = jnp.zeros((Coutp, Cinp), jnp.float32)
    w = w.at[:Cout, :Cin].set(p["w"].reshape(Cin, Cout).T).astype(jnp.bfloat16)
    s, b = _fold_bn(p["s"], p["b"], Coutp)
    out = pl.pallas_call(
        _fuse_up_kernel,
        out_shape=jax.ShapeDtypeStruct((Coutp, N * P), jnp.float32),
    )(xf, w, s, b)
    return out.reshape(Coutp, N, H, W)[:Cout].transpose(1, 0, 2, 3)


def sum_relu_pallas(xs):
    """relu(sum(xs)) over same-shape NCHW tensors (the HRM fuse reduction)."""
    N, C, H, W = xs[0].shape
    flats = [x.reshape(N, C, H * W) for x in xs]
    out = pl.pallas_call(
        _sum_relu_kernel,
        out_shape=jax.ShapeDtypeStruct((N, C, H * W), jnp.float32),
    )(*flats)
    return out.reshape(N, C, H, W)


# -----------------------------------------------------------------------------
# Pure-JAX reference (f32 lax.conv, same parameters) for the correctness check
# -----------------------------------------------------------------------------
def _conv_bn_ref(x, w, scale, bias, *, stride=1, relu=False, residual=None):
    kh, kw = w.shape[0], w.shape[1]
    ph, pw = (kh - 1) // 2, (kw - 1) // 2
    out = jax.lax.conv_general_dilated(
        x, w, window_strides=(stride, stride), padding=[(ph, ph), (pw, pw)],
        dimension_numbers=("NCHW", "HWIO", "NCHW"))
    out = out * scale.reshape(1, -1, 1, 1) + bias.reshape(1, -1, 1, 1)
    if residual is not None:
        out = out + residual
    if relu:
        out = jnp.maximum(out, 0.0)
    return out


def basic_block_ref(x, p):
    out = _conv_bn_ref(x, p["w1"], p["s1"], p["b1"], relu=True)
    return _conv_bn_ref(out, p["w2"], p["s2"], p["b2"], relu=True, residual=x)


def conv_down_ref(x, p, *, relu):
    return _conv_bn_ref(x, p["w"], p["s"], p["b"], stride=2, relu=relu)


def conv1x1_bn_ref(x, p):
    return _conv_bn_ref(x, p["w"], p["s"], p["b"], stride=1, relu=False)


def sum_relu_ref(xs):
    acc = xs[0]
    for x in xs[1:]:
        acc = acc + x
    return jnp.maximum(acc, 0.0)


# -----------------------------------------------------------------------------
# Parameter construction (deterministic, synthetic)
# -----------------------------------------------------------------------------
def make_conv_w(key, kh, kw, cin, cout):
    fan_in = kh * kw * cin
    return jax.random.normal(key, (kh, kw, cin, cout), jnp.float32) / jnp.sqrt(float(fan_in))


def make_bn(key, c, eps=1e-5):
    k1, k2, k3, k4 = jax.random.split(key, 4)
    gamma = 1.0 + 0.1 * jax.random.normal(k1, (c,), jnp.float32)
    beta = 0.1 * jax.random.normal(k2, (c,), jnp.float32)
    mean = 0.1 * jax.random.normal(k3, (c,), jnp.float32)
    var = jax.random.uniform(k4, (c,), jnp.float32, minval=0.5, maxval=1.5)
    scale = gamma / jnp.sqrt(var + eps)
    bias = beta - mean * scale
    return scale, bias


class HighResolutionModulePallas:
    """Mirror of HighResolutionModule with block=BasicBlock (expansion=1)."""

    def __init__(self, key, num_branches, num_blocks, num_inchannels, num_channels,
                 fuse_method="SUM", multi_scale_output=True):
        assert num_branches == len(num_blocks) == len(num_channels) == len(num_inchannels)
        # BasicBlock expansion == 1 and in==out channels -> no branch downsample.
        # TODO(synk): 1x1 downsample path when in/out channels differ.
        assert all(ic == c for ic, c in zip(num_inchannels, num_channels))
        self.num_branches = num_branches
        self.num_inchannels = list(num_inchannels)
        self.multi_scale_output = multi_scale_output
        self.fuse_method = fuse_method

        keys = iter(jax.random.split(key, 4096))

        # branches[i] = list of BasicBlock params
        self.branch_params = []
        for i in range(num_branches):
            c = num_channels[i]
            blocks = []
            for _ in range(num_blocks[i]):
                w1 = make_conv_w(next(keys), 3, 3, c, c)
                s1, b1 = make_bn(next(keys), c)
                w2 = make_conv_w(next(keys), 3, 3, c, c)
                s2, b2 = make_bn(next(keys), c)
                blocks.append(dict(w1=w1, s1=s1, b1=b1, w2=w2, s2=s2, b2=b2))
            self.branch_params.append(blocks)

        # fuse_layers[i][j]
        self.fuse_params = None
        if num_branches > 1:
            self.fuse_params = []
            n_out = num_branches if multi_scale_output else 1
            for i in range(n_out):
                row = []
                for j in range(num_branches):
                    if j > i:
                        w = make_conv_w(next(keys), 1, 1, num_inchannels[j], num_inchannels[i])
                        s, b = make_bn(next(keys), num_inchannels[i])
                        row.append(dict(w=w, s=s, b=b))
                    elif j == i:
                        row.append(None)
                    else:
                        steps = []
                        for k in range(i - j):
                            cout = num_inchannels[i] if k == i - j - 1 else num_inchannels[j]
                            w = make_conv_w(next(keys), 3, 3, num_inchannels[j], cout)
                            s, b = make_bn(next(keys), cout)
                            steps.append(dict(w=w, s=s, b=b))
                        row.append(steps)
                self.fuse_params.append(row)

    def forward(self, x_nchw_list, use_pallas=True):
        xs = [x.astype(jnp.float32) for x in x_nchw_list]

        # Branches: all blocks of a branch fused into a single pallas_call.
        for i in range(self.num_branches):
            if use_pallas:
                xs[i] = branch_pallas(xs[i], self.branch_params[i])
            else:
                for blk in self.branch_params[i]:
                    xs[i] = basic_block_ref(xs[i], blk)

        if self.num_branches == 1:
            return [xs[0]]

        x_fuse = []
        for i in range(len(self.fuse_params)):
            terms = []
            for j in range(self.num_branches):
                if j == i:
                    terms.append(xs[j])
                elif j > i:
                    p = self.fuse_params[i][j]
                    y = fuse_up_pallas(xs[j], p) if use_pallas else conv1x1_bn_ref(xs[j], p)
                    f = 2 ** (j - i)
                    # TODO(synk): nearest upsample kept in XLA (in-kernel lane
                    # repeat needs an interleaving reshape Mosaic may reject).
                    y = jnp.repeat(jnp.repeat(y, f, axis=2), f, axis=3)
                    terms.append(y)
                else:
                    y = xs[j]
                    steps = self.fuse_params[i][j]
                    for k, p in enumerate(steps):
                        last = (k == len(steps) - 1)
                        y = (fuse_down_pallas(y, p, relu=not last) if use_pallas
                             else conv_down_ref(y, p, relu=not last))
                    terms.append(y)
            x_fuse.append(sum_relu_pallas(terms) if use_pallas else sum_relu_ref(terms))
        return x_fuse


# -----------------------------------------------------------------------------
if __name__ == "__main__":
    key = jax.random.PRNGKey(0)
    kp, kx0, kx1 = jax.random.split(key, 3)

    module = HighResolutionModulePallas(
        kp,
        num_branches=2,
        num_blocks=[2, 2],
        num_inchannels=[4, 8],
        num_channels=[4, 8],
        fuse_method="SUM",
        multi_scale_output=True,
    )

    # PyTorch-style NCHW inputs: branch 0 full res, branch 1 half res.
    x0 = jax.random.normal(kx0, (2, 4, 16, 16), jnp.float32)
    x1 = jax.random.normal(kx1, (2, 8, 8, 8), jnp.float32)

    fwd = jax.jit(lambda a, b: module.forward([a, b], use_pallas=True))
    outs = fwd(x0, x1)
    outs = [jax.block_until_ready(o) for o in outs]

    # Cross-check the Pallas path against a pure-f32 reference with identical
    # params.  bf16 MXU operands -> loosened tolerance (review note).
    refs = module.forward([x0, x1], use_pallas=False)
    for o, r in zip(outs, refs):
        assert o.shape == r.shape, (o.shape, r.shape)
        err = float(jnp.max(jnp.abs(o - r)))
        assert err < 0.15, err

    print("KERNEL_OK")
</pallas_src>

<mosaic_0001>
module attributes {stable_mosaic.version = 11 : i64} {
  func.func @_branch_kernel(%arg0: memref<8x512xf32, #tpu.memory_space<vmem>>, %arg1: memref<2x8x72xbf16, #tpu.memory_space<vmem>>, %arg2: memref<2x8x1xf32, #tpu.memory_space<vmem>>, %arg3: memref<2x8x1xf32, #tpu.memory_space<vmem>>, %arg4: memref<2x8x72xbf16, #tpu.memory_space<vmem>>, %arg5: memref<2x8x1xf32, #tpu.memory_space<vmem>>, %arg6: memref<2x8x1xf32, #tpu.memory_space<vmem>>, %arg7: memref<1x374xf32, #tpu.memory_space<vmem>>, %arg8: memref<1x348xf32, #tpu.memory_space<vmem>>, %arg9: memref<8x512xf32, #tpu.memory_space<vmem>>, %arg10: memref<72x374xf32, #tpu.memory_space<vmem>>, %arg11: memref<8x374xf32, #tpu.memory_space<vmem>>) attributes {dimension_semantics = [], scalar_prefetch = 0 : i64, scratch_operands = 2 : i64, tpu.core_type = #tpu.core_type<tc>} {
    %c0 = arith.constant 0 : index
    %c0_0 = arith.constant 0 : index
    %0 = vector.load %arg0[%c0, %c0_0] : memref<8x512xf32, #tpu.memory_space<vmem>>, vector<8x512xf32>
    %c0_1 = arith.constant 0 : index
    %c0_2 = arith.constant 0 : index
    %1 = vector.load %arg9[%c0_1, %c0_2] : memref<8x512xf32, #tpu.memory_space<vmem>>, vector<8x512xf32>
    tpu.vector_store %arg9[%c0_1, %c0_2], %0 {strides = array<i32>} : memref<8x512xf32, #tpu.memory_space<vmem>>, vector<8x512xf32>,
    %c0_3 = arith.constant 0 : index
    %c0_4 = arith.constant 0 : index
    %2 = vector.load %arg9[%c0_3, %c0_4] : memref<8x512xf32, #tpu.memory_space<vmem>>, vector<8x374xf32>
    %c0_5 = arith.constant 0 : index
    %c0_6 = arith.constant 0 : index
    %3 = vector.load %arg10[%c0_5, %c0_6] : memref<72x374xf32, #tpu.memory_space<vmem>>, vector<8x374xf32>
    tpu.vector_store %arg10[%c0_5, %c0_6], %2 {strides = array<i32>} : memref<72x374xf32, #tpu.memory_space<vmem>>, vector<8x374xf32>,
    %c0_7 = arith.constant 0 : index
    %c1 = arith.constant 1 : index
    %4 = vector.load %arg9[%c0_7, %c1] : memref<8x512xf32, #tpu.memory_space<vmem>>, vector<8x374xf32>
    %c8 = arith.constant 8 : index
    %c0_8 = arith.constant 0 : index
    %5 = vector.load %arg10[%c8, %c0_8] : memref<72x374xf32, #tpu.memory_space<vmem>>, vector<8x374xf32>
    tpu.vector_store %arg10[%c8, %c0_8], %4 {strides = array<i32>} : memref<72x374xf32, #tpu.memory_space<vmem>>, vector<8x374xf32>,
    %c0_9 = arith.constant 0 : index
    %c2 = arith.constant 2 : index
    %6 = vector.load %arg9[%c0_9, %c2] : memref<8x512xf32, #tpu.memory_space<vmem>>, vector<8x374xf32>
    %c16 = arith.constant 16 : index
    %c0_10 = arith.constant 0 : index
    %7 = vector.load %arg10[%c16, %c0_10] : memref<72x374xf32, #tpu.memory_space<vmem>>, vector<8x374xf32>
    tpu.vector_store %arg10[%c16, %c0_10], %6 {strides = array<i32>} : memref<72x374xf32, #tpu.memory_space<vmem>>, vector<8x374xf32>,
    %c0_11 = arith.constant 0 : index
    %c12 = arith.constant 12 : index
    %8 = vector.load %arg9[%c0_11, %c12] : memref<8x512xf32, #tpu.memory_space<vmem>>, vector<8x374xf32>
    %c24 = arith.constant 24 : index
    %c0_12 = arith.constant 0 : index
    %9 = vector.load %arg10[%c24, %c0_12] : memref<72x374xf32, #tpu.memory_space<vmem>>, vector<8x374xf32>
    tpu.vector_store %arg10[%c24, %c0_12], %8 {strides = array<i32>} : memref<72x374xf32, #tpu.memory_space<vmem>>, vector<8x374xf32>,
    %c0_13 = arith.constant 0 : index
    %c13 = arith.constant 13 : index
    %10 = vector.load %arg9[%c0_13, %c13] : memref<8x512xf32, #tpu.memory_space<vmem>>, vector<8x374xf32>
    %c32 = arith.constant 32 : index
    %c0_14 = arith.constant 0 : index
    %11 = vector.load %arg10[%c32, %c0_14] : memref<72x374xf32, #tpu.memory_space<vmem>>, vector<8x374xf32>
    tpu.vector_store %arg10[%c32, %c0_14], %10 {strides = array<i32>} : memref<72x374xf32, #tpu.memory_space<vmem>>, vector<8x374xf32>,
    %c0_15 = arith.constant 0 : index
    %c14 = arith.constant 14 : index
    %12 = vector.load %arg9[%c0_15, %c14] : memref<8x512xf32, #tpu.memory_space<vmem>>, vector<8x374xf32>
    %c40 = arith.constant 40 : index
    %c0_16 = arith.constant 0 : index
    %13 = vector.load %arg10[%c40, %c0_16] : memref<72x374xf32, #tpu.memory_space<vmem>>, vector<8x374xf32>
    tpu.vector_store %arg10[%c40, %c0_16], %12 {strides = array<i32>} : memref<72x374xf32, #tpu.memory_space<vmem>>, vector<8x374xf32>,
    %c0_17 = arith.constant 0 : index
    %c24_18 = arith.constant 24 : index
    %14 = vector.load %arg9[%c0_17, %c24_18] : memref<8x512xf32, #tpu.memory_space<vmem>>, vector<8x374xf32>
    %c48 = arith.constant 48 : index
    %c0_19 = arith.constant 0 : index
    %15 = vector.load %arg10[%c48, %c0_19] : memref<72x374xf32, #tpu.memory_space<vmem>>, vector<8x374xf32>
    tpu.vector_store %arg10[%c48, %c0_19], %14 {strides = array<i32>} : memref<72x374xf32, #tpu.memory_space<vmem>>, vector<8x374xf32>,
    %c0_20 = arith.constant 0 : index
    %c25 = arith.constant 25 : index
    %16 = vector.load %arg9[%c0_20, %c25] : memref<8x512xf32, #tpu.memory_space<vmem>>, vector<8x374xf32>
    %c56 = arith.constant 56 : index
    %c0_21 = arith.constant 0 : index
    %17 = vector.load %arg10[%c56, %c0_21] : memref<72x374xf32, #tpu.memory_space<vmem>>, vector<8x374xf32>
    tpu.vector_store %arg10[%c56, %c0_21], %16 {strides = array<i32>} : memref<72x374xf32, #tpu.memory_space<vmem>>, vector<8x374xf32>,
    %c0_22 = arith.constant 0 : index
    %c26 = arith.constant 26 : index
    %18 = vector.load %arg9[%c0_22, %c26] : memref<8x512xf32, #tpu.memory_space<vmem>>, vector<8x374xf32>
    %c64 = arith.constant 64 : index
    %c0_23 = arith.constant 0 : index
    %19 = vector.load %arg10[%c64, %c0_23] : memref<72x374xf32, #tpu.memory_space<vmem>>, vector<8x374xf32>
    tpu.vector_store %arg10[%c64, %c0_23], %18 {strides = array<i32>} : memref<72x374xf32, #tpu.memory_space<vmem>>, vector<8x374xf32>,
    %c0_24 = arith.constant 0 : index
    %c0_25 = arith.constant 0 : index
    %c0_26 = arith.constant 0 : index
    %20 = vector.load %arg1[%c0_24, %c0_25, %c0_26] : memref<2x8x72xbf16, #tpu.memory_space<vmem>>, vector<1x8x72xbf16>
    %21 = vector.shape_cast %20 : vector<1x8x72xbf16> to vector<8x72xbf16>
    %c0_27 = arith.constant 0 : index
    %c0_28 = arith.constant 0 : index
    %22 = vector.load %arg10[%c0_27, %c0_28] : memref<72x374xf32, #tpu.memory_space<vmem>>, vector<72x374xf32>
    %23 = arith.truncf %22 : vector<72x374xf32> to vector<72x374xbf16>
    %cst = arith.constant dense<0.000000e+00> : vector<8x374xf32>
    %24 = tpu.matmul %21, %23, %cst {dimension_numbers = #tpu.dot_dimension_numbers<[1], [0], [0], [1], [0, 0, 1, 1], [], []>} : vector<8x72xbf16>, vector<72x374xbf16>, vector<8x374xf32> -> vector<8x374xf32>
    %c0_29 = arith.constant 0 : index
    %c0_30 = arith.constant 0 : index
    %c0_31 = arith.constant 0 : index
    %25 = vector.load %arg2[%c0_29, %c0_30, %c0_31] : memref<2x8x1xf32, #tpu.memory_space<vmem>>, vector<1x8x1xf32>
    %26 = vector.shape_cast %25 : vector<1x8x1xf32> to vector<8x1xf32>
    %27 = vector.broadcast %26 : vector<8x1xf32> to vector<8x374xf32>
    %28 = arith.mulf %24, %27 : vector<8x374xf32>
    %c0_32 = arith.constant 0 : index
    %c0_33 = arith.constant 0 : index
    %c0_34 = arith.constant 0 : index
    %29 = vector.load %arg3[%c0_32, %c0_33, %c0_34] : memref<2x8x1xf32, #tpu.memory_space<vmem>>, vector<1x8x1xf32>
    %30 = vector.shape_cast %29 : vector<1x8x1xf32> to vector<8x1xf32>
    %31 = vector.broadcast %30 : vector<8x1xf32> to vector<8x374xf32>
    %32 = arith.addf %28, %31 : vector<8x374xf32>
    %cst_35 = arith.constant 0.000000e+00 : f32
    %33 = vector.broadcast %cst_35 : f32 to vector<8x374xf32>
    %34 = arith.maximumf %32, %33 : vector<8x374xf32>
    %c0_36 = arith.constant 0 : index
    %c0_37 = arith.constant 0 : index
    %35 = vector.load %arg7[%c0_36, %c0_37] : memref<1x374xf32, #tpu.memory_space<vmem>>, vector<1x374xf32>
    %36 = vector.broadcast %35 : vector<1x374xf32> to vector<8x374xf32>
    %37 = arith.mulf %34, %36 : vector<8x374xf32>
    %c0_38 = arith.constant 0 : index
    %c0_39 = arith.constant 0 : index
    %38 = vector.load %arg11[%c0_38, %c0_39] : memref<8x374xf32, #tpu.memory_space<vmem>>, vector<8x374xf32>
    tpu.vector_store %arg11[%c0_38, %c0_39], %37 {strides = array<i32>} : memref<8x374xf32, #tpu.memory_space<vmem>>, vector<8x374xf32>,
    %c0_40 = arith.constant 0 : index
    %c0_41 = arith.constant 0 : index
    %39 = vector.load %arg11[%c0_40, %c0_41] : memref<8x374xf32, #tpu.memory_space<vmem>>, vector<8x348xf32>
    %c0_42 = arith.constant 0 : index
    %c0_43 = arith.constant 0 : index
    %40 = vector.load %arg10[%c0_42, %c0_43] : memref<72x374xf32, #tpu.memory_space<vmem>>, vector<8x348xf32>
    tpu.vector_store %arg10[%c0_42, %c0_43], %39 {strides = array<i32>} : memref<72x374xf32, #tpu.memory_space<vmem>>, vector<8x348xf32>,
    %c0_44 = arith.constant 0 : index
    %c1_45 = arith.constant 1 : index
    %41 = vector.load %arg11[%c0_44, %c1_45] : memref<8x374xf32, #tpu.memory_space<vmem>>, vector<8x348xf32>
    %c8_46 = arith.constant 8 : index
    %c0_47 = arith.constant 0 : index
    %42 = vector.load %arg10[%c8_46, %c0_47] : memref<72x374xf32, #tpu.memory_space<vmem>>, vector<8x348xf32>
    tpu.vector_store %arg10[%c8_46, %c0_47], %41 {strides = array<i32>} : memref<72x374xf32, #tpu.memory_space<vmem>>, vector<8x348xf32>,
    %c0_48 = arith.constant 0 : index
    %c2_49 = arith.constant 2 : index
    %43 = vector.load %arg11[%c0_48, %c2_49] : memref<8x374xf32, #tpu.memory_space<vmem>>, vector<8x348xf32>
    %c16_50 = arith.constant 16 : index
    %c0_51 = arith.constant 0 : index
    %44 = vector.load %arg10[%c16_50, %c0_51] : memref<72x374xf32, #tpu.memory_space<vmem>>, vector<8x348xf32>
    tpu.vector_store %arg10[%c16_50, %c0_51], %43 {strides = array<i32>} : memref<72x374xf32, #tpu.memory_space<vmem>>, vector<8x348xf32>,
    %c0_52 = arith.constant 0 : index
    %c12_53 = arith.constant 12 : index
    %45 = vector.load %arg11[%c0_52, %c12_53] : memref<8x374xf32, #tpu.memory_space<vmem>>, vector<8x348xf32>
    %c24_54 = arith.constant 24 : index
    %c0_55 = arith.constant 0 : index
    %46 = vector.load %arg10[%c24_54, %c0_55] : memref<72x374xf32, #tpu.memory_space<vmem>>, vector<8x348xf32>
    tpu.vector_store %arg10[%c24_54, %c0_55], %45 {strides = array<i32>} : memref<72x374xf32, #tpu.memory_space<vmem>>, vector<8x348xf32>,
    %c0_56 = arith.constant 0 : index
    %c13_57 = arith.constant 13 : index
    %47 = vector.load %arg11[%c0_56, %c13_57] : memref<8x374xf32, #tpu.memory_space<vmem>>, vector<8x348xf32>
    %c32_58 = arith.constant 32 : index
    %c0_59 = arith.constant 0 : index
    %48 = vector.load %arg10[%c32_58, %c0_59] : memref<72x374xf32, #tpu.memory_space<vmem>>, vector<8x348xf32>
    tpu.vector_store %arg10[%c32_58, %c0_59], %47 {strides = array<i32>} : memref<72x374xf32, #tpu.memory_space<vmem>>, vector<8x348xf32>,
    %c0_60 = arith.constant 0 : index
    %c14_61 = arith.constant 14 : index
    %49 = vector.load %arg11[%c0_60, %c14_61] : memref<8x374xf32, #tpu.memory_space<vmem>>, vector<8x348xf32>
    %c40_62 = arith.constant 40 : index
    %c0_63 = arith.constant 0 : index
    %50 = vector.load %arg10[%c40_62, %c0_63] : memref<72x374xf32, #tpu.memory_space<vmem>>, vector<8x348xf32>
    tpu.vector_store %arg10[%c40_62, %c0_63], %49 {strides = array<i32>} : memref<72x374xf32, #tpu.memory_space<vmem>>, vector<8x348xf32>,
    %c0_64 = arith.constant 0 : index
    %c24_65 = arith.constant 24 : index
    %51 = vector.load %arg11[%c0_64, %c24_65] : memref<8x374xf32, #tpu.memory_space<vmem>>, vector<8x348xf32>
    %c48_66 = arith.constant 48 : index
    %c0_67 = arith.constant 0 : index
    %52 = vector.load %arg10[%c48_66, %c0_67] : memref<72x374xf32, #tpu.memory_space<vmem>>, vector<8x348xf32>
    tpu.vector_store %arg10[%c48_66, %c0_67], %51 {strides = array<i32>} : memref<72x374xf32, #tpu.memory_space<vmem>>, vector<8x348xf32>,
    %c0_68 = arith.constant 0 : index
    %c25_69 = arith.constant 25 : index
    %53 = vector.load %arg11[%c0_68, %c25_69] : memref<8x374xf32, #tpu.memory_space<vmem>>, vector<8x348xf32>
    %c56_70 = arith.constant 56 : index
    %c0_71 = arith.constant 0 : index
    %54 = vector.load %arg10[%c56_70, %c0_71] : memref<72x374xf32, #tpu.memory_space<vmem>>, vector<8x348xf32>
    tpu.vector_store %arg10[%c56_70, %c0_71], %53 {strides = array<i32>} : memref<72x374xf32, #tpu.memory_space<vmem>>, vector<8x348xf32>,
    %c0_72 = arith.constant 0 : index
    %c26_73 = arith.constant 26 : index
    %55 = vector.load %arg11[%c0_72, %c26_73] : memref<8x374xf32, #tpu.memory_space<vmem>>, vector<8x348xf32>
    %c64_74 = arith.constant 64 : index
    %c0_75 = arith.constant 0 : index
    %56 = vector.load %arg10[%c64_74, %c0_75] : memref<72x374xf32, #tpu.memory_space<vmem>>, vector<8x348xf32>
    tpu.vector_store %arg10[%c64_74, %c0_75], %55 {strides = array<i32>} : memref<72x374xf32, #tpu.memory_space<vmem>>, vector<8x348xf32>,
    %c0_76 = arith.constant 0 : index
    %c0_77 = arith.constant 0 : index
    %c0_78 = arith.constant 0 : index
    %57 = vector.load %arg4[%c0_76, %c0_77, %c0_78] : memref<2x8x72xbf16, #tpu.memory_space<vmem>>, vector<1x8x72xbf16>
    %58 = vector.shape_cast %57 : vector<1x8x72xbf16> to vector<8x72xbf16>
    %c0_79 = arith.constant 0 : index
    %c0_80 = arith.constant 0 : index
    %59 = vector.load %arg10[%c0_79, %c0_80] : memref<72x374xf32, #tpu.memory_space<vmem>>, vector<72x348xf32>
    %60 = arith.truncf %59 : vector<72x348xf32> to vector<72x348xbf16>
    %cst_81 = arith.constant dense<0.000000e+00> : vector<8x348xf32>
    %61 = tpu.matmul %58, %60, %cst_81 {dimension_numbers = #tpu.dot_dimension_numbers<[1], [0], [0], [1], [0, 0, 1, 1], [], []>} : vector<8x72xbf16>, vector<72x348xbf16>, vector<8x348xf32> -> vector<8x348xf32>
    %c0_82 = arith.constant 0 : index
    %c0_83 = arith.constant 0 : index
    %c0_84 = arith.constant 0 : index
    %62 = vector.load %arg5[%c0_82, %c0_83, %c0_84] : memref<2x8x1xf32, #tpu.memory_space<vmem>>, vector<1x8x1xf32>
    %63 = vector.shape_cast %62 : vector<1x8x1xf32> to vector<8x1xf32>
    %64 = vector.broadcast %63 : vector<8x1xf32> to vector<8x348xf32>
    %65 = arith.mulf %61, %64 : vector<8x348xf32>
    %c0_85 = arith.constant 0 : index
    %c0_86 = arith.constant 0 : index
    %c0_87 = arith.constant 0 : index
    %66 = vector.load %arg6[%c0_85, %c0_86, %c0_87] : memref<2x8x1xf32, #tpu.memory_space<vmem>>, vector<1x8x1xf32>
    %67 = vector.shape_cast %66 : vector<1x8x1xf32> to vector<8x1xf32>
    %68 = vector.broadcast %67 : vector<8x1xf32> to vector<8x348xf32>
    %69 = arith.addf %65, %68 : vector<8x348xf32>
    %c0_88 = arith.constant 0 : index
    %c26_89 = arith.constant 26 : index
    %70 = vector.load %arg9[%c0_88, %c26_89] : memref<8x512xf32, #tpu.memory_space<vmem>>, vector<8x348xf32>
    %71 = arith.addf %69, %70 : vector<8x348xf32>
    %cst_90 = arith.constant 0.000000e+00 : f32
    %72 = vector.broadcast %cst_90 : f32 to vector<8x348xf32>
    %73 = arith.maximumf %71, %72 : vector<8x348xf32>
    %c0_91 = arith.constant 0 : index
    %c0_92 = arith.constant 0 : index
    %74 = vector.load %arg8[%c0_91, %c0_92] : memref<1x348xf32, #tpu.memory_space<vmem>>, vector<1x348xf32>
    %75 = vector.broadcast %74 : vector<1x348xf32> to vector<8x348xf32>
    %76 = arith.mulf %73, %75 : vector<8x348xf32>
    %c0_93 = arith.constant 0 : index
    %c26_94 = arith.constant 26 : index
    %77 = vector.load %arg9[%c0_93, %c26_94] : memref<8x512xf32, #tpu.memory_space<vmem>>, vector<8x348xf32>
    tpu.vector_store %arg9[%c0_93, %c26_94], %76 {strides = array<i32>} : memref<8x512xf32, #tpu.memory_space<vmem>>, vector<8x348xf32>,
    %c0_95 = arith.constant 0 : index
    %c0_96 = arith.constant 0 : index
    %78 = vector.load %arg9[%c0_95, %c0_96] : memref<8x512xf32, #tpu.memory_space<vmem>>, vector<8x374xf32>
    %c0_97 = arith.constant 0 : index
    %c0_98 = arith.constant 0 : index
    %79 = vector.load %arg10[%c0_97, %c0_98] : memref<72x374xf32, #tpu.memory_space<vmem>>, vector<8x374xf32>
    tpu.vector_store %arg10[%c0_97, %c0_98], %78 {strides = array<i32>} : memref<72x374xf32, #tpu.memory_space<vmem>>, vector<8x374xf32>,
    %c0_99 = arith.constant 0 : index
    %c1_100 = arith.constant 1 : index
    %80 = vector.load %arg9[%c0_99, %c1_100] : memref<8x512xf32, #tpu.memory_space<vmem>>, vector<8x374xf32>
    %c8_101 = arith.constant 8 : index
    %c0_102 = arith.constant 0 : index
    %81 = vector.load %arg10[%c8_101, %c0_102] : memref<72x374xf32, #tpu.memory_space<vmem>>, vector<8x374xf32>
    tpu.vector_store %arg10[%c8_101, %c0_102], %80 {strides = array<i32>} : memref<72x374xf32, #tpu.memory_space<vmem>>, vector<8x374xf32>,
    %c0_103 = arith.constant 0 : index
    %c2_104 = arith.constant 2 : index
    %82 = vector.load %arg9[%c0_103, %c2_104] : memref<8x512xf32, #tpu.memory_space<vmem>>, vector<8x374xf32>
    %c16_105 = arith.constant 16 : index
    %c0_106 = arith.constant 0 : index
    %83 = vector.load %arg10[%c16_105, %c0_106] : memref<72x374xf32, #tpu.memory_space<vmem>>, vector<8x374xf32>
    tpu.vector_store %arg10[%c16_105, %c0_106], %82 {strides = array<i32>} : memref<72x374xf32, #tpu.memory_space<vmem>>, vector<8x374xf32>,
    %c0_107 = arith.constant 0 : index
    %c12_108 = arith.constant 12 : index
    %84 = vector.load %arg9[%c0_107, %c12_108] : memref<8x512xf32, #tpu.memory_space<vmem>>, vector<8x374xf32>
    %c24_109 = arith.constant 24 : index
    %c0_110 = arith.constant 0 : index
    %85 = vector.load %arg10[%c24_109, %c0_110] : memref<72x374xf32, #tpu.memory_space<vmem>>, vector<8x374xf32>
    tpu.vector_store %arg10[%c24_109, %c0_110], %84 {strides = array<i32>} : memref<72x374xf32, #tpu.memory_space<vmem>>, vector<8x374xf32>,
    %c0_111 = arith.constant 0 : index
    %c13_112 = arith.constant 13 : index
    %86 = vector.load %arg9[%c0_111, %c13_112] : memref<8x512xf32, #tpu.memory_space<vmem>>, vector<8x374xf32>
    %c32_113 = arith.constant 32 : index
    %c0_114 = arith.constant 0 : index
    %87 = vector.load %arg10[%c32_113, %c0_114] : memref<72x374xf32, #tpu.memory_space<vmem>>, vector<8x374xf32>
    tpu.vector_store %arg10[%c32_113, %c0_114], %86 {strides = array<i32>} : memref<72x374xf32, #tpu.memory_space<vmem>>, vector<8x374xf32>,
    %c0_115 = arith.constant 0 : index
    %c14_116 = arith.constant 14 : index
    %88 = vector.load %arg9[%c0_115, %c14_116] : memref<8x512xf32, #tpu.memory_space<vmem>>, vector<8x374xf32>
    %c40_117 = arith.constant 40 : index
    %c0_118 = arith.constant 0 : index
    %89 = vector.load %arg10[%c40_117, %c0_118] : memref<72x374xf32, #tpu.memory_space<vmem>>, vector<8x374xf32>
    tpu.vector_store %arg10[%c40_117, %c0_118], %88 {strides = array<i32>} : memref<72x374xf32, #tpu.memory_space<vmem>>, vector<8x374xf32>,
    %c0_119 = arith.constant 0 : index
    %c24_120 = arith.constant 24 : index
    %90 = vector.load %arg9[%c0_119, %c24_120] : memref<8x512xf32, #tpu.memory_space<vmem>>, vector<8x374xf32>
    %c48_121 = arith.constant 48 : index
    %c0_122 = arith.constant 0 : index
    %91 = vector.load %arg10[%c48_121, %c0_122] : memref<72x374xf32, #tpu.memory_space<vmem>>, vector<8x374xf32>
    tpu.vector_store %arg10[%c48_121, %c0_122], %90 {strides = array<i32>} : memref<72x374xf32, #tpu.memory_space<vmem>>, vector<8x374xf32>,
    %c0_123 = arith.constant 0 : index
    %c25_124 = arith.constant 25 : index
    %92 = vector.load %arg9[%c0_123, %c25_124] : memref<8x512xf32, #tpu.memory_space<vmem>>, vector<8x374xf32>
    %c56_125 = arith.constant 56 : index
    %c0_126 = arith.constant 0 : index
    %93 = vector.load %arg10[%c56_125, %c0_126] : memref<72x374xf32, #tpu.memory_space<vmem>>, vector<8x374xf32>
    tpu.vector_store %arg10[%c56_125, %c0_126], %92 {strides = array<i32>} : memref<72x374xf32, #tpu.memory_space<vmem>>, vector<8x374xf32>,
    %c0_127 = arith.constant 0 : index
    %c26_128 = arith.constant 26 : index
    %94 = vector.load %arg9[%c0_127, %c26_128] : memref<8x512xf32, #tpu.memory_space<vmem>>, vector<8x374xf32>
    %c64_129 = arith.constant 64 : index
    %c0_130 = arith.constant 0 : index
    %95 = vector.load %arg10[%c64_129, %c0_130] : memref<72x374xf32, #tpu.memory_space<vmem>>, vector<8x374xf32>
    tpu.vector_store %arg10[%c64_129, %c0_130], %94 {strides = array<i32>} : memref<72x374xf32, #tpu.memory_space<vmem>>, vector<8x374xf32>,
    %c1_131 = arith.constant 1 : index
    %c0_132 = arith.constant 0 : index
    %c0_133 = arith.constant 0 : index
    %96 = vector.load %arg1[%c1_131, %c0_132, %c0_133] : memref<2x8x72xbf16, #tpu.memory_space<vmem>>, vector<1x8x72xbf16>
    %97 = vector.shape_cast %96 : vector<1x8x72xbf16> to vector<8x72xbf16>
    %c0_134 = arith.constant 0 : index
    %c0_135 = arith.constant 0 : index
    %98 = vector.load %arg10[%c0_134, %c0_135] : memref<72x374xf32, #tpu.memory_space<vmem>>, vector<72x374xf32>
    %99 = arith.truncf %98 : vector<72x374xf32> to vector<72x374xbf16>
    %cst_136 = arith.constant dense<0.000000e+00> : vector<8x374xf32>
    %100 = tpu.matmul %97, %99, %cst_136 {dimension_numbers = #tpu.dot_dimension_numbers<[1], [0], [0], [1], [0, 0, 1, 1], [], []>} : vector<8x72xbf16>, vector<72x374xbf16>, vector<8x374xf32> -> vector<8x374xf32>
    %c1_137 = arith.constant 1 : index
    %c0_138 = arith.constant 0 : index
    %c0_139 = arith.constant 0 : index
    %101 = vector.load %arg2[%c1_137, %c0_138, %c0_139] : memref<2x8x1xf32, #tpu.memory_space<vmem>>, vector<1x8x1xf32>
    %102 = vector.shape_cast %101 : vector<1x8x1xf32> to vector<8x1xf32>
    %103 = vector.broadcast %102 : vector<8x1xf32> to vector<8x374xf32>
    %104 = arith.mulf %100, %103 : vector<8x374xf32>
    %c1_140 = arith.constant 1 : index
    %c0_141 = arith.constant 0 : index
    %c0_142 = arith.constant 0 : index
    %105 = vector.load %arg3[%c1_140, %c0_141, %c0_142] : memref<2x8x1xf32, #tpu.memory_space<vmem>>, vector<1x8x1xf32>
    %106 = vector.shape_cast %105 : vector<1x8x1xf32> to vector<8x1xf32>
    %107 = vector.broadcast %106 : vector<8x1xf32> to vector<8x374xf32>
    %108 = arith.addf %104, %107 : vector<8x374xf32>
    %cst_143 = arith.constant 0.000000e+00 : f32
    %109 = vector.broadcast %cst_143 : f32 to vector<8x374xf32>
    %110 = arith.maximumf %108, %109 : vector<8x374xf32>
    %c0_144 = arith.constant 0 : index
    %c0_145 = arith.constant 0 : index
    %111 = vector.load %arg7[%c0_144, %c0_145] : memref<1x374xf32, #tpu.memory_space<vmem>>, vector<1x374xf32>
    %112 = vector.broadcast %111 : vector<1x374xf32> to vector<8x374xf32>
    %113 = arith.mulf %110, %112 : vector<8x374xf32>
    %c0_146 = arith.constant 0 : index
    %c0_147 = arith.constant 0 : index
    %114 = vector.load %arg11[%c0_146, %c0_147] : memref<8x374xf32, #tpu.memory_space<vmem>>, vector<8x374xf32>
    tpu.vector_store %arg11[%c0_146, %c0_147], %113 {strides = array<i32>} : memref<8x374xf32, #tpu.memory_space<vmem>>, vector<8x374xf32>,
    %c0_148 = arith.constant 0 : index
    %c0_149 = arith.constant 0 : index
    %115 = vector.load %arg11[%c0_148, %c0_149] : memref<8x374xf32, #tpu.memory_space<vmem>>, vector<8x348xf32>
    %c0_150 = arith.constant 0 : index
    %c0_151 = arith.constant 0 : index
    %116 = vector.load %arg10[%c0_150, %c0_151] : memref<72x374xf32, #tpu.memory_space<vmem>>, vector<8x348xf32>
    tpu.vector_store %arg10[%c0_150, %c0_151], %115 {strides = array<i32>} : memref<72x374xf32, #tpu.memory_space<vmem>>, vector<8x348xf32>,
    %c0_152 = arith.constant 0 : index
    %c1_153 = arith.constant 1 : index
    %117 = vector.load %arg11[%c0_152, %c1_153] : memref<8x374xf32, #tpu.memory_space<vmem>>, vector<8x348xf32>
    %c8_154 = arith.constant 8 : index
    %c0_155 = arith.constant 0 : index
    %118 = vector.load %arg10[%c8_154, %c0_155] : memref<72x374xf32, #tpu.memory_space<vmem>>, vector<8x348xf32>
    tpu.vector_store %arg10[%c8_154, %c0_155], %117 {strides = array<i32>} : memref<72x374xf32, #tpu.memory_space<vmem>>, vector<8x348xf32>,
    %c0_156 = arith.constant 0 : index
    %c2_157 = arith.constant 2 : index
    %119 = vector.load %arg11[%c0_156, %c2_157] : memref<8x374xf32, #tpu.memory_space<vmem>>, vector<8x348xf32>
    %c16_158 = arith.constant 16 : index
    %c0_159 = arith.constant 0 : index
    %120 = vector.load %arg10[%c16_158, %c0_159] : memref<72x374xf32, #tpu.memory_space<vmem>>, vector<8x348xf32>
    tpu.vector_store %arg10[%c16_158, %c0_159], %119 {strides = array<i32>} : memref<72x374xf32, #tpu.memory_space<vmem>>, vector<8x348xf32>,
    %c0_160 = arith.constant 0 : index
    %c12_161 = arith.constant 12 : index
    %121 = vector.load %arg11[%c0_160, %c12_161] : memref<8x374xf32, #tpu.memory_space<vmem>>, vector<8x348xf32>
    %c24_162 = arith.constant 24 : index
    %c0_163 = arith.constant 0 : index
    %122 = vector.load %arg10[%c24_162, %c0_163] : memref<72x374xf32, #tpu.memory_space<vmem>>, vector<8x348xf32>
    tpu.vector_store %arg10[%c24_162, %c0_163], %121 {strides = array<i32>} : memref<72x374xf32, #tpu.memory_space<vmem>>, vector<8x348xf32>,
    %c0_164 = arith.constant 0 : index
    %c13_165 = arith.constant 13 : index
    %123 = vector.load %arg11[%c0_164, %c13_165] : memref<8x374xf32, #tpu.memory_space<vmem>>, vector<8x348xf32>
    %c32_166 = arith.constant 32 : index
    %c0_167 = arith.constant 0 : index
    %124 = vector.load %arg10[%c32_166, %c0_167] : memref<72x374xf32, #tpu.memory_space<vmem>>, vector<8x348xf32>
    tpu.vector_store %arg10[%c32_166, %c0_167], %123 {strides = array<i32>} : memref<72x374xf32, #tpu.memory_space<vmem>>, vector<8x348xf32>,
    %c0_168 = arith.constant 0 : index
    %c14_169 = arith.constant 14 : index
    %125 = vector.load %arg11[%c0_168, %c14_169] : memref<8x374xf32, #tpu.memory_space<vmem>>, vector<8x348xf32>
    %c40_170 = arith.constant 40 : index
    %c0_171 = arith.constant 0 : index
    %126 = vector.load %arg10[%c40_170, %c0_171] : memref<72x374xf32, #tpu.memory_space<vmem>>, vector<8x348xf32>
    tpu.vector_store %arg10[%c40_170, %c0_171], %125 {strides = array<i32>} : memref<72x374xf32, #tpu.memory_space<vmem>>, vector<8x348xf32>,
    %c0_172 = arith.constant 0 : index
    %c24_173 = arith.constant 24 : index
    %127 = vector.load %arg11[%c0_172, %c24_173] : memref<8x374xf32, #tpu.memory_space<vmem>>, vector<8x348xf32>
    %c48_174 = arith.constant 48 : index
    %c0_175 = arith.constant 0 : index
    %128 = vector.load %arg10[%c48_174, %c0_175] : memref<72x374xf32, #tpu.memory_space<vmem>>, vector<8x348xf32>
    tpu.vector_store %arg10[%c48_174, %c0_175], %127 {strides = array<i32>} : memref<72x374xf32, #tpu.memory_space<vmem>>, vector<8x348xf32>,
    %c0_176 = arith.constant 0 : index
    %c25_177 = arith.constant 25 : index
    %129 = vector.load %arg11[%c0_176, %c25_177] : memref<8x374xf32, #tpu.memory_space<vmem>>, vector<8x348xf32>
    %c56_178 = arith.constant 56 : index
    %c0_179 = arith.constant 0 : index
    %130 = vector.load %arg10[%c56_178, %c0_179] : memref<72x374xf32, #tpu.memory_space<vmem>>, vector<8x348xf32>
    tpu.vector_store %arg10[%c56_178, %c0_179], %129 {strides = array<i32>} : memref<72x374xf32, #tpu.memory_space<vmem>>, vector<8x348xf32>,
    %c0_180 = arith.constant 0 : index
    %c26_181 = arith.constant 26 : index
    %131 = vector.load %arg11[%c0_180, %c26_181] : memref<8x374xf32, #tpu.memory_space<vmem>>, vector<8x348xf32>
    %c64_182 = arith.constant 64 : index
    %c0_183 = arith.constant 0 : index
    %132 = vector.load %arg10[%c64_182, %c0_183] : memref<72x374xf32, #tpu.memory_space<vmem>>, vector<8x348xf32>
    tpu.vector_store %arg10[%c64_182, %c0_183], %131 {strides = array<i32>} : memref<72x374xf32, #tpu.memory_space<vmem>>, vector<8x348xf32>,
    %c1_184 = arith.constant 1 : index
    %c0_185 = arith.constant 0 : index
    %c0_186 = arith.constant 0 : index
    %133 = vector.load %arg4[%c1_184, %c0_185, %c0_186] : memref<2x8x72xbf16, #tpu.memory_space<vmem>>, vector<1x8x72xbf16>
    %134 = vector.shape_cast %133 : vector<1x8x72xbf16> to vector<8x72xbf16>
    %c0_187 = arith.constant 0 : index
    %c0_188 = arith.constant 0 : index
    %135 = vector.load %arg10[%c0_187, %c0_188] : memref<72x374xf32, #tpu.memory_space<vmem>>, vector<72x348xf32>
    %136 = arith.truncf %135 : vector<72x348xf32> to vector<72x348xbf16>
    %cst_189 = arith.constant dense<0.000000e+00> : vector<8x348xf32>
    %137 = tpu.matmul %134, %136, %cst_189 {dimension_numbers = #tpu.dot_dimension_numbers<[1], [0], [0], [1], [0, 0, 1, 1], [], []>} : vector<8x72xbf16>, vector<72x348xbf16>, vector<8x348xf32> -> vector<8x348xf32>
    %c1_190 = arith.constant 1 : index
    %c0_191 = arith.constant 0 : index
    %c0_192 = arith.constant 0 : index
    %138 = vector.load %arg5[%c1_190, %c0_191, %c0_192] : memref<2x8x1xf32, #tpu.memory_space<vmem>>, vector<1x8x1xf32>
    %139 = vector.shape_cast %138 : vector<1x8x1xf32> to vector<8x1xf32>
    %140 = vector.broadcast %139 : vector<8x1xf32> to vector<8x348xf32>
    %141 = arith.mulf %137, %140 : vector<8x348xf32>
    %c1_193 = arith.constant 1 : index
    %c0_194 = arith.constant 0 : index
    %c0_195 = arith.constant 0 : index
    %142 = vector.load %arg6[%c1_193, %c0_194, %c0_195] : memref<2x8x1xf32, #tpu.memory_space<vmem>>, vector<1x8x1xf32>
    %143 = vector.shape_cast %142 : vector<1x8x1xf32> to vector<8x1xf32>
    %144 = vector.broadcast %143 : vector<8x1xf32> to vector<8x348xf32>
    %145 = arith.addf %141, %144 : vector<8x348xf32>
    %c0_196 = arith.constant 0 : index
    %c26_197 = arith.constant 26 : index
    %146 = vector.load %arg9[%c0_196, %c26_197] : memref<8x512xf32, #tpu.memory_space<vmem>>, vector<8x348xf32>
    %147 = arith.addf %145, %146 : vector<8x348xf32>
    %cst_198 = arith.constant 0.000000e+00 : f32
    %148 = vector.broadcast %cst_198 : f32 to vector<8x348xf32>
    %149 = arith.maximumf %147, %148 : vector<8x348xf32>
    %c0_199 = arith.constant 0 : index
    %c0_200 = arith.constant 0 : index
    %150 = vector.load %arg8[%c0_199, %c0_200] : memref<1x348xf32, #tpu.memory_space<vmem>>, vector<1x348xf32>
    %151 = vector.broadcast %150 : vector<1x348xf32> to vector<8x348xf32>
    %152 = arith.mulf %149, %151 : vector<8x348xf32>
    %c0_201 = arith.constant 0 : index
    %c26_202 = arith.constant 26 : index
    %153 = vector.load %arg9[%c0_201, %c26_202] : memref<8x512xf32, #tpu.memory_space<vmem>>, vector<8x348xf32>
    tpu.vector_store %arg9[%c0_201, %c26_202], %152 {strides = array<i32>} : memref<8x512xf32, #tpu.memory_space<vmem>>, vector<8x348xf32>,
    return
  }
}

module attributes {stable_mosaic.version = 11 : i64} {
  func.func @_fuse_up_kernel(%arg0: memref<8x128xf32, #tpu.memory_space<vmem>>, %arg1: memref<8x8xbf16, #tpu.memory_space<vmem>>, %arg2: memref<8x1xf32, #tpu.memory_space<vmem>>, %arg3: memref<8x1xf32, #tpu.memory_space<vmem>>, %arg4: memref<8x128xf32, #tpu.memory_space<vmem>>) attributes {dimension_semantics = [], scalar_prefetch = 0 : i64, scratch_operands = 0 : i64, tpu.core_type = #tpu.core_type<tc>} {
    %c0 = arith.constant 0 : index
    %c0_0 = arith.constant 0 : index
    %0 = vector.load %arg1[%c0, %c0_0] : memref<8x8xbf16, #tpu.memory_space<vmem>>, vector<8x8xbf16>
    %c0_1 = arith.constant 0 : index
    %c0_2 = arith.constant 0 : index
    %1 = vector.load %arg0[%c0_1, %c0_2] : memref<8x128xf32, #tpu.memory_space<vmem>>, vector<8x128xf32>
    %2 = arith.truncf %1 : vector<8x128xf32> to vector<8x128xbf16>
    %cst = arith.constant dense<0.000000e+00> : vector<8x128xf32>
    %3 = tpu.matmul %0, %2, %cst {dimension_numbers = #tpu.dot_dimension_numbers<[1], [0], [0], [1], [0, 0, 1, 1], [], []>} : vector<8x8xbf16>, vector<8x128xbf16>, vector<8x128xf32> -> vector<8x128xf32>
    %c0_3 = arith.constant 0 : index
    %c0_4 = arith.constant 0 : index
    %4 = vector.load %arg2[%c0_3, %c0_4] : memref<8x1xf32, #tpu.memory_space<vmem>>, vector<8x1xf32>
    %5 = vector.broadcast %4 : vector<8x1xf32> to vector<8x128xf32>
    %6 = arith.mulf %3, %5 : vector<8x128xf32>
    %c0_5 = arith.constant 0 : index
    %c0_6 = arith.constant 0 : index
    %7 = vector.load %arg3[%c0_5, %c0_6] : memref<8x1xf32, #tpu.memory_space<vmem>>, vector<8x1xf32>
    %8 = vector.broadcast %7 : vector<8x1xf32> to vector<8x128xf32>
    %9 = arith.addf %6, %8 : vector<8x128xf32>
    %c0_7 = arith.constant 0 : index
    %c0_8 = arith.constant 0 : index
    %10 = vector.load %arg4[%c0_7, %c0_8] : memref<8x128xf32, #tpu.memory_space<vmem>>, vector<8x128xf32>
    tpu.vector_store %arg4[%c0_7, %c0_8], %9 {strides = array<i32>} : memref<8x128xf32, #tpu.memory_space<vmem>>, vector<8x128xf32>,
    return
  }
}

module attributes {stable_mosaic.version = 11 : i64} {
  func.func @_branch_kernel(%arg0: memref<8x1024xf32, #tpu.memory_space<vmem>>, %arg1: memref<2x8x72xbf16, #tpu.memory_space<vmem>>, %arg2: memref<2x8x1xf32, #tpu.memory_space<vmem>>, %arg3: memref<2x8x1xf32, #tpu.memory_space<vmem>>, %arg4: memref<2x8x72xbf16, #tpu.memory_space<vmem>>, %arg5: memref<2x8x1xf32, #tpu.memory_space<vmem>>, %arg6: memref<2x8x1xf32, #tpu.memory_space<vmem>>, %arg7: memref<1x870xf32, #tpu.memory_space<vmem>>, %arg8: memref<1x828xf32, #tpu.memory_space<vmem>>, %arg9: memref<8x1024xf32, #tpu.memory_space<vmem>>, %arg10: memref<72x870xf32, #tpu.memory_space<vmem>>, %arg11: memref<8x870xf32, #tpu.memory_space<vmem>>) attributes {dimension_semantics = [], scalar_prefetch = 0 : i64, scratch_operands = 2 : i64, tpu.core_type = #tpu.core_type<tc>} {
    %c0 = arith.constant 0 : index
    %c0_0 = arith.constant 0 : index
    %0 = vector.load %arg0[%c0, %c0_0] : memref<8x1024xf32, #tpu.memory_space<vmem>>, vector<8x1024xf32>
    %c0_1 = arith.constant 0 : index
    %c0_2 = arith.constant 0 : index
    %1 = vector.load %arg9[%c0_1, %c0_2] : memref<8x1024xf32, #tpu.memory_space<vmem>>, vector<8x1024xf32>
    tpu.vector_store %arg9[%c0_1, %c0_2], %0 {strides = array<i32>} : memref<8x1024xf32, #tpu.memory_space<vmem>>, vector<8x1024xf32>,
    %c0_3 = arith.constant 0 : index
    %c0_4 = arith.constant 0 : index
    %2 = vector.load %arg9[%c0_3, %c0_4] : memref<8x1024xf32, #tpu.memory_space<vmem>>, vector<8x870xf32>
    %c0_5 = arith.constant 0 : index
    %c0_6 = arith.constant 0 : index
    %3 = vector.load %arg10[%c0_5, %c0_6] : memref<72x870xf32, #tpu.memory_space<vmem>>, vector<8x870xf32>
    tpu.vector_store %arg10[%c0_5, %c0_6], %2 {strides = array<i32>} : memref<72x870xf32, #tpu.memory_space<vmem>>, vector<8x870xf32>,
    %c0_7 = arith.constant 0 : index
    %c1 = arith.constant 1 : index
    %4 = vector.load %arg9[%c0_7, %c1] : memref<8x1024xf32, #tpu.memory_space<vmem>>, vector<8x870xf32>
    %c8 = arith.constant 8 : index
    %c0_8 = arith.constant 0 : index
    %5 = vector.load %arg10[%c8, %c0_8] : memref<72x870xf32, #tpu.memory_space<vmem>>, vector<8x870xf32>
    tpu.vector_store %arg10[%c8, %c0_8], %4 {strides = array<i32>} : memref<72x870xf32, #tpu.memory_space<vmem>>, vector<8x870xf32>,
    %c0_9 = arith.constant 0 : index
    %c2 = arith.constant 2 : index
    %6 = vector.load %arg9[%c0_9, %c2] : memref<8x1024xf32, #tpu.memory_space<vmem>>, vector<8x870xf32>
    %c16 = arith.constant 16 : index
    %c0_10 = arith.constant 0 : index
    %7 = vector.load %arg10[%c16, %c0_10] : memref<72x870xf32, #tpu.memory_space<vmem>>, vector<8x870xf32>
    tpu.vector_store %arg10[%c16, %c0_10], %6 {strides = array<i32>} : memref<72x870xf32, #tpu.memory_space<vmem>>, vector<8x870xf32>,
    %c0_11 = arith.constant 0 : index
    %c20 = arith.constant 20 : index
    %8 = vector.load %arg9[%c0_11, %c20] : memref<8x1024xf32, #tpu.memory_space<vmem>>, vector<8x870xf32>
    %c24 = arith.constant 24 : index
    %c0_12 = arith.constant 0 : index
    %9 = vector.load %arg10[%c24, %c0_12] : memref<72x870xf32, #tpu.memory_space<vmem>>, vector<8x870xf32>
    tpu.vector_store %arg10[%c24, %c0_12], %8 {strides = array<i32>} : memref<72x870xf32, #tpu.memory_space<vmem>>, vector<8x870xf32>,
    %c0_13 = arith.constant 0 : index
    %c21 = arith.constant 21 : index
    %10 = vector.load %arg9[%c0_13, %c21] : memref<8x1024xf32, #tpu.memory_space<vmem>>, vector<8x870xf32>
    %c32 = arith.constant 32 : index
    %c0_14 = arith.constant 0 : index
    %11 = vector.load %arg10[%c32, %c0_14] : memref<72x870xf32, #tpu.memory_space<vmem>>, vector<8x870xf32>
    tpu.vector_store %arg10[%c32, %c0_14], %10 {strides = array<i32>} : memref<72x870xf32, #tpu.memory_space<vmem>>, vector<8x870xf32>,
    %c0_15 = arith.constant 0 : index
    %c22 = arith.constant 22 : index
    %12 = vector.load %arg9[%c0_15, %c22] : memref<8x1024xf32, #tpu.memory_space<vmem>>, vector<8x870xf32>
    %c40 = arith.constant 40 : index
    %c0_16 = arith.constant 0 : index
    %13 = vector.load %arg10[%c40, %c0_16] : memref<72x870xf32, #tpu.memory_space<vmem>>, vector<8x870xf32>
    tpu.vector_store %arg10[%c40, %c0_16], %12 {strides = array<i32>} : memref<72x870xf32, #tpu.memory_space<vmem>>, vector<8x870xf32>,
    %c0_17 = arith.constant 0 : index
    %c40_18 = arith.constant 40 : index
    %14 = vector.load %arg9[%c0_17, %c40_18] : memref<8x1024xf32, #tpu.memory_space<vmem>>, vector<8x870xf32>
    %c48 = arith.constant 48 : index
    %c0_19 = arith.constant 0 : index
    %15 = vector.load %arg10[%c48, %c0_19] : memref<72x870xf32, #tpu.memory_space<vmem>>, vector<8x870xf32>
    tpu.vector_store %arg10[%c48, %c0_19], %14 {strides = array<i32>} : memref<72x870xf32, #tpu.memory_space<vmem>>, vector<8x870xf32>,
    %c0_20 = arith.constant 0 : index
    %c41 = arith.constant 41 : index
    %16 = vector.load %arg9[%c0_20, %c41] : memref<8x1024xf32, #tpu.memory_space<vmem>>, vector<8x870xf32>
    %c56 = arith.constant 56 : index
    %c0_21 = arith.constant 0 : index
    %17 = vector.load %arg10[%c56, %c0_21] : memref<72x870xf32, #tpu.memory_space<vmem>>, vector<8x870xf32>
    tpu.vector_store %arg10[%c56, %c0_21], %16 {strides = array<i32>} : memref<72x870xf32, #tpu.memory_space<vmem>>, vector<8x870xf32>,
    %c0_22 = arith.constant 0 : index
    %c42 = arith.constant 42 : index
    %18 = vector.load %arg9[%c0_22, %c42] : memref<8x1024xf32, #tpu.memory_space<vmem>>, vector<8x870xf32>
    %c64 = arith.constant 64 : index
    %c0_23 = arith.constant 0 : index
    %19 = vector.load %arg10[%c64, %c0_23] : memref<72x870xf32, #tpu.memory_space<vmem>>, vector<8x870xf32>
    tpu.vector_store %arg10[%c64, %c0_23], %18 {strides = array<i32>} : memref<72x870xf32, #tpu.memory_space<vmem>>, vector<8x870xf32>,
    %c0_24 = arith.constant 0 : index
    %c0_25 = arith.constant 0 : index
    %c0_26 = arith.constant 0 : index
    %20 = vector.load %arg1[%c0_24, %c0_25, %c0_26] : memref<2x8x72xbf16, #tpu.memory_space<vmem>>, vector<1x8x72xbf16>
    %21 = vector.shape_cast %20 : vector<1x8x72xbf16> to vector<8x72xbf16>
    %c0_27 = arith.constant 0 : index
    %c0_28 = arith.constant 0 : index
    %22 = vector.load %arg10[%c0_27, %c0_28] : memref<72x870xf32, #tpu.memory_space<vmem>>, vector<72x870xf32>
    %23 = arith.truncf %22 : vector<72x870xf32> to vector<72x870xbf16>
    %cst = arith.constant dense<0.000000e+00> : vector<8x870xf32>
    %24 = tpu.matmul %21, %23, %cst {dimension_numbers = #tpu.dot_dimension_numbers<[1], [0], [0], [1], [0, 0, 1, 1], [], []>} : vector<8x72xbf16>, vector<72x870xbf16>, vector<8x870xf32> -> vector<8x870xf32>
    %c0_29 = arith.constant 0 : index
    %c0_30 = arith.constant 0 : index
    %c0_31 = arith.constant 0 : index
    %25 = vector.load %arg2[%c0_29, %c0_30, %c0_31] : memref<2x8x1xf32, #tpu.memory_space<vmem>>, vector<1x8x1xf32>
    %26 = vector.shape_cast %25 : vector<1x8x1xf32> to vector<8x1xf32>
    %27 = vector.broadcast %26 : vector<8x1xf32> to vector<8x870xf32>
    %28 = arith.mulf %24, %27 : vector<8x870xf32>
    %c0_32 = arith.constant 0 : index
    %c0_33 = arith.constant 0 : index
    %c0_34 = arith.constant 0 : index
    %29 = vector.load %arg3[%c0_32, %c0_33, %c0_34] : memref<2x8x1xf32, #tpu.memory_space<vmem>>, vector<1x8x1xf32>
    %30 = vector.shape_cast %29 : vector<1x8x1xf32> to vector<8x1xf32>
    %31 = vector.broadcast %30 : vector<8x1xf32> to vector<8x870xf32>
    %32 = arith.addf %28, %31 : vector<8x870xf32>
    %cst_35 = arith.constant 0.000000e+00 : f32
    %33 = vector.broadcast %cst_35 : f32 to vector<8x870xf32>
    %34 = arith.maximumf %32, %33 : vector<8x870xf32>
    %c0_36 = arith.constant 0 : index
    %c0_37 = arith.constant 0 : index
    %35 = vector.load %arg7[%c0_36, %c0_37] : memref<1x870xf32, #tpu.memory_space<vmem>>, vector<1x870xf32>
    %36 = vector.broadcast %35 : vector<1x870xf32> to vector<8x870xf32>
    %37 = arith.mulf %34, %36 : vector<8x870xf32>
    %c0_38 = arith.constant 0 : index
    %c0_39 = arith.constant 0 : index
    %38 = vector.load %arg11[%c0_38, %c0_39] : memref<8x870xf32, #tpu.memory_space<vmem>>, vector<8x870xf32>
    tpu.vector_store %arg11[%c0_38, %c0_39], %37 {strides = array<i32>} : memref<8x870xf32, #tpu.memory_space<vmem>>, vector<8x870xf32>,
    %c0_40 = arith.constant 0 : index
    %c0_41 = arith.constant 0 : index
    %39 = vector.load %arg11[%c0_40, %c0_41] : memref<8x870xf32, #tpu.memory_space<vmem>>, vector<8x828xf32>
    %c0_42 = arith.constant 0 : index
    %c0_43 = arith.constant 0 : index
    %40 = vector.load %arg10[%c0_42, %c0_43] : memref<72x870xf32, #tpu.memory_space<vmem>>, vector<8x828xf32>
    tpu.vector_store %arg10[%c0_42, %c0_43], %39 {strides = array<i32>} : memref<72x870xf32, #tpu.memory_space<vmem>>, vector<8x828xf32>,
    %c0_44 = arith.constant 0 : index
    %c1_45 = arith.constant 1 : index
    %41 = vector.load %arg11[%c0_44, %c1_45] : memref<8x870xf32, #tpu.memory_space<vmem>>, vector<8x828xf32>
    %c8_46 = arith.constant 8 : index
    %c0_47 = arith.constant 0 : index
    %42 = vector.load %arg10[%c8_46, %c0_47] : memref<72x870xf32, #tpu.memory_space<vmem>>, vector<8x828xf32>
    tpu.vector_store %arg10[%c8_46, %c0_47], %41 {strides = array<i32>} : memref<72x870xf32, #tpu.memory_space<vmem>>, vector<8x828xf32>,
    %c0_48 = arith.constant 0 : index
    %c2_49 = arith.constant 2 : index
    %43 = vector.load %arg11[%c0_48, %c2_49] : memref<8x870xf32, #tpu.memory_space<vmem>>, vector<8x828xf32>
    %c16_50 = arith.constant 16 : index
    %c0_51 = arith.constant 0 : index
    %44 = vector.load %arg10[%c16_50, %c0_51] : memref<72x870xf32, #tpu.memory_space<vmem>>, vector<8x828xf32>
    tpu.vector_store %arg10[%c16_50, %c0_51], %43 {strides = array<i32>} : memref<72x870xf32, #tpu.memory_space<vmem>>, vector<8x828xf32>,
    %c0_52 = arith.constant 0 : index
    %c20_53 = arith.constant 20 : index
    %45 = vector.load %arg11[%c0_52, %c20_53] : memref<8x870xf32, #tpu.memory_space<vmem>>, vector<8x828xf32>
    %c24_54 = arith.constant 24 : index
    %c0_55 = arith.constant 0 : index
    %46 = vector.load %arg10[%c24_54, %c0_55] : memref<72x870xf32, #tpu.memory_space<vmem>>, vector<8x828xf32>
    tpu.vector_store %arg10[%c24_54, %c0_55], %45 {strides = array<i32>} : memref<72x870xf32, #tpu.memory_space<vmem>>, vector<8x828xf32>,
    %c0_56 = arith.constant 0 : index
    %c21_57 = arith.constant 21 : index
    %47 = vector.load %arg11[%c0_56, %c21_57] : memref<8x870xf32, #tpu.memory_space<vmem>>, vector<8x828xf32>
    %c32_58 = arith.constant 32 : index
    %c0_59 = arith.constant 0 : index
    %48 = vector.load %arg10[%c32_58, %c0_59] : memref<72x870xf32, #tpu.memory_space<vmem>>, vector<8x828xf32>
    tpu.vector_store %arg10[%c32_58, %c0_59], %47 {strides = array<i32>} : memref<72x870xf32, #tpu.memory_space<vmem>>, vector<8x828xf32>,
    %c0_60 = arith.constant 0 : index
    %c22_61 = arith.constant 22 : index
    %49 = vector.load %arg11[%c0_60, %c22_61] : memref<8x870xf32, #tpu.memory_space<vmem>>, vector<8x828xf32>
    %c40_62 = arith.constant 40 : index
    %c0_63 = arith.constant 0 : index
    %50 = vector.load %arg10[%c40_62, %c0_63] : memref<72x870xf32, #tpu.memory_space<vmem>>, vector<8x828xf32>
    tpu.vector_store %arg10[%c40_62, %c0_63], %49 {strides = array<i32>} : memref<72x870xf32, #tpu.memory_space<vmem>>, vector<8x828xf32>,
    %c0_64 = arith.constant 0 : index
    %c40_65 = arith.constant 40 : index
    %51 = vector.load %arg11[%c0_64, %c40_65] : memref<8x870xf32, #tpu.memory_space<vmem>>, vector<8x828xf32>
    %c48_66 = arith.constant 48 : index
    %c0_67 = arith.constant 0 : index
    %52 = vector.load %arg10[%c48_66, %c0_67] : memref<72x870xf32, #tpu.memory_space<vmem>>, vector<8x828xf32>
    tpu.vector_store %arg10[%c48_66, %c0_67], %51 {strides = array<i32>} : memref<72x870xf32, #tpu.memory_space<vmem>>, vector<8x828xf32>,
    %c0_68 = arith.constant 0 : index
    %c41_69 = arith.constant 41 : index
    %53 = vector.load %arg11[%c0_68, %c41_69] : memref<8x870xf32, #tpu.memory_space<vmem>>, vector<8x828xf32>
    %c56_70 = arith.constant 56 : index
    %c0_71 = arith.constant 0 : index
    %54 = vector.load %arg10[%c56_70, %c0_71] : memref<72x870xf32, #tpu.memory_space<vmem>>, vector<8x828xf32>
    tpu.vector_store %arg10[%c56_70, %c0_71], %53 {strides = array<i32>} : memref<72x870xf32, #tpu.memory_space<vmem>>, vector<8x828xf32>,
    %c0_72 = arith.constant 0 : index
    %c42_73 = arith.constant 42 : index
    %55 = vector.load %arg11[%c0_72, %c42_73] : memref<8x870xf32, #tpu.memory_space<vmem>>, vector<8x828xf32>
    %c64_74 = arith.constant 64 : index
    %c0_75 = arith.constant 0 : index
    %56 = vector.load %arg10[%c64_74, %c0_75] : memref<72x870xf32, #tpu.memory_space<vmem>>, vector<8x828xf32>
    tpu.vector_store %arg10[%c64_74, %c0_75], %55 {strides = array<i32>} : memref<72x870xf32, #tpu.memory_space<vmem>>, vector<8x828xf32>,
    %c0_76 = arith.constant 0 : index
    %c0_77 = arith.constant 0 : index
    %c0_78 = arith.constant 0 : index
    %57 = vector.load %arg4[%c0_76, %c0_77, %c0_78] : memref<2x8x72xbf16, #tpu.memory_space<vmem>>, vector<1x8x72xbf16>
    %58 = vector.shape_cast %57 : vector<1x8x72xbf16> to vector<8x72xbf16>
    %c0_79 = arith.constant 0 : index
    %c0_80 = arith.constant 0 : index
    %59 = vector.load %arg10[%c0_79, %c0_80] : memref<72x870xf32, #tpu.memory_space<vmem>>, vector<72x828xf32>
    %60 = arith.truncf %59 : vector<72x828xf32> to vector<72x828xbf16>
    %cst_81 = arith.constant dense<0.000000e+00> : vector<8x828xf32>
    %61 = tpu.matmul %58, %60, %cst_81 {dimension_numbers = #tpu.dot_dimension_numbers<[1], [0], [0], [1], [0, 0, 1, 1], [], []>} : vector<8x72xbf16>, vector<72x828xbf16>, vector<8x828xf32> -> vector<8x828xf32>
    %c0_82 = arith.constant 0 : index
    %c0_83 = arith.constant 0 : index
    %c0_84 = arith.constant 0 : index
    %62 = vector.load %arg5[%c0_82, %c0_83, %c0_84] : memref<2x8x1xf32, #tpu.memory_space<vmem>>, vector<1x8x1xf32>
    %63 = vector.shape_cast %62 : vector<1x8x1xf32> to vector<8x1xf32>
    %64 = vector.broadcast %63 : vector<8x1xf32> to vector<8x828xf32>
    %65 = arith.mulf %61, %64 : vector<8x828xf32>
    %c0_85 = arith.constant 0 : index
    %c0_86 = arith.constant 0 : index
    %c0_87 = arith.constant 0 : index
    %66 = vector.load %arg6[%c0_85, %c0_86, %c0_87] : memref<2x8x1xf32, #tpu.memory_space<vmem>>, vector<1x8x1xf32>
    %67 = vector.shape_cast %66 : vector<1x8x1xf32> to vector<8x1xf32>
    %68 = vector.broadcast %67 : vector<8x1xf32> to vector<8x828xf32>
    %69 = arith.addf %65, %68 : vector<8x828xf32>
    %c0_88 = arith.constant 0 : index
    %c42_89 = arith.constant 42 : index
    %70 = vector.load %arg9[%c0_88, %c42_89] : memref<8x1024xf32, #tpu.memory_space<vmem>>, vector<8x828xf32>
    %71 = arith.addf %69, %70 : vector<8x828xf32>
    %cst_90 = arith.constant 0.000000e+00 : f32
    %72 = vector.broadcast %cst_90 : f32 to vector<8x828xf32>
    %73 = arith.maximumf %71, %72 : vector<8x828xf32>
    %c0_91 = arith.constant 0 : index
    %c0_92 = arith.constant 0 : index
    %74 = vector.load %arg8[%c0_91, %c0_92] : memref<1x828xf32, #tpu.memory_space<vmem>>, vector<1x828xf32>
    %75 = vector.broadcast %74 : vector<1x828xf32> to vector<8x828xf32>
    %76 = arith.mulf %73, %75 : vector<8x828xf32>
    %c0_93 = arith.constant 0 : index
    %c42_94 = arith.constant 42 : index
    %77 = vector.load %arg9[%c0_93, %c42_94] : memref<8x1024xf32, #tpu.memory_space<vmem>>, vector<8x828xf32>
    tpu.vector_store %arg9[%c0_93, %c42_94], %76 {strides = array<i32>} : memref<8x1024xf32, #tpu.memory_space<vmem>>, vector<8x828xf32>,
    %c0_95 = arith.constant 0 : index
    %c0_96 = arith.constant 0 : index
    %78 = vector.load %arg9[%c0_95, %c0_96] : memref<8x1024xf32, #tpu.memory_space<vmem>>, vector<8x870xf32>
    %c0_97 = arith.constant 0 : index
    %c0_98 = arith.constant 0 : index
    %79 = vector.load %arg10[%c0_97, %c0_98] : memref<72x870xf32, #tpu.memory_space<vmem>>, vector<8x870xf32>
    tpu.vector_store %arg10[%c0_97, %c0_98], %78 {strides = array<i32>} : memref<72x870xf32, #tpu.memory_space<vmem>>, vector<8x870xf32>,
    %c0_99 = arith.constant 0 : index
    %c1_100 = arith.constant 1 : index
    %80 = vector.load %arg9[%c0_99, %c1_100] : memref<8x1024xf32, #tpu.memory_space<vmem>>, vector<8x870xf32>
    %c8_101 = arith.constant 8 : index
    %c0_102 = arith.constant 0 : index
    %81 = vector.load %arg10[%c8_101, %c0_102] : memref<72x870xf32, #tpu.memory_space<vmem>>, vector<8x870xf32>
    tpu.vector_store %arg10[%c8_101, %c0_102], %80 {strides = array<i32>} : memref<72x870xf32, #tpu.memory_space<vmem>>, vector<8x870xf32>,
    %c0_103 = arith.constant 0 : index
    %c2_104 = arith.constant 2 : index
    %82 = vector.load %arg9[%c0_103, %c2_104] : memref<8x1024xf32, #tpu.memory_space<vmem>>, vector<8x870xf32>
    %c16_105 = arith.constant 16 : index
    %c0_106 = arith.constant 0 : index
    %83 = vector.load %arg10[%c16_105, %c0_106] : memref<72x870xf32, #tpu.memory_space<vmem>>, vector<8x870xf32>
    tpu.vector_store %arg10[%c16_105, %c0_106], %82 {strides = array<i32>} : memref<72x870xf32, #tpu.memory_space<vmem>>, vector<8x870xf32>,
    %c0_107 = arith.constant 0 : index
    %c20_108 = arith.constant 20 : index
    %84 = vector.load %arg9[%c0_107, %c20_108] : memref<8x1024xf32, #tpu.memory_space<vmem>>, vector<8x870xf32>
    %c24_109 = arith.constant 24 : index
    %c0_110 = arith.constant 0 : index
    %85 = vector.load %arg10[%c24_109, %c0_110] : memref<72x870xf32, #tpu.memory_space<vmem>>, vector<8x870xf32>
    tpu.vector_store %arg10[%c24_109, %c0_110], %84 {strides = array<i32>} : memref<72x870xf32, #tpu.memory_space<vmem>>, vector<8x870xf32>,
    %c0_111 = arith.constant 0 : index
    %c21_112 = arith.constant 21 : index
    %86 = vector.load %arg9[%c0_111, %c21_112] : memref<8x1024xf32, #tpu.memory_space<vmem>>, vector<8x870xf32>
    %c32_113 = arith.constant 32 : index
    %c0_114 = arith.constant 0 : index
    %87 = vector.load %arg10[%c32_113, %c0_114] : memref<72x870xf32, #tpu.memory_space<vmem>>, vector<8x870xf32>
    tpu.vector_store %arg10[%c32_113, %c0_114], %86 {strides = array<i32>} : memref<72x870xf32, #tpu.memory_space<vmem>>, vector<8x870xf32>,
    %c0_115 = arith.constant 0 : index
    %c22_116 = arith.constant 22 : index
    %88 = vector.load %arg9[%c0_115, %c22_116] : memref<8x1024xf32, #tpu.memory_space<vmem>>, vector<8x870xf32>
    %c40_117 = arith.constant 40 : index
    %c0_118 = arith.constant 0 : index
    %89 = vector.load %arg10[%c40_117, %c0_118] : memref<72x870xf32, #tpu.memory_space<vmem>>, vector<8x870xf32>
    tpu.vector_store %arg10[%c40_117, %c0_118], %88 {strides = array<i32>} : memref<72x870xf32, #tpu.memory_space<vmem>>, vector<8x870xf32>,
    %c0_119 = arith.constant 0 : index
    %c40_120 = arith.constant 40 : index
    %90 = vector.load %arg9[%c0_119, %c40_120] : memref<8x1024xf32, #tpu.memory_space<vmem>>, vector<8x870xf32>
    %c48_121 = arith.constant 48 : index
    %c0_122 = arith.constant 0 : index
    %91 = vector.load %arg10[%c48_121, %c0_122] : memref<72x870xf32, #tpu.memory_space<vmem>>, vector<8x870xf32>
    tpu.vector_store %arg10[%c48_121, %c0_122], %90 {strides = array<i32>} : memref<72x870xf32, #tpu.memory_space<vmem>>, vector<8x870xf32>,
    %c0_123 = arith.constant 0 : index
    %c41_124 = arith.constant 41 : index
    %92 = vector.load %arg9[%c0_123, %c41_124] : memref<8x1024xf32, #tpu.memory_space<vmem>>, vector<8x870xf32>
    %c56_125 = arith.constant 56 : index
    %c0_126 = arith.constant 0 : index
    %93 = vector.load %arg10[%c56_125, %c0_126] : memref<72x870xf32, #tpu.memory_space<vmem>>, vector<8x870xf32>
    tpu.vector_store %arg10[%c56_125, %c0_126], %92 {strides = array<i32>} : memref<72x870xf32, #tpu.memory_space<vmem>>, vector<8x870xf32>,
    %c0_127 = arith.constant 0 : index
    %c42_128 = arith.constant 42 : index
    %94 = vector.load %arg9[%c0_127, %c42_128] : memref<8x1024xf32, #tpu.memory_space<vmem>>, vector<8x870xf32>
    %c64_129 = arith.constant 64 : index
    %c0_130 = arith.constant 0 : index
    %95 = vector.load %arg10[%c64_129, %c0_130] : memref<72x870xf32, #tpu.memory_space<vmem>>, vector<8x870xf32>
    tpu.vector_store %arg10[%c64_129, %c0_130], %94 {strides = array<i32>} : memref<72x870xf32, #tpu.memory_space<vmem>>, vector<8x870xf32>,
    %c1_131 = arith.constant 1 : index
    %c0_132 = arith.constant 0 : index
    %c0_133 = arith.constant 0 : index
    %96 = vector.load %arg1[%c1_131, %c0_132, %c0_133] : memref<2x8x72xbf16, #tpu.memory_space<vmem>>, vector<1x8x72xbf16>
    %97 = vector.shape_cast %96 : vector<1x8x72xbf16> to vector<8x72xbf16>
    %c0_134 = arith.constant 0 : index
    %c0_135 = arith.constant 0 : index
    %98 = vector.load %arg10[%c0_134, %c0_135] : memref<72x870xf32, #tpu.memory_space<vmem>>, vector<72x870xf32>
    %99 = arith.truncf %98 : vector<72x870xf32> to vector<72x870xbf16>
    %cst_136 = arith.constant dense<0.000000e+00> : vector<8x870xf32>
    %100 = tpu.matmul %97, %99, %cst_136 {dimension_numbers = #tpu.dot_dimension_numbers<[1], [0], [0], [1], [0, 0, 1, 1], [], []>} : vector<8x72xbf16>, vector<72x870xbf16>, vector<8x870xf32> -> vector<8x870xf32>
    %c1_137 = arith.constant 1 : index
    %c0_138 = arith.constant 0 : index
    %c0_139 = arith.constant 0 : index
    %101 = vector.load %arg2[%c1_137, %c0_138, %c0_139] : memref<2x8x1xf32, #tpu.memory_space<vmem>>, vector<1x8x1xf32>
    %102 = vector.shape_cast %101 : vector<1x8x1xf32> to vector<8x1xf32>
    %103 = vector.broadcast %102 : vector<8x1xf32> to vector<8x870xf32>
    %104 = arith.mulf %100, %103 : vector<8x870xf32>
    %c1_140 = arith.constant 1 : index
    %c0_141 = arith.constant 0 : index
    %c0_142 = arith.constant 0 : index
    %105 = vector.load %arg3[%c1_140, %c0_141, %c0_142] : memref<2x8x1xf32, #tpu.memory_space<vmem>>, vector<1x8x1xf32>
    %106 = vector.shape_cast %105 : vector<1x8x1xf32> to vector<8x1xf32>
    %107 = vector.broadcast %106 : vector<8x1xf32> to vector<8x870xf32>
    %108 = arith.addf %104, %107 : vector<8x870xf32>
    %cst_143 = arith.constant 0.000000e+00 : f32
    %109 = vector.broadcast %cst_143 : f32 to vector<8x870xf32>
    %110 = arith.maximumf %108, %109 : vector<8x870xf32>
    %c0_144 = arith.constant 0 : index
    %c0_145 = arith.constant 0 : index
    %111 = vector.load %arg7[%c0_144, %c0_145] : memref<1x870xf32, #tpu.memory_space<vmem>>, vector<1x870xf32>
    %112 = vector.broadcast %111 : vector<1x870xf32> to vector<8x870xf32>
    %113 = arith.mulf %110, %112 : vector<8x870xf32>
    %c0_146 = arith.constant 0 : index
    %c0_147 = arith.constant 0 : index
    %114 = vector.load %arg11[%c0_146, %c0_147] : memref<8x870xf32, #tpu.memory_space<vmem>>, vector<8x870xf32>
    tpu.vector_store %arg11[%c0_146, %c0_147], %113 {strides = array<i32>} : memref<8x870xf32, #tpu.memory_space<vmem>>, vector<8x870xf32>,
    %c0_148 = arith.constant 0 : index
    %c0_149 = arith.constant 0 : index
    %115 = vector.load %arg11[%c0_148, %c0_149] : memref<8x870xf32, #tpu.memory_space<vmem>>, vector<8x828xf32>
    %c0_150 = arith.constant 0 : index
    %c0_151 = arith.constant 0 : index
    %116 = vector.load %arg10[%c0_150, %c0_151] : memref<72x870xf32, #tpu.memory_space<vmem>>, vector<8x828xf32>
    tpu.vector_store %arg10[%c0_150, %c0_151], %115 {strides = array<i32>} : memref<72x870xf32, #tpu.memory_space<vmem>>, vector<8x828xf32>,
    %c0_152 = arith.constant 0 : index
    %c1_153 = arith.constant 1 : index
    %117 = vector.load %arg11[%c0_152, %c1_153] : memref<8x870xf32, #tpu.memory_space<vmem>>, vector<8x828xf32>
    %c8_154 = arith.constant 8 : index
    %c0_155 = arith.constant 0 : index
    %118 = vector.load %arg10[%c8_154, %c0_155] : memref<72x870xf32, #tpu.memory_space<vmem>>, vector<8x828xf32>
    tpu.vector_store %arg10[%c8_154, %c0_155], %117 {strides = array<i32>} : memref<72x870xf32, #tpu.memory_space<vmem>>, vector<8x828xf32>,
    %c0_156 = arith.constant 0 : index
    %c2_157 = arith.constant 2 : index
    %119 = vector.load %arg11[%c0_156, %c2_157] : memref<8x870xf32, #tpu.memory_space<vmem>>, vector<8x828xf32>
    %c16_158 = arith.constant 16 : index
    %c0_159 = arith.constant 0 : index
    %120 = vector.load %arg10[%c16_158, %c0_159] : memref<72x870xf32, #tpu.memory_space<vmem>>, vector<8x828xf32>
    tpu.vector_store %arg10[%c16_158, %c0_159], %119 {strides = array<i32>} : memref<72x870xf32, #tpu.memory_space<vmem>>, vector<8x828xf32>,
    %c0_160 = arith.constant 0 : index
    %c20_161 = arith.constant 20 : index
    %121 = vector.load %arg11[%c0_160, %c20_161] : memref<8x870xf32, #tpu.memory_space<vmem>>, vector<8x828xf32>
    %c24_162 = arith.constant 24 : index
    %c0_163 = arith.constant 0 : index
    %122 = vector.load %arg10[%c24_162, %c0_163] : memref<72x870xf32, #tpu.memory_space<vmem>>, vector<8x828xf32>
    tpu.vector_store %arg10[%c24_162, %c0_163], %121 {strides = array<i32>} : memref<72x870xf32, #tpu.memory_space<vmem>>, vector<8x828xf32>,
    %c0_164 = arith.constant 0 : index
    %c21_165 = arith.constant 21 : index
    %123 = vector.load %arg11[%c0_164, %c21_165] : memref<8x870xf32, #tpu.memory_space<vmem>>, vector<8x828xf32>
    %c32_166 = arith.constant 32 : index
    %c0_167 = arith.constant 0 : index
    %124 = vector.load %arg10[%c32_166, %c0_167] : memref<72x870xf32, #tpu.memory_space<vmem>>, vector<8x828xf32>
    tpu.vector_store %arg10[%c32_166, %c0_167], %123 {strides = array<i32>} : memref<72x870xf32, #tpu.memory_space<vmem>>, vector<8x828xf32>,
    %c0_168 = arith.constant 0 : index
    %c22_169 = arith.constant 22 : index
    %125 = vector.load %arg11[%c0_168, %c22_169] : memref<8x870xf32, #tpu.memory_space<vmem>>, vector<8x828xf32>
    %c40_170 = arith.constant 40 : index
    %c0_171 = arith.constant 0 : index
    %126 = vector.load %arg10[%c40_170, %c0_171] : memref<72x870xf32, #tpu.memory_space<vmem>>, vector<8x828xf32>
    tpu.vector_store %arg10[%c40_170, %c0_171], %125 {strides = array<i32>} : memref<72x870xf32, #tpu.memory_space<vmem>>, vector<8x828xf32>,
    %c0_172 = arith.constant 0 : index
    %c40_173 = arith.constant 40 : index
    %127 = vector.load %arg11[%c0_172, %c40_173] : memref<8x870xf32, #tpu.memory_space<vmem>>, vector<8x828xf32>
    %c48_174 = arith.constant 48 : index
    %c0_175 = arith.constant 0 : index
    %128 = vector.load %arg10[%c48_174, %c0_175] : memref<72x870xf32, #tpu.memory_space<vmem>>, vector<8x828xf32>
    tpu.vector_store %arg10[%c48_174, %c0_175], %127 {strides = array<i32>} : memref<72x870xf32, #tpu.memory_space<vmem>>, vector<8x828xf32>,
    %c0_176 = arith.constant 0 : index
    %c41_177 = arith.constant 41 : index
    %129 = vector.load %arg11[%c0_176, %c41_177] : memref<8x870xf32, #tpu.memory_space<vmem>>, vector<8x828xf32>
    %c56_178 = arith.constant 56 : index
    %c0_179 = arith.constant 0 : index
    %130 = vector.load %arg10[%c56_178, %c0_179] : memref<72x870xf32, #tpu.memory_space<vmem>>, vector<8x828xf32>
    tpu.vector_store %arg10[%c56_178, %c0_179], %129 {strides = array<i32>} : memref<72x870xf32, #tpu.memory_space<vmem>>, vector<8x828xf32>,
    %c0_180 = arith.constant 0 : index
    %c42_181 = arith.constant 42 : index
    %131 = vector.load %arg11[%c0_180, %c42_181] : memref<8x870xf32, #tpu.memory_space<vmem>>, vector<8x828xf32>
    %c64_182 = arith.constant 64 : index
    %c0_183 = arith.constant 0 : index
    %132 = vector.load %arg10[%c64_182, %c0_183] : memref<72x870xf32, #tpu.memory_space<vmem>>, vector<8x828xf32>
    tpu.vector_store %arg10[%c64_182, %c0_183], %131 {strides = array<i32>} : memref<72x870xf32, #tpu.memory_space<vmem>>, vector<8x828xf32>,
    %c1_184 = arith.constant 1 : index
    %c0_185 = arith.constant 0 : index
    %c0_186 = arith.constant 0 : index
    %133 = vector.load %arg4[%c1_184, %c0_185, %c0_186] : memref<2x8x72xbf16, #tpu.memory_space<vmem>>, vector<1x8x72xbf16>
    %134 = vector.shape_cast %133 : vector<1x8x72xbf16> to vector<8x72xbf16>
    %c0_187 = arith.constant 0 : index
    %c0_188 = arith.constant 0 : index
    %135 = vector.load %arg10[%c0_187, %c0_188] : memref<72x870xf32, #tpu.memory_space<vmem>>, vector<72x828xf32>
    %136 = arith.truncf %135 : vector<72x828xf32> to vector<72x828xbf16>
    %cst_189 = arith.constant dense<0.000000e+00> : vector<8x828xf32>
    %137 = tpu.matmul %134, %136, %cst_189 {dimension_numbers = #tpu.dot_dimension_numbers<[1], [0], [0], [1], [0, 0, 1, 1], [], []>} : vector<8x72xbf16>, vector<72x828xbf16>, vector<8x828xf32> -> vector<8x828xf32>
    %c1_190 = arith.constant 1 : index
    %c0_191 = arith.constant 0 : index
    %c0_192 = arith.constant 0 : index
    %138 = vector.load %arg5[%c1_190, %c0_191, %c0_192] : memref<2x8x1xf32, #tpu.memory_space<vmem>>, vector<1x8x1xf32>
    %139 = vector.shape_cast %138 : vector<1x8x1xf32> to vector<8x1xf32>
    %140 = vector.broadcast %139 : vector<8x1xf32> to vector<8x828xf32>
    %141 = arith.mulf %137, %140 : vector<8x828xf32>
    %c1_193 = arith.constant 1 : index
    %c0_194 = arith.constant 0 : index
    %c0_195 = arith.constant 0 : index
    %142 = vector.load %arg6[%c1_193, %c0_194, %c0_195] : memref<2x8x1xf32, #tpu.memory_space<vmem>>, vector<1x8x1xf32>
    %143 = vector.shape_cast %142 : vector<1x8x1xf32> to vector<8x1xf32>
    %144 = vector.broadcast %143 : vector<8x1xf32> to vector<8x828xf32>
    %145 = arith.addf %141, %144 : vector<8x828xf32>
    %c0_196 = arith.constant 0 : index
    %c42_197 = arith.constant 42 : index
    %146 = vector.load %arg9[%c0_196, %c42_197] : memref<8x1024xf32, #tpu.memory_space<vmem>>, vector<8x828xf32>
    %147 = arith.addf %145, %146 : vector<8x828xf32>
    %cst_198 = arith.constant 0.000000e+00 : f32
    %148 = vector.broadcast %cst_198 : f32 to vector<8x828xf32>
    %149 = arith.maximumf %147, %148 : vector<8x828xf32>
    %c0_199 = arith.constant 0 : index
    %c0_200 = arith.constant 0 : index
    %150 = vector.load %arg8[%c0_199, %c0_200] : memref<1x828xf32, #tpu.memory_space<vmem>>, vector<1x828xf32>
    %151 = vector.broadcast %150 : vector<1x828xf32> to vector<8x828xf32>
    %152 = arith.mulf %149, %151 : vector<8x828xf32>
    %c0_201 = arith.constant 0 : index
    %c42_202 = arith.constant 42 : index
    %153 = vector.load %arg9[%c0_201, %c42_202] : memref<8x1024xf32, #tpu.memory_space<vmem>>, vector<8x828xf32>
    tpu.vector_store %arg9[%c0_201, %c42_202], %152 {strides = array<i32>} : memref<8x1024xf32, #tpu.memory_space<vmem>>, vector<8x828xf32>,
    return
  }
}

module attributes {stable_mosaic.version = 11 : i64} {
  func.func @_sum_relu_kernel(%arg0: memref<2x4x256xf32, #tpu.memory_space<vmem>>, %arg1: memref<2x4x256xf32, #tpu.memory_space<vmem>>, %arg2: memref<2x4x256xf32, #tpu.memory_space<vmem>>) attributes {dimension_semantics = [], scalar_prefetch = 0 : i64, scratch_operands = 0 : i64, tpu.core_type = #tpu.core_type<tc>} {
    %c0 = arith.constant 0 : index
    %c0_0 = arith.constant 0 : index
    %c0_1 = arith.constant 0 : index
    %0 = vector.load %arg0[%c0, %c0_0, %c0_1] : memref<2x4x256xf32, #tpu.memory_space<vmem>>, vector<2x4x256xf32>
    %c0_2 = arith.constant 0 : index
    %c0_3 = arith.constant 0 : index
    %c0_4 = arith.constant 0 : index
    %1 = vector.load %arg1[%c0_2, %c0_3, %c0_4] : memref<2x4x256xf32, #tpu.memory_space<vmem>>, vector<2x4x256xf32>
    %2 = arith.addf %0, %1 : vector<2x4x256xf32>
    %cst = arith.constant 0.000000e+00 : f32
    %3 = vector.broadcast %cst : f32 to vector<2x4x256xf32>
    %4 = arith.maximumf %2, %3 : vector<2x4x256xf32>
    %c0_5 = arith.constant 0 : index
    %c0_6 = arith.constant 0 : index
    %c0_7 = arith.constant 0 : index
    %5 = vector.load %arg2[%c0_5, %c0_6, %c0_7] : memref<2x4x256xf32, #tpu.memory_space<vmem>>, vector<2x4x256xf32>
    tpu.vector_store %arg2[%c0_5, %c0_6, %c0_7], %4 {strides = array<i32>} : memref<2x4x256xf32, #tpu.memory_space<vmem>>, vector<2x4x256xf32>,
    return
  }
}

module attributes {stable_mosaic.version = 11 : i64} {
  func.func @_sum_relu_kernel(%arg0: memref<2x8x64xf32, #tpu.memory_space<vmem>>, %arg1: memref<2x8x64xf32, #tpu.memory_space<vmem>>, %arg2: memref<2x8x64xf32, #tpu.memory_space<vmem>>) attributes {dimension_semantics = [], scalar_prefetch = 0 : i64, scratch_operands = 0 : i64, tpu.core_type = #tpu.core_type<tc>} {
    %c0 = arith.constant 0 : index
    %c0_0 = arith.constant 0 : index
    %c0_1 = arith.constant 0 : index
    %0 = vector.load %arg0[%c0, %c0_0, %c0_1] : memref<2x8x64xf32, #tpu.memory_space<vmem>>, vector<2x8x64xf32>
    %c0_2 = arith.constant 0 : index
    %c0_3 = arith.constant 0 : index
    %c0_4 = arith.constant 0 : index
    %1 = vector.load %arg1[%c0_2, %c0_3, %c0_4] : memref<2x8x64xf32, #tpu.memory_space<vmem>>, vector<2x8x64xf32>
    %2 = arith.addf %0, %1 : vector<2x8x64xf32>
    %cst = arith.constant 0.000000e+00 : f32
    %3 = vector.broadcast %cst : f32 to vector<2x8x64xf32>
    %4 = arith.maximumf %2, %3 : vector<2x8x64xf32>
    %c0_5 = arith.constant 0 : index
    %c0_6 = arith.constant 0 : index
    %c0_7 = arith.constant 0 : index
    %5 = vector.load %arg2[%c0_5, %c0_6, %c0_7] : memref<2x8x64xf32, #tpu.memory_space<vmem>>, vector<2x8x64xf32>
    tpu.vector_store %arg2[%c0_5, %c0_6, %c0_7], %4 {strides = array<i32>} : memref<2x8x64xf32, #tpu.memory_space<vmem>>, vector<2x8x64xf32>,
    return
  }
}

module attributes {stable_mosaic.version = 11 : i64} {
  func.func @_fuse_down_kernel(%arg0: memref<4x8x384xf32, #tpu.memory_space<vmem>>, %arg1: memref<8x72xbf16, #tpu.memory_space<vmem>>, %arg2: memref<8x1xf32, #tpu.memory_space<vmem>>, %arg3: memref<8x1xf32, #tpu.memory_space<vmem>>, %arg4: memref<8x256xf32, #tpu.memory_space<vmem>>, %arg5: memref<72x256xf32, #tpu.memory_space<vmem>>) attributes {dimension_semantics = [], scalar_prefetch = 0 : i64, scratch_operands = 1 : i64, tpu.core_type = #tpu.core_type<tc>} {
    %c0 = arith.constant 0 : index
    %c0_0 = arith.constant 0 : index
    %c0_1 = arith.constant 0 : index
    %0 = vector.load %arg0[%c0, %c0_0, %c0_1] : memref<4x8x384xf32, #tpu.memory_space<vmem>>, vector<1x8x256xf32>
    %1 = vector.shape_cast %0 : vector<1x8x256xf32> to vector<8x256xf32>
    %c0_2 = arith.constant 0 : index
    %c0_3 = arith.constant 0 : index
    %2 = vector.load %arg5[%c0_2, %c0_3] : memref<72x256xf32, #tpu.memory_space<vmem>>, vector<8x256xf32>
    tpu.vector_store %arg5[%c0_2, %c0_3], %1 {strides = array<i32>} : memref<72x256xf32, #tpu.memory_space<vmem>>, vector<8x256xf32>,
    %c1 = arith.constant 1 : index
    %c0_4 = arith.constant 0 : index
    %c0_5 = arith.constant 0 : index
    %3 = vector.load %arg0[%c1, %c0_4, %c0_5] : memref<4x8x384xf32, #tpu.memory_space<vmem>>, vector<1x8x256xf32>
    %4 = vector.shape_cast %3 : vector<1x8x256xf32> to vector<8x256xf32>
    %c8 = arith.constant 8 : index
    %c0_6 = arith.constant 0 : index
    %5 = vector.load %arg5[%c8, %c0_6] : memref<72x256xf32, #tpu.memory_space<vmem>>, vector<8x256xf32>
    tpu.vector_store %arg5[%c8, %c0_6], %4 {strides = array<i32>} : memref<72x256xf32, #tpu.memory_space<vmem>>, vector<8x256xf32>,
    %c0_7 = arith.constant 0 : index
    %c0_8 = arith.constant 0 : index
    %c1_9 = arith.constant 1 : index
    %6 = vector.load %arg0[%c0_7, %c0_8, %c1_9] : memref<4x8x384xf32, #tpu.memory_space<vmem>>, vector<1x8x256xf32>
    %7 = vector.shape_cast %6 : vector<1x8x256xf32> to vector<8x256xf32>
    %c16 = arith.constant 16 : index
    %c0_10 = arith.constant 0 : index
    %8 = vector.load %arg5[%c16, %c0_10] : memref<72x256xf32, #tpu.memory_space<vmem>>, vector<8x256xf32>
    tpu.vector_store %arg5[%c16, %c0_10], %7 {strides = array<i32>} : memref<72x256xf32, #tpu.memory_space<vmem>>, vector<8x256xf32>,
    %c2 = arith.constant 2 : index
    %c0_11 = arith.constant 0 : index
    %c0_12 = arith.constant 0 : index
    %9 = vector.load %arg0[%c2, %c0_11, %c0_12] : memref<4x8x384xf32, #tpu.memory_space<vmem>>, vector<1x8x256xf32>
    %10 = vector.shape_cast %9 : vector<1x8x256xf32> to vector<8x256xf32>
    %c24 = arith.constant 24 : index
    %c0_13 = arith.constant 0 : index
    %11 = vector.load %arg5[%c24, %c0_13] : memref<72x256xf32, #tpu.memory_space<vmem>>, vector<8x256xf32>
    tpu.vector_store %arg5[%c24, %c0_13], %10 {strides = array<i32>} : memref<72x256xf32, #tpu.memory_space<vmem>>, vector<8x256xf32>,
    %c3 = arith.constant 3 : index
    %c0_14 = arith.constant 0 : index
    %c0_15 = arith.constant 0 : index
    %12 = vector.load %arg0[%c3, %c0_14, %c0_15] : memref<4x8x384xf32, #tpu.memory_space<vmem>>, vector<1x8x256xf32>
    %13 = vector.shape_cast %12 : vector<1x8x256xf32> to vector<8x256xf32>
    %c32 = arith.constant 32 : index
    %c0_16 = arith.constant 0 : index
    %14 = vector.load %arg5[%c32, %c0_16] : memref<72x256xf32, #tpu.memory_space<vmem>>, vector<8x256xf32>
    tpu.vector_store %arg5[%c32, %c0_16], %13 {strides = array<i32>} : memref<72x256xf32, #tpu.memory_space<vmem>>, vector<8x256xf32>,
    %c2_17 = arith.constant 2 : index
    %c0_18 = arith.constant 0 : index
    %c1_19 = arith.constant 1 : index
    %15 = vector.load %arg0[%c2_17, %c0_18, %c1_19] : memref<4x8x384xf32, #tpu.memory_space<vmem>>, vector<1x8x256xf32>
    %16 = vector.shape_cast %15 : vector<1x8x256xf32> to vector<8x256xf32>
    %c40 = arith.constant 40 : index
    %c0_20 = arith.constant 0 : index
    %17 = vector.load %arg5[%c40, %c0_20] : memref<72x256xf32, #tpu.memory_space<vmem>>, vector<8x256xf32>
    tpu.vector_store %arg5[%c40, %c0_20], %16 {strides = array<i32>} : memref<72x256xf32, #tpu.memory_space<vmem>>, vector<8x256xf32>,
    %c0_21 = arith.constant 0 : index
    %c0_22 = arith.constant 0 : index
    %c9 = arith.constant 9 : index
    %18 = vector.load %arg0[%c0_21, %c0_22, %c9] : memref<4x8x384xf32, #tpu.memory_space<vmem>>, vector<1x8x256xf32>
    %19 = vector.shape_cast %18 : vector<1x8x256xf32> to vector<8x256xf32>
    %c48 = arith.constant 48 : index
    %c0_23 = arith.constant 0 : index
    %20 = vector.load %arg5[%c48, %c0_23] : memref<72x256xf32, #tpu.memory_space<vmem>>, vector<8x256xf32>
    tpu.vector_store %arg5[%c48, %c0_23], %19 {strides = array<i32>} : memref<72x256xf32, #tpu.memory_space<vmem>>, vector<8x256xf32>,
    %c1_24 = arith.constant 1 : index
    %c0_25 = arith.constant 0 : index
    %c9_26 = arith.constant 9 : index
    %21 = vector.load %arg0[%c1_24, %c0_25, %c9_26] : memref<4x8x384xf32, #tpu.memory_space<vmem>>, vector<1x8x256xf32>
    %22 = vector.shape_cast %21 : vector<1x8x256xf32> to vector<8x256xf32>
    %c56 = arith.constant 56 : index
    %c0_27 = arith.constant 0 : index
    %23 = vector.load %arg5[%c56, %c0_27] : memref<72x256xf32, #tpu.memory_space<vmem>>, vector<8x256xf32>
    tpu.vector_store %arg5[%c56, %c0_27], %22 {strides = array<i32>} : memref<72x256xf32, #tpu.memory_space<vmem>>, vector<8x256xf32>,
    %c0_28 = arith.constant 0 : index
    %c0_29 = arith.constant 0 : index
    %c10 = arith.constant 10 : index
    %24 = vector.load %arg0[%c0_28, %c0_29, %c10] : memref<4x8x384xf32, #tpu.memory_space<vmem>>, vector<1x8x256xf32>
    %25 = vector.shape_cast %24 : vector<1x8x256xf32> to vector<8x256xf32>
    %c64 = arith.constant 64 : index
    %c0_30 = arith.constant 0 : index
    %26 = vector.load %arg5[%c64, %c0_30] : memref<72x256xf32, #tpu.memory_space<vmem>>, vector<8x256xf32>
    tpu.vector_store %arg5[%c64, %c0_30], %25 {strides = array<i32>} : memref<72x256xf32, #tpu.memory_space<vmem>>, vector<8x256xf32>,
    %c0_31 = arith.constant 0 : index
    %c0_32 = arith.constant 0 : index
    %27 = vector.load %arg1[%c0_31, %c0_32] : memref<8x72xbf16, #tpu.memory_space<vmem>>, vector<8x72xbf16>
    %c0_33 = arith.constant 0 : index
    %c0_34 = arith.constant 0 : index
    %28 = vector.load %arg5[%c0_33, %c0_34] : memref<72x256xf32, #tpu.memory_space<vmem>>, vector<72x256xf32>
    %29 = arith.truncf %28 : vector<72x256xf32> to vector<72x256xbf16>
    %cst = arith.constant dense<0.000000e+00> : vector<8x256xf32>
    %30 = tpu.matmul %27, %29, %cst {dimension_numbers = #tpu.dot_dimension_numbers<[1], [0], [0], [1], [0, 0, 1, 1], [], []>} : vector<8x72xbf16>, vector<72x256xbf16>, vector<8x256xf32> -> vector<8x256xf32>
    %c0_35 = arith.constant 0 : index
    %c0_36 = arith.constant 0 : index
    %31 = vector.load %arg2[%c0_35, %c0_36] : memref<8x1xf32, #tpu.memory_space<vmem>>, vector<8x1xf32>
    %32 = vector.broadcast %31 : vector<8x1xf32> to vector<8x256xf32>
    %33 = arith.mulf %30, %32 : vector<8x256xf32>
    %c0_37 = arith.constant 0 : index
    %c0_38 = arith.constant 0 : index
    %34 = vector.load %arg3[%c0_37, %c0_38] : memref<8x1xf32, #tpu.memory_space<vmem>>, vector<8x1xf32>
    %35 = vector.broadcast %34 : vector<8x1xf32> to vector<8x256xf32>
    %36 = arith.addf %33, %35 : vector<8x256xf32>
    %c0_39 = arith.constant 0 : index
    %c0_40 = arith.constant 0 : index
    %37 = vector.load %arg4[%c0_39, %c0_40] : memref<8x256xf32, #tpu.memory_space<vmem>>, vector<8x256xf32>
    tpu.vector_store %arg4[%c0_39, %c0_40], %36 {strides = array<i32>} : memref<8x256xf32, #tpu.memory_space<vmem>>, vector<8x256xf32>,
    return
  }
}

</mosaic_0001>

<bundles_post_ra>
// kernel: _lambda_.8
= control target key start
LH: loop header
LB: loop body
LE: loop exit
PB: predicated region body
PF: predicated region fallthrough
CT: control target
= control target key end

     0   :  { %v101_v0 = vmov 0.0   ;;  %vm25_vm0 = vcmask 1043456   ;;  %vm102_vm1 = vmmov 0   ;;  %v103_v4 = vmov 0   ;;  %s144_s0 = inlined_call_operand.vmem [shape: f32[8,128], index: 0, kind: input, shape index: {}]   ;;  %s145_s2 = inlined_call_operand.vmem [shape: f32[8,1], index: 2, kind: input, shape index: {}]   ;;  %s146_s3 = inlined_call_operand.vmem [shape: f32[8,1], index: 3, kind: input, shape index: {}]   ;;  %s147_s1 = inlined_call_operand.vmem [shape: bf16[8,8], index: 1, kind: input, shape index: {}]   ;;  %s148_s4 = inlined_call_operand.vmem [shape: f32[8,128], index: 4, kind: output, shape index: {}]  }
   0x1   :  { %91 = vmatprep.subr.bf16.mxu0 %v101_v0  ;;  %v19_v1 = vld [vmem:[%s144_s0] sm:$0xff]  ;;  %93 = vmatprep.mubr.msk.bf16.mxu0 %vm102_vm1, %v101_v0  ;;  %vm21_vm2 = vcmask 64512  }
   0x2   :  { %v69_v2 = vld [vmem:[%s145_s2] sm:$0xff]  ;;  %v20_v3 = vpack.c.bf16 %v19_v1, %v19_v1  ;;  %100 = vset.pattern.permute.xlu0 %v103_v4 }
   0x3   :  { %72 = vperm.xlu0 %100, %v69_v2   ;;  %v76_v6 = vld [vmem:[%s146_s3] sm:$0xff] }
   0x4   :  { %v27_v5 = vsel %vm25_vm0, %v20_v3, 0  ;;  %v18_v7 = vld [vmem:[%s147_s1] sm:$0xf] }
   0x5   :  { %92 = vmatpush3.bf16.msra.mxu0 %v27_v5 }
   0x7   :  { %79 = vperm.xlu0 %100, %v76_v6  }
   0x8   :  { %94 = vmatmul.mubr.msk.bf16.vlgmr.msra.gmra.mxu0 %vm21_vm2, %v18_v7 }
  0x7e   :  { %v73_v8 = vpop.permute.xlu0 %72 }
  0x82   :  { %v80_v11 = vpop.permute.xlu0 %79 }
  0xc8   :  { %v63_v9 = vpop.f32.mrf.mxu0 }
  0xc9   :  { %v75_v10 = vmul.f32 %v73_v8, %v63_v9 }
  0xca   :  { %v95_v12 = vpop.f32.mrf.mxu0 }
  0xcb   :  { %v82_v13 = vadd.f32 %v80_v11, %v75_v10 }
  0xcc   :  { %v66_v14 = vpop.f32.mrf.mxu0 }
  0xcd   :  { %83 = vst [vmem:[%s148_s4] sm:$0xff] %v82_v13 }
  0xce   :  { %v96_v15 = vpop.f32.mrf.mxu0 }

// kernel: _lambda_.9
= control target key start
LH: loop header
LB: loop body
LE: loop exit
PB: predicated region body
PF: predicated region fallthrough
CT: control target
= control target key end

     0   :  { %s58_s0 = inlined_call_operand.vmem [shape: f32[2,4,256], index: 0, kind: input, shape index: {}]   ;;  %s59_s1 = inlined_call_operand.vmem [shape: f32[2,4,256], index: 1, kind: input, shape index: {}]   ;;  %s60_s2 = inlined_call_operand.vmem [shape: f32[2,4,256], index: 2, kind: output, shape index: {}]  }
   0x1   :  { %v11_v0 = vld [vmem:[%s58_s0] sm:$0xff]  ;;  %v12_v2 = vld [vmem:[%s58_s0 + $0x8] sm:$0xff] }
   0x2   :  { %v13_v1 = vld [vmem:[%s59_s1] sm:$0xff]  ;;  %v14_v4 = vld [vmem:[%s59_s1 + $0x8] sm:$0xff] }
   0x3   :  { %v15_v3 = vadd.f32 %v13_v1, %v11_v0  ;;  %v16_v5 = vadd.f32 %v14_v4, %v12_v2 }
   0x5   :  { %v17_v6 = vmax.f32 %v15_v3, 0.0  ;;  %v18_v7 = vmax.f32 %v16_v5, 0.0 }
   0x7   :  { %19 = vst [vmem:[%s60_s2] sm:$0xff] %v17_v6  ;;  %20 = vst [vmem:[%s60_s2 + $0x8] sm:$0xff] %v18_v7 }

// kernel: _lambda_.7
= control target key start
LH: loop header
LB: loop body
LE: loop exit
PB: predicated region body
PF: predicated region fallthrough
CT: control target
= control target key end

     0   :  { %vm46_vm0 = vcmask 965632   ;;  %s1689_s17 = smov 102   ;;  %v1690_v4 = vmov 0.0   ;;  %s1691_s24 = smov 104   ;;  %v1697_v5 = vmov 0   ;;  %vm1699_vm1 = vmmov 0   ;;  %s2292_s0 = inlined_call_operand.vmem [shape: f32[8,512], index: 0, kind: input, shape index: {}]   ;;  %s2293_s9 = inlined_call_operand.vmem [shape: f32[8,512], index: 9, kind: output, shape index: {}]   ;;  %s2294_s2 = inlined_call_operand.vmem [shape: f32[2,8,1], index: 2, kind: input, shape index: {}]   ;;  %s2295_s3 = inlined_call_operand.vmem [shape: f32[2,8,1], index: 3, kind: input, shape index: {}]   ;;  %s2296_s1 = inlined_call_operand.vmem [shape: bf16[2,8,72], index: 1, kind: input, shape index: {}]   ;;  %s2297_s7 = inlined_call_operand.vmem [shape: f32[1,374], index: 7, kind: input, shape index: {}]   ;;  %s2298_s6 = inlined_call_operand.vmem [shape: f32[2,8,1], index: 6, kind: input, shape index: {}]   ;;  %s2299_s5 = inlined_call_operand.vmem [shape: f32[2,8,1], index: 5, kind: input, shape index: {}]   ;;  %s2300_s4 = inlined_call_operand.vmem [shape: bf16[2,8,72], index: 4, kind: input, shape index: {}]   ;;  %s2301_s8 = inlined_call_operand.vmem [shape: f32[1,348], index: 8, kind: input, shape index: {}]  }
   0x1   :  { %v1754_v0 = vld [vmem:[%s2292_s0 + $0x10] sm:$0xff]  ;;  %v1759_v1 = vld [vmem:[%s2292_s0] sm:$0xff]  ;;  %v36_v2 = vld [vmem:[%s2292_s0 + $0x18] sm:$0xff]  ;;  %1619 = vmatprep.subr.bf16.mxu1 %v1690_v4  ;;  %s1692_s25 = smov 103   ;;  %s1694_s26 = smov 114   ;;  %335 = vmatprep.mubr.bf16.mxu0 %v1697_v5  ;;  %vm236_vm2 = vcmask 834560  }
   0x2   :  { %39 = vst [vmem:[%s2293_s9 + $0x10] sm:$0xff] %v1754_v0  ;;  %232 = vrot.lane.b32.xlu1 %v1754_v0, %s1689_s17  ;;  %37 = vst [vmem:[%s2293_s9] sm:$0xff] %v1759_v1  ;;  %228 = vrot.lane.b32.xlu0 %v1759_v1, %s1689_s17  ;;  %s1695_s27 = smov 126   ;;  %s1696_s28 = smov 116   ;;  %vm293_vm3 = vcmask 1043456   ;;  %vm184_vm4 = vcmask 850944   ;;  %vm210_vm5 = vcmask 842752  }
   0x3   :  { %40 = vst [vmem:[%s2293_s9 + $0x18] sm:$0xff] %v36_v2  ;;  %47 = vst.msk [vmem:[#allocation2 + $0x10] sm:$0xff] %vm46_vm0, %v1754_v0  ;;  %v1784_v3 = vld [vmem:[%s2292_s0 + $0x8] sm:$0xff]  ;;  %s1693_s0 = smov 115   ;;  %1687 = vset.pattern.permute.xlu0 %v1697_v5  ;;  %1688 = vset.pattern.permute.xlu1 %v1697_v5  ;;  %s1698_s29 = smov 127   ;;  %v384_v6 = vld [vmem:[%s2294_s2] sm:$0xff] }
   0x4   :  { %1629 = vmatprep.mubr.msk.bf16.mxu1 %vm1699_vm1, %v1690_v4  ;;  %v393_v7 = vld [vmem:[%s2295_s3] sm:$0xff]  ;;  %vm132_vm6 = vcmask 941056   ;;  %vm158_vm7 = vcmask 932864   ;;  %vm81_vm8 = vcmask 1031168   ;;  %vm106_vm9 = vcmask 949248   ;;  %s1700_s11 = smov 26  }
   0x5   :  { %vm60_vm10 = vcmask 1039360   ;;  %vm289_vm11 = vcmask 588800   ;;  %vm433_vm12 = vcmask 752640   ;;  %vm807_vm13 = vcmask 1047760  }
   0x6   :  { %234 = vrot.lane.b32.xlu1 %v36_v2, %s1689_s17  ;;  %230 = vrot.lane.b32.xlu0 %v1784_v3, %s1689_s17  ;;  %vm801_vm14 = vcmask 211968  }
   0xa   :  { %180 = vrot.lane.b32.xlu1 %v1754_v0, %s1691_s24  ;;  %178 = vrot.lane.b32.xlu0 %v1784_v3, %s1691_s24 }
   0xe   :  { %206 = vrot.lane.b32.xlu1 %v1754_v0, %s1692_s25  ;;  %204 = vrot.lane.b32.xlu0 %v1784_v3, %s1692_s25 }
  0x12   :  { %202 = vrot.lane.b32.xlu1 %v1759_v1, %s1692_s25  ;;  %176 = vrot.lane.b32.xlu0 %v1759_v1, %s1691_s24 }
  0x16   :  { %208 = vrot.lane.b32.xlu1 %v36_v2, %s1692_s25  ;;  %182 = vrot.lane.b32.xlu0 %v36_v2, %s1691_s24 }
  0x1a   :  { %128 = vrot.lane.b32.xlu1 %v1754_v0, %s1693_s0  ;;  %126 = vrot.lane.b32.xlu0 %v1784_v3, %s1693_s0 }
  0x1e   :  { %154 = vrot.lane.b32.xlu1 %v1754_v0, %s1694_s26  ;;  %152 = vrot.lane.b32.xlu0 %v1784_v3, %s1694_s26 }
  0x22   :  { %150 = vrot.lane.b32.xlu1 %v1759_v1, %s1694_s26  ;;  %124 = vrot.lane.b32.xlu0 %v1759_v1, %s1693_s0 }
  0x26   :  { %156 = vrot.lane.b32.xlu1 %v36_v2, %s1694_s26  ;;  %130 = vrot.lane.b32.xlu0 %v36_v2, %s1693_s0 }
  0x2a   :  { %79 = vrot.lane.b32.xlu1 %v1754_v0, %s1695_s27  ;;  %77 = vrot.lane.b32.xlu0 %v1784_v3, %s1695_s27 }
  0x2e   :  { %102 = vrot.lane.b32.xlu1 %v1754_v0, %s1696_s28  ;;  %100 = vrot.lane.b32.xlu0 %v1784_v3, %s1696_s28 }
  0x32   :  { %98 = vrot.lane.b32.xlu1 %v1759_v1, %s1696_s28  ;;  %75 = vrot.lane.b32.xlu0 %v1759_v1, %s1695_s27 }
  0x36   :  { %56 = vrot.lane.b32.xlu1 %v1784_v3, %s1698_s29  ;;  %104 = vrot.lane.b32.xlu0 %v36_v2, %s1696_s28 }
  0x3a   :  { %58 = vrot.lane.b32.xlu0 %v1754_v0, %s1698_s29  ;;  %54 = vrot.lane.b32.xlu1 %v1759_v1, %s1698_s29 }
  0x3e   :  { %387 = vperm.xlu0 %1687, %v384_v6   ;;  %396 = vperm.xlu1 %1688, %v393_v7  }
  0x74   :  { %v233_v8 = vpop.permute.xlu1 %232  ;;  %v229_v9 = vpop.permute.xlu0 %228 }
  0x78   :  { %v235_v10 = vpop.permute.xlu1 %234  ;;  %v231_v11 = vpop.permute.xlu0 %230 }
  0x79   :  { %v239_v12 = vsel %vm236_vm2, %v233_v8, %v235_v10  ;;  %v237_v13 = vsel %vm236_vm2, %v229_v9, %v231_v11  ;;  %v238_v14 = vsel %vm236_vm2, %v231_v11, %v233_v8 }
  0x7a   :  { %245 = vst.msk [vmem:[#allocation2 + $0xd0] sm:$0xff] %vm46_vm0, %v239_v12  ;;  %v287_v15 = vpack.c.bf16 %v238_v14, %v238_v14  ;;  %v286_v16 = vpack.c.bf16 %v237_v13, %v237_v13 }
  0x7c   :  { %v181_v17 = vpop.permute.xlu1 %180  ;;  %v179_v18 = vpop.permute.xlu0 %178  ;;  %1577 = vmatprep.subr.msk.bf16.mxu0 %vm293_vm3, %v287_v15  ;;  %v295_v19 = vsel %vm293_vm3, %v286_v16, 0 }
  0x7d   :  { %310 = vmatpush1.bf16.msra.mxu0 %v295_v19  ;;  %v186_v22 = vsel %vm184_vm4, %v179_v18, %v181_v17 }
  0x80   :  { %v207_v20 = vpop.permute.xlu1 %206  ;;  %v205_v21 = vpop.permute.xlu0 %204 }
  0x81   :  { %v212_v23 = vsel %vm210_vm5, %v205_v21, %v207_v20  ;;  %v273_v24 = vld [vmem:[#allocation2 + $0xd0] sm:$0xff] }
  0x82   :  { %v288_v25 = vpack.c.bf16 %v273_v24, %v273_v24  ;;  %v284_v26 = vpack.c.bf16 %v212_v23, %v186_v22  ;;  %v246_v23 = vld [vmem:[%s2296_s1] sm:$0xf] }
  0x84   :  { %v203_v27 = vpop.permute.xlu1 %202  ;;  %v177_v28 = vpop.permute.xlu0 %176  ;;  %v301_v29 = vsel %vm293_vm3, %v288_v25, 0  ;;  %311 = vmatprep.subr.bf16.mxu0 %v284_v26  ;;  %v249_v25 = vld [vmem:[#allocation2 + $0x10] sm:$0xff] }
  0x85   :  { %v211_v30 = vsel %vm210_vm5, %v203_v27, %v205_v21  ;;  %v185_v31 = vsel %vm184_vm4, %v177_v28, %v179_v18  ;;  %1620 = vmatpush3.bf16.msra.mxu1 %v301_v29  ;;  %v407_v28 = vlaneseq }
  0x86   :  { %v283_v32 = vpack.c.bf16 %v211_v30, %v185_v31  ;;  %1621 = vmatprep.subr.bf16.mxu1 %v1690_v4 }
  0x87   :  { %v408_v29 = vshrl.u32 %v407_v28, 7 }
  0x88   :  { %v209_v33 = vpop.permute.xlu1 %208  ;;  %v183_v34 = vpop.permute.xlu0 %182  ;;  %312 = vmatpush1.bf16.msra.mxu0 %v283_v32 }
  0x89   :  { %v213_v35 = vsel %vm210_vm5, %v207_v20, %v209_v33  ;;  %v187_v36 = vsel %vm184_vm4, %v181_v17, %v183_v34  ;;  %v1896_v31 = vsub.s32 0, %v408_v29  ;;  %v405_v33 = vld [vmem:[%s2297_s7] sm:$0x7] }
  0x8a   :  { %219 = vst.msk [vmem:[#allocation2 + $0xb8] sm:$0xff] %vm46_vm0, %v213_v35  ;;  %193 = vst.msk [vmem:[#allocation2 + $0xa0] sm:$0xff] %vm46_vm0, %v187_v36 }
  0x8c   :  { %v129_v37 = vpop.permute.xlu1 %128  ;;  %v127_v38 = vpop.permute.xlu0 %126 }
  0x8d   :  { %v134_v41 = vsel %vm132_vm6, %v127_v38, %v129_v37 }
  0x90   :  { %v155_v39 = vpop.permute.xlu1 %154  ;;  %v153_v40 = vpop.permute.xlu0 %152 }
  0x91   :  { %v160_v42 = vsel %vm158_vm7, %v153_v40, %v155_v39  ;;  %v267_v43 = vld [vmem:[#allocation2 + $0xa0] sm:$0xff]  ;;  %v270_v44 = vld [vmem:[#allocation2 + $0xb8] sm:$0xff] }
  0x92   :  { %v285_v45 = vpack.c.bf16 %v270_v44, %v267_v43  ;;  %v281_v46 = vpack.c.bf16 %v160_v42, %v134_v41  ;;  %v1902_v41 = vsub.s32 2, %v408_v29 }
  0x94   :  { %1622 = vmatpush3.bf16.msra.mxu1 %v285_v45  ;;  %v151_v47 = vpop.permute.xlu1 %150  ;;  %v125_v48 = vpop.permute.xlu0 %124  ;;  %313 = vmatprep.subr.bf16.mxu0 %v281_v46 }
  0x95   :  { %v159_v49 = vsel %vm158_vm7, %v151_v47, %v153_v40  ;;  %v133_v50 = vsel %vm132_vm6, %v125_v48, %v127_v38  ;;  %1623 = vmatprep.subr.bf16.mxu1 %v1690_v4  ;;  %v418_v48 = vrot.slane %v405_v33, %v1902_v41 }
  0x96   :  { %v280_v51 = vpack.c.bf16 %v159_v49, %v133_v50 }
  0x98   :  { %v157_v52 = vpop.permute.xlu1 %156  ;;  %v131_v53 = vpop.permute.xlu0 %130  ;;  %314 = vmatpush1.bf16.msra.mxu0 %v280_v51  ;;  %v1911_v51 = vsub.s32 1, %v408_v29 }
  0x99   :  { %v161_v54 = vsel %vm158_vm7, %v155_v39, %v157_v52  ;;  %v135_v55 = vsel %vm132_vm6, %v129_v37, %v131_v53  ;;  %v410_v37 = vrot.slane %v405_v33, %v1896_v31 }
  0x9a   :  { %167 = vst.msk [vmem:[#allocation2 + $0x88] sm:$0xff] %vm46_vm0, %v161_v54  ;;  %141 = vst.msk [vmem:[#allocation2 + $0x70] sm:$0xff] %vm46_vm0, %v135_v55 }
  0x9c   :  { %v80_v56 = vpop.permute.xlu1 %79  ;;  %v78_v57 = vpop.permute.xlu0 %77 }
  0x9d   :  { %89 = vst.msk [vmem:[#allocation2 + $0x40] sm:$0xff] %vm46_vm0, %v80_v56  ;;  %v83_v60 = vsel %vm81_vm8, %v78_v57, %v80_v56 }
  0xa0   :  { %v103_v58 = vpop.permute.xlu1 %102  ;;  %v101_v59 = vpop.permute.xlu0 %100 }
  0xa1   :  { %v108_v61 = vsel %vm106_vm9, %v101_v59, %v103_v58  ;;  %v261_v62 = vld [vmem:[#allocation2 + $0x70] sm:$0xff]  ;;  %v264_v63 = vld [vmem:[#allocation2 + $0x88] sm:$0xff] }
  0xa2   :  { %v282_v2 = vpack.c.bf16 %v264_v63, %v261_v62  ;;  %v278_v6 = vpack.c.bf16 %v108_v61, %v83_v60  ;;  %v740_v60 = vld [vmem:[%s2298_s6] sm:$0xff] }
  0xa3   :  { %v731_v61 = vld [vmem:[%s2299_s5] sm:$0xff] }
  0xa4   :  { %1624 = vmatpush3.bf16.msra.mxu1 %v282_v2  ;;  %v99_v7 = vpop.permute.xlu1 %98  ;;  %v76_v8 = vpop.permute.xlu0 %75  ;;  %315 = vmatprep.subr.bf16.mxu0 %v278_v6  ;;  %v255_v21 = vld [vmem:[#allocation2 + $0x40] sm:$0xff] }
  0xa5   :  { %v107_v9 = vsel %vm106_vm9, %v99_v7, %v101_v59  ;;  %v82_v10 = vsel %vm81_vm8, %v76_v8, %v78_v57  ;;  %1625 = vmatprep.subr.bf16.mxu1 %v1690_v4  ;;  %v414_v57 = vrot.slane %v405_v33, %v1911_v51 }
  0xa6   :  { %v277_v11 = vpack.c.bf16 %v107_v9, %v82_v10 }
  0xa8   :  { %v57_v12 = vpop.permute.xlu1 %56  ;;  %v105_v13 = vpop.permute.xlu0 %104  ;;  %316 = vmatpush1.bf16.msra.mxu0 %v277_v11 }
  0xa9   :  { %v109_v14 = vsel %vm106_vm9, %v103_v58, %v105_v13 }
  0xaa   :  { %115 = vst.msk [vmem:[#allocation2 + $0x58] sm:$0xff] %vm46_vm0, %v109_v14 }
  0xac   :  { %v59_v15 = vpop.permute.xlu0 %58  ;;  %v55_v16 = vpop.permute.xlu1 %54 }
  0xad   :  { %v62_v17 = vsel %vm60_vm10, %v57_v12, %v59_v15  ;;  %68 = vst.msk [vmem:[#allocation2 + $0x28] sm:$0xff] %vm46_vm0, %v59_v15  ;;  %v61_v18 = vsel %vm60_vm10, %v55_v16, %v57_v12 }
  0xae   :  { %v275_v19 = vpack.c.bf16 %v62_v17, %v1784_v3  ;;  %v274_v20 = vpack.c.bf16 %v61_v18, %v1759_v1 }
  0xb0   :  { %317 = vmatprep.subr.bf16.mxu0 %v275_v19 }
  0xb1   :  { %v258_v22 = vld [vmem:[#allocation2 + $0x58] sm:$0xff]  ;;  %318 = vmatpush1.bf16.msra.mxu0 %v274_v20 }
  0xb2   :  { %v279_v24 = vpack.c.bf16 %v258_v22, %v255_v21 }
  0xb4   :  { %1626 = vmatpush3.bf16.msra.mxu1 %v279_v24  ;;  %v252_v26 = vld [vmem:[#allocation2 + $0x28] sm:$0xff]  ;;  %1578 = vmatmul.mubr.msk.bf16.vlgmr.msra.gmra.mxu0 %vm289_vm11, %v246_v23 }
  0xb5   :  { %1627 = vmatprep.subr.bf16.mxu1 %v1690_v4  ;;  %v276_v27 = vpack.c.bf16 %v252_v26, %v249_v25  ;;  %682 = vmatprep.mubr.bf16.mxu0 %v1697_v5 }
  0xb8   :  { %1628 = vmatpush3.bf16.msra.mxu1 %v276_v27 }
  0xb9   :  { %1633 = vmatprep.subr.bf16.mxu1 %v1690_v4  ;;  %v388_v30 = vpop.permute.xlu0 %387  ;;  %v397_v34 = vpop.permute.xlu1 %396 }
  0xbb   :  { %1630 = vmatmul.mubr.msk.bf16.vlgmr.msra.gmra.mxu1 %vm289_vm11, %v246_v23 }
  0xbc   :  { %1643 = vmatprep.mubr.msk.bf16.mxu1 %vm1699_vm1, %v1690_v4 }
 0x174   :  { %v337_v32 = vpop.f32.mrf.mxu0 }
 0x175   :  { %v390_v35 = vmul.f32 %v388_v30, %v337_v32 }
 0x176   :  { %v339_v36 = vpop.f32.mrf.mxu0 }
 0x177   :  { %v399_v38 = vadd.f32 %v397_v34, %v390_v35  ;;  %v391_v45 = vmul.f32 %v388_v30, %v339_v36 }
 0x178   :  { %v341_v39 = vpop.f32.mrf.mxu0 }
 0x179   :  { %v402_v40 = vmax.f32 %v399_v38, 0.0  ;;  %v400_v50 = vadd.f32 %v397_v34, %v391_v45 }
 0x17a   :  { %v342_v42 = vpop.f32.mrf.mxu0 }
 0x17b   :  { %v378_v43 = vpop.f32.mrf.mxu1  ;;  %v1904_v44 = vmul.f32 %v410_v37, %v402_v40  ;;  %v403_v56 = vmax.f32 %v400_v50, 0.0 }
 0x17c   :  { %v392_v46 = vmul.f32 %v388_v30, %v378_v43 }
 0x17d   :  { %v1631_v47 = vpop.f32.mrf.mxu1  ;;  %581 = vrot.lane.b32.xlu1 %v1904_v44, %s1689_s17  ;;  %541 = vrot.lane.b32.xlu0 %v1904_v44, %s1691_s24  ;;  %v1919_v58 = vmul.f32 %v414_v57, %v403_v56 }
 0x17e   :  { %v401_v49 = vadd.f32 %v397_v34, %v392_v46 }
 0x17f   :  { %v381_v52 = vpop.f32.mrf.mxu1 }
 0x180   :  { %v404_v53 = vmax.f32 %v401_v49, 0.0 }
 0x181   :  { %v1632_v54 = vpop.f32.mrf.mxu1  ;;  %501 = vrot.lane.b32.xlu0 %v1904_v44, %s1693_s0 }
 0x182   :  { %v424_v55 = vmul.f32 %v418_v48, %v404_v53 }
 0x184   :  { %427 = vst.msk [vmem:[#allocation3 + $0x10] sm:$0xff] %vm46_vm0, %v424_v55 }
 0x185   :  { %461 = vrot.lane.b32.xlu0 %v1904_v44, %s1695_s27 }
 0x189   :  { %583 = vrot.lane.b32.xlu0 %v1919_v58, %s1689_s17 }
 0x18b   :  { %v430_v59 = vld [vmem:[#allocation3 + $0x10] sm:$0xff] }
 0x18c   :  { %585 = vrot.lane.b32.xlu1 %v430_v59, %s1689_s17  ;;  %434 = vst.msk [vmem:[#allocation2 + $0x10] sm:$0xff] %vm433_vm12, %v430_v59 }
 0x18d   :  { %543 = vrot.lane.b32.xlu0 %v1919_v58, %s1691_s24 }
 0x190   :  { %545 = vrot.lane.b32.xlu1 %v430_v59, %s1691_s24 }
 0x191   :  { %563 = vrot.lane.b32.xlu0 %v1919_v58, %s1692_s25 }
 0x194   :  { %565 = vrot.lane.b32.xlu1 %v430_v59, %s1692_s25 }
 0x195   :  { %503 = vrot.lane.b32.xlu0 %v1919_v58, %s1693_s0 }
 0x198   :  { %561 = vrot.lane.b32.xlu1 %v1904_v44, %s1692_s25 }
 0x199   :  { %523 = vrot.lane.b32.xlu0 %v1919_v58, %s1694_s26 }
 0x19c   :  { %505 = vrot.lane.b32.xlu1 %v430_v59, %s1693_s0 }
 0x19d   :  { %463 = vrot.lane.b32.xlu0 %v1919_v58, %s1695_s27 }
 0x1a0   :  { %525 = vrot.lane.b32.xlu1 %v430_v59, %s1694_s26 }
 0x1a1   :  { %483 = vrot.lane.b32.xlu0 %v1919_v58, %s1696_s28 }
 0x1a4   :  { %521 = vrot.lane.b32.xlu1 %v1904_v44, %s1694_s26 }
 0x1a5   :  { %443 = vrot.lane.b32.xlu0 %v1919_v58, %s1698_s29 }
 0x1a8   :  { %465 = vrot.lane.b32.xlu1 %v430_v59, %s1695_s27 }
 0x1a9   :  { %441 = vrot.lane.b32.xlu0 %v1904_v44, %s1698_s29 }
 0x1ac   :  { %485 = vrot.lane.b32.xlu1 %v430_v59, %s1696_s28 }
 0x1ad   :  { %743 = vperm.xlu0 %1687, %v740_v60  }
 0x1b0   :  { %481 = vrot.lane.b32.xlu1 %v1904_v44, %s1696_s28 }
 0x1b1   :  { %757 = vrot.lane.b32.xlu0 %v1784_v3, %s1689_s17 }
 0x1b4   :  { %445 = vrot.lane.b32.xlu1 %v430_v59, %s1698_s29 }
 0x1b8   :  { %734 = vperm.xlu1 %1688, %v731_v61  }
 0x1bc   :  { %755 = vrot.lane.b32.xlu1 %v1759_v1, %s1689_s17 }
 0x1c0   :  { %759 = vrot.lane.b32.xlu1 %v1754_v0, %s1689_s17 }
 0x1ef   :  { %v542_v62 = vpop.permute.xlu0 %541  ;;  %v582_v6 = vpop.permute.xlu1 %581 }
 0x1f3   :  { %v502_v63 = vpop.permute.xlu0 %501 }
 0x1f7   :  { %v1966_v2 = vpop.permute.xlu0 %461 }
 0x1fb   :  { %v584_v7 = vpop.permute.xlu0 %583 }
 0x1fc   :  { %v587_v3 = vsel %vm236_vm2, %v582_v6, %v584_v7 }
 0x1fd   :  { %v635_v9 = vpack.c.bf16 %v587_v3, %v587_v3 }
 0x1fe   :  { %v586_v8 = vpop.permute.xlu1 %585 }
 0x1ff   :  { %594 = vst.msk [vmem:[#allocation2 + $0xd0] sm:$0xff] %vm433_vm12, %v586_v8  ;;  %v588_v10 = vsel %vm236_vm2, %v584_v7, %v586_v8  ;;  %v544_v11 = vpop.permute.xlu0 %543  ;;  %v642_v0 = vsel %vm293_vm3, %v635_v9, 0  ;;  %v595_v8 = vld [vmem:[%s2300_s4] sm:$0xf]  ;;  %v598_v9 = vld [vmem:[#allocation2 + $0x10] sm:$0xff] }
 0x200   :  { %v636_v12 = vpack.c.bf16 %v588_v10, %v588_v10  ;;  %v547_v23 = vsel %vm184_vm4, %v542_v62, %v544_v11 }
 0x202   :  { %v546_v1 = vpop.permute.xlu1 %545  ;;  %1580 = vmatprep.subr.msk.bf16.mxu0 %vm293_vm3, %v636_v12 }
 0x203   :  { %554 = vst.msk [vmem:[#allocation2 + $0xa0] sm:$0xff] %vm433_vm12, %v546_v1  ;;  %v564_v13 = vpop.permute.xlu0 %563  ;;  %657 = vmatpush1.bf16.msra.mxu0 %v642_v0  ;;  %v548_v17 = vsel %vm184_vm4, %v544_v11, %v546_v1 }
 0x206   :  { %v566_v14 = vpop.permute.xlu1 %565  ;;  %v622_v15 = vld [vmem:[#allocation2 + $0xd0] sm:$0xff] }
 0x207   :  { %574 = vst.msk [vmem:[#allocation2 + $0xb8] sm:$0xff] %vm433_vm12, %v566_v14  ;;  %v637_v16 = vpack.c.bf16 %v622_v15, %v622_v15  ;;  %v568_v18 = vsel %vm210_vm5, %v564_v13, %v566_v14  ;;  %v504_v19 = vpop.permute.xlu0 %503 }
 0x208   :  { %v633_v20 = vpack.c.bf16 %v568_v18, %v548_v17  ;;  %v507_v38 = vsel %vm132_vm6, %v502_v63, %v504_v19 }
 0x209   :  { %v648_v21 = vsel %vm293_vm3, %v637_v16, 0  ;;  %v772_v16 = vld [vmem:[%s2301_s8] sm:$0x7] }
 0x20a   :  { %1634 = vmatpush3.bf16.msra.mxu1 %v648_v21  ;;  %v562_v22 = vpop.permute.xlu1 %561  ;;  %658 = vmatprep.subr.bf16.mxu0 %v633_v20  ;;  %v616_v28 = vld [vmem:[#allocation2 + $0xa0] sm:$0xff] }
 0x20b   :  { %v567_v24 = vsel %vm210_vm5, %v562_v22, %v564_v13  ;;  %1635 = vmatprep.subr.bf16.mxu1 %v1690_v4  ;;  %v524_v25 = vpop.permute.xlu0 %523 }
 0x20c   :  { %v632_v26 = vpack.c.bf16 %v567_v24, %v547_v23  ;;  %v777_v23 = vrot.slane %v772_v16, %v1896_v31 }
 0x20e   :  { %v506_v27 = vpop.permute.xlu1 %505  ;;  %v619_v29 = vld [vmem:[#allocation2 + $0xb8] sm:$0xff]  ;;  %659 = vmatpush1.bf16.msra.mxu0 %v632_v26 }
 0x20f   :  { %514 = vst.msk [vmem:[#allocation2 + $0x70] sm:$0xff] %vm433_vm12, %v506_v27  ;;  %v634_v30 = vpack.c.bf16 %v619_v29, %v616_v28  ;;  %v464_v32 = vpop.permute.xlu0 %463  ;;  %v508_v34 = vsel %vm132_vm6, %v504_v19, %v506_v27 }
 0x210   :  { %v467_v55 = vsel %vm81_vm8, %v1966_v2, %v464_v32 }
 0x211   :  { %1636 = vmatpush3.bf16.msra.mxu1 %v634_v30  ;;  %v781_v30 = vrot.slane %v772_v16, %v1911_v51 }
 0x212   :  { %v526_v33 = vpop.permute.xlu1 %525  ;;  %1637 = vmatprep.subr.bf16.mxu1 %v1690_v4 }
 0x213   :  { %534 = vst.msk [vmem:[#allocation2 + $0x88] sm:$0xff] %vm433_vm12, %v526_v33  ;;  %v528_v35 = vsel %vm158_vm7, %v524_v25, %v526_v33  ;;  %v484_v40 = vpop.permute.xlu0 %483 }
 0x214   :  { %v630_v36 = vpack.c.bf16 %v528_v35, %v508_v34 }
 0x216   :  { %v522_v37 = vpop.permute.xlu1 %521  ;;  %660 = vmatprep.subr.bf16.mxu0 %v630_v36  ;;  %v610_v45 = vld [vmem:[#allocation2 + $0x70] sm:$0xff] }
 0x217   :  { %v527_v39 = vsel %vm158_vm7, %v522_v37, %v524_v25  ;;  %v444_v48 = vpop.permute.xlu0 %443 }
 0x218   :  { %v629_v42 = vpack.c.bf16 %v527_v39, %v507_v38  ;;  %v785_v39 = vrot.slane %v772_v16, %v1902_v41 }
 0x21a   :  { %v466_v43 = vpop.permute.xlu1 %465  ;;  %v613_v46 = vld [vmem:[#allocation2 + $0x88] sm:$0xff]  ;;  %661 = vmatpush1.bf16.msra.mxu0 %v629_v42 }
 0x21b   :  { %474 = vst.msk [vmem:[#allocation2 + $0x40] sm:$0xff] %vm433_vm12, %v466_v43  ;;  %v631_v47 = vpack.c.bf16 %v613_v46, %v610_v45  ;;  %v468_v50 = vsel %vm81_vm8, %v464_v32, %v466_v43  ;;  %v442_v57 = vpop.permute.xlu0 %441  ;;  %v985_v43 = vld [vmem:[%s2293_s9 + $0x18] sm:$0xff] }
 0x21c   :  { %v447_v61 = vsel %vm60_vm10, %v442_v57, %v444_v48 }
 0x21d   :  { %1638 = vmatpush3.bf16.msra.mxu1 %v631_v47  ;;  %v623_v2 = vpack.c.bf16 %v447_v61, %v1904_v44 }
 0x21e   :  { %v486_v49 = vpop.permute.xlu1 %485  ;;  %1639 = vmatprep.subr.bf16.mxu1 %v1690_v4 }
 0x21f   :  { %494 = vst.msk [vmem:[#allocation2 + $0x58] sm:$0xff] %vm433_vm12, %v486_v49  ;;  %v488_v52 = vsel %vm106_vm9, %v484_v40, %v486_v49 }
 0x220   :  { %v627_v53 = vpack.c.bf16 %v488_v52, %v468_v50 }
 0x222   :  { %v482_v54 = vpop.permute.xlu1 %481  ;;  %662 = vmatprep.subr.bf16.mxu0 %v627_v53  ;;  %v604_v62 = vld [vmem:[#allocation2 + $0x40] sm:$0xff] }
 0x223   :  { %v487_v56 = vsel %vm106_vm9, %v482_v54, %v484_v40  ;;  %v1587_v54 = vld [vmem:[%s2294_s2 + $0x8] sm:$0xff] }
 0x224   :  { %v626_v59 = vpack.c.bf16 %v487_v56, %v467_v55  ;;  %v1588_v55 = vld [vmem:[%s2295_s3 + $0x8] sm:$0xff] }
 0x226   :  { %v446_v60 = vpop.permute.xlu1 %445  ;;  %v607_v63 = vld [vmem:[#allocation2 + $0x58] sm:$0xff]  ;;  %663 = vmatpush1.bf16.msra.mxu0 %v626_v59 }
 0x227   :  { %v448_v6 = vsel %vm60_vm10, %v444_v48, %v446_v60  ;;  %454 = vst.msk [vmem:[#allocation2 + $0x28] sm:$0xff] %vm433_vm12, %v446_v60  ;;  %v628_v7 = vpack.c.bf16 %v607_v63, %v604_v62 }
 0x228   :  { %v624_v3 = vpack.c.bf16 %v448_v6, %v1919_v58  ;;  %v744_v58 = vpop.permute.xlu0 %743 }
 0x229   :  { %1640 = vmatpush3.bf16.msra.mxu1 %v628_v7 }
 0x22a   :  { %1641 = vmatprep.subr.bf16.mxu1 %v1690_v4  ;;  %664 = vmatprep.subr.bf16.mxu0 %v624_v3 }
 0x22b   :  { %665 = vmatpush1.bf16.msra.mxu0 %v623_v2 }
 0x22c   :  { %v758_v1 = vpop.permute.xlu0 %757 }
 0x22e   :  { %v601_v10 = vld [vmem:[#allocation2 + $0x28] sm:$0xff]  ;;  %1581 = vmatmul.mubr.msk.bf16.vlgmr.msra.gmra.mxu0 %vm289_vm11, %v595_v8 }
 0x22f   :  { %v625_v11 = vpack.c.bf16 %v601_v10, %v598_v9  ;;  %1095 = vmatprep.mubr.bf16.mxu0 %v1697_v5 }
 0x231   :  { %1642 = vmatpush3.bf16.msra.mxu1 %v625_v11 }
 0x232   :  { %1647 = vmatprep.subr.bf16.mxu1 %v1690_v4 }
 0x233   :  { %v735_v44 = vpop.permute.xlu1 %734 }
 0x234   :  { %1644 = vmatmul.mubr.msk.bf16.vlgmr.msra.gmra.mxu1 %vm289_vm11, %v595_v8 }
 0x235   :  { %1657 = vmatprep.mubr.msk.bf16.mxu1 %vm1699_vm1, %v1690_v4 }
 0x237   :  { %v756_v12 = vpop.permute.xlu1 %755 }
 0x238   :  { %v761_v15 = vsel %vm236_vm2, %v756_v12, %v758_v1 }
 0x23b   :  { %v760_v18 = vpop.permute.xlu1 %759 }
 0x23c   :  { %v762_v25 = vsel %vm236_vm2, %v758_v1, %v760_v18 }
 0x2ee   :  { %v684_v0 = vpop.f32.mrf.mxu0 }
 0x2ef   :  { %v737_v13 = vmul.f32 %v735_v44, %v684_v0 }
 0x2f0   :  { %v686_v14 = vpop.f32.mrf.mxu0 }
 0x2f1   :  { %v746_v17 = vadd.f32 %v744_v58, %v737_v13  ;;  %v738_v19 = vmul.f32 %v735_v44, %v686_v14 }
 0x2f2   :  { %v688_v20 = vpop.f32.mrf.mxu0 }
 0x2f3   :  { %v747_v21 = vadd.f32 %v744_v58, %v738_v19  ;;  %v766_v22 = vadd.f32 %v761_v15, %v746_v17 }
 0x2f4   :  { %v725_v24 = vpop.f32.mrf.mxu1  ;;  %v689_v26 = vpop.f32.mrf.mxu0 }
 0x2f5   :  { %v739_v27 = vmul.f32 %v735_v44, %v725_v24  ;;  %v767_v28 = vadd.f32 %v762_v25, %v747_v21  ;;  %v769_v29 = vmax.f32 %v766_v22, 0.0 }
 0x2f6   :  { %v1645_v32 = vpop.f32.mrf.mxu1 }
 0x2f7   :  { %v748_v33 = vadd.f32 %v744_v58, %v739_v27  ;;  %v770_v34 = vmax.f32 %v767_v28, 0.0  ;;  %v789_v35 = vmul.f32 %v777_v23, %v769_v29 }
 0x2f8   :  { %v728_v36 = vpop.f32.mrf.mxu1 }
 0x2f9   :  { %v768_v37 = vadd.f32 %v760_v18, %v748_v33  ;;  %795 = vrot.lane.b32.xlu0 %v789_v35, %s1700_s11  ;;  %v790_v38 = vmul.f32 %v781_v30, %v770_v34 }
 0x2fa   :  { %v1646_v40 = vpop.f32.mrf.mxu1 }
 0x2fb   :  { %v771_v42 = vmax.f32 %v768_v37, 0.0  ;;  %797 = vrot.lane.b32.xlu1 %v790_v38, %s1700_s11 }
 0x2fd   :  { %v791_v45 = vmul.f32 %v785_v39, %v771_v42 }
 0x2ff   :  { %799 = vrot.lane.b32.xlu0 %v791_v45, %s1700_s11  ;;  %946 = vrot.lane.b32.xlu1 %v985_v43, %s1691_s24 }
 0x303   :  { %996 = vrot.lane.b32.xlu0 %v985_v43, %s1689_s17  ;;  %896 = vrot.lane.b32.xlu1 %v985_v43, %s1693_s0 }
 0x307   :  { %971 = vrot.lane.b32.xlu0 %v985_v43, %s1692_s25  ;;  %871 = vrot.lane.b32.xlu1 %v985_v43, %s1696_s28 }
 0x30b   :  { %921 = vrot.lane.b32.xlu0 %v985_v43, %s1694_s26 }
 0x36b   :  { %v796_v46 = vpop.permute.xlu0 %795 }
 0x36c   :  { %808 = vst.msk [vmem:[%s2293_s9] sm:$0xff] %vm807_vm13, %v796_v46 }
 0x36d   :  { %v798_v47 = vpop.permute.xlu1 %797 }
 0x36e   :  { %v2065_v53 = vsel %vm801_vm14, %v796_v46, %v798_v47 }
 0x371   :  { %v800_v48 = vpop.permute.xlu0 %799  ;;  %v947_v57 = vpop.permute.xlu1 %946 }
 0x372   :  { %v803_v49 = vsel %vm801_vm14, %v798_v47, %v800_v48 }
 0x373   :  { %810 = vst.msk [vmem:[%s2293_s9 + $0x10] sm:$0xff] %vm46_vm0, %v803_v49  ;;  %v2043_v50 = vld [vmem:[%s2293_s9] sm:$0xff] }
 0x374   :  { %965 = vrot.lane.b32.xlu0 %v2043_v50, %s1692_s25  ;;  %990 = vrot.lane.b32.xlu1 %v2043_v50, %s1689_s17 }
 0x375   :  { %v997_v56 = vpop.permute.xlu0 %996  ;;  %v897_v60 = vpop.permute.xlu1 %896 }
 0x378   :  { %915 = vrot.lane.b32.xlu0 %v2043_v50, %s1694_s26  ;;  %940 = vrot.lane.b32.xlu1 %v2043_v50, %s1691_s24 }
 0x379   :  { %v972_v59 = vpop.permute.xlu0 %971  ;;  %v2109_v62 = vpop.permute.xlu1 %871 }
 0x37a   :  { %v2056_v52 = vld [vmem:[%s2293_s9 + $0x10] sm:$0xff] }
 0x37b   :  { %816 = vst.msk [vmem:[#allocation2 + $0x10] sm:$0xff] %vm46_vm0, %v2056_v52 }
 0x37c   :  { %865 = vrot.lane.b32.xlu0 %v2043_v50, %s1696_s28  ;;  %890 = vrot.lane.b32.xlu1 %v2043_v50, %s1693_s0 }
 0x37d   :  { %v922_v61 = vpop.permute.xlu0 %921 }
 0x380   :  { %843 = vrot.lane.b32.xlu1 %v2043_v50, %s1695_s27  ;;  %992 = vrot.lane.b32.xlu0 %v2065_v53, %s1689_s17 }
 0x384   :  { %994 = vrot.lane.b32.xlu1 %v2056_v52, %s1689_s17  ;;  %944 = vrot.lane.b32.xlu0 %v2056_v52, %s1691_s24 }
 0x388   :  { %969 = vrot.lane.b32.xlu0 %v2056_v52, %s1692_s25  ;;  %942 = vrot.lane.b32.xlu1 %v2065_v53, %s1691_s24 }
 0x38c   :  { %894 = vrot.lane.b32.xlu0 %v2056_v52, %s1693_s0  ;;  %967 = vrot.lane.b32.xlu1 %v2065_v53, %s1692_s25 }
 0x390   :  { %919 = vrot.lane.b32.xlu0 %v2056_v52, %s1694_s26  ;;  %892 = vrot.lane.b32.xlu1 %v2065_v53, %s1693_s0 }
 0x394   :  { %847 = vrot.lane.b32.xlu0 %v2056_v52, %s1695_s27  ;;  %917 = vrot.lane.b32.xlu1 %v2065_v53, %s1694_s26 }
 0x398   :  { %869 = vrot.lane.b32.xlu0 %v2056_v52, %s1696_s28  ;;  %845 = vrot.lane.b32.xlu1 %v2065_v53, %s1695_s27 }
 0x39c   :  { %867 = vrot.lane.b32.xlu1 %v2065_v53, %s1696_s28  ;;  %825 = vrot.lane.b32.xlu0 %v2065_v53, %s1698_s29 }
 0x3a0   :  { %827 = vrot.lane.b32.xlu1 %v2056_v52, %s1698_s29  ;;  %823 = vrot.lane.b32.xlu0 %v2043_v50, %s1698_s29 }
 0x3a4   :  { %1148 = vperm.xlu1 %1688, %v1587_v54   ;;  %1158 = vperm.xlu0 %1687, %v1588_v55  }
 0x3e6   :  { %v966_v63 = vpop.permute.xlu0 %965  ;;  %v991_v6 = vpop.permute.xlu1 %990 }
 0x3ea   :  { %v916_v7 = vpop.permute.xlu0 %915  ;;  %v941_v3 = vpop.permute.xlu1 %940 }
 0x3ee   :  { %v2111_v2 = vpop.permute.xlu0 %865  ;;  %v891_v8 = vpop.permute.xlu1 %890 }
 0x3f2   :  { %v993_v9 = vpop.permute.xlu0 %992  ;;  %v2113_v10 = vpop.permute.xlu1 %843 }
 0x3f3   :  { %v998_v11 = vsel %vm236_vm2, %v991_v6, %v993_v9 }
 0x3f4   :  { %v1048_v12 = vpack.c.bf16 %v998_v11, %v998_v11 }
 0x3f6   :  { %v945_v44 = vpop.permute.xlu0 %944  ;;  %v995_v58 = vpop.permute.xlu1 %994  ;;  %v1055_v17 = vsel %vm293_vm3, %v1048_v12, 0 }
 0x3f7   :  { %v950_v1 = vsel %vm184_vm4, %v945_v44, %v947_v57  ;;  %v999_v0 = vsel %vm236_vm2, %v993_v9, %v995_v58  ;;  %v1000_v13 = vsel %vm236_vm2, %v995_v58, %v997_v56 }
 0x3f8   :  { %956 = vst.msk [vmem:[#allocation2 + $0xa0] sm:$0xff] %vm46_vm0, %v950_v1  ;;  %1006 = vst.msk [vmem:[#allocation2 + $0xd0] sm:$0xff] %vm46_vm0, %v1000_v13  ;;  %v1049_v14 = vpack.c.bf16 %v999_v0, %v999_v0  ;;  %v1583_v0 = vld [vmem:[%s2296_s1 + $0x4] sm:$0xf]  ;;  %v1011_v13 = vld [vmem:[#allocation2 + $0x10] sm:$0xff] }
 0x3fa   :  { %v970_v15 = vpop.permute.xlu0 %969  ;;  %v943_v16 = vpop.permute.xlu1 %942  ;;  %1584 = vmatprep.subr.msk.bf16.mxu0 %vm293_vm3, %v1049_v14 }
 0x3fb   :  { %v975_v18 = vsel %vm210_vm5, %v970_v15, %v972_v59  ;;  %1070 = vmatpush1.bf16.msra.mxu0 %v1055_v17  ;;  %v948_v19 = vsel %vm184_vm4, %v941_v3, %v943_v16  ;;  %v949_v22 = vsel %vm184_vm4, %v943_v16, %v945_v44  ;;  %v1167_v17 = vld [vmem:[%s2297_s7] sm:$0x7] }
 0x3fc   :  { %981 = vst.msk [vmem:[#allocation2 + $0xb8] sm:$0xff] %vm46_vm0, %v975_v18 }
 0x3fe   :  { %v895_v20 = vpop.permute.xlu0 %894  ;;  %v968_v21 = vpop.permute.xlu1 %967 }
 0x3ff   :  { %v900_v23 = vsel %vm132_vm6, %v895_v20, %v897_v60  ;;  %v973_v24 = vsel %vm210_vm5, %v966_v63, %v968_v21  ;;  %v974_v25 = vsel %vm210_vm5, %v968_v21, %v970_v15  ;;  %v1035_v26 = vld [vmem:[#allocation2 + $0xd0] sm:$0xff]  ;;  %v1029_v35 = vld [vmem:[#allocation2 + $0xa0] sm:$0xff] }
 0x400   :  { %906 = vst.msk [vmem:[#allocation2 + $0x70] sm:$0xff] %vm46_vm0, %v900_v23  ;;  %v1050_v27 = vpack.c.bf16 %v1035_v26, %v1035_v26  ;;  %v1046_v28 = vpack.c.bf16 %v974_v25, %v949_v22  ;;  %v1045_v29 = vpack.c.bf16 %v973_v24, %v948_v19 }
 0x402   :  { %v920_v30 = vpop.permute.xlu0 %919  ;;  %v893_v32 = vpop.permute.xlu1 %892  ;;  %v1061_v33 = vsel %vm293_vm3, %v1050_v27, 0  ;;  %1071 = vmatprep.subr.bf16.mxu0 %v1046_v28  ;;  %v1176_v27 = vrot.slane %v1167_v17, %v1911_v51 }
 0x403   :  { %v925_v34 = vsel %vm158_vm7, %v920_v30, %v922_v61  ;;  %1648 = vmatpush3.bf16.msra.mxu1 %v1061_v33  ;;  %v1032_v36 = vld [vmem:[#allocation2 + $0xb8] sm:$0xff]  ;;  %1072 = vmatpush1.bf16.msra.mxu0 %v1045_v29  ;;  %v898_v40 = vsel %vm132_vm6, %v891_v8, %v893_v32  ;;  %v899_v42 = vsel %vm132_vm6, %v893_v32, %v895_v20 }
 0x404   :  { %931 = vst.msk [vmem:[#allocation2 + $0x88] sm:$0xff] %vm46_vm0, %v925_v34  ;;  %1649 = vmatprep.subr.bf16.mxu1 %v1690_v4  ;;  %v1047_v37 = vpack.c.bf16 %v1032_v36, %v1029_v35  ;;  %v1180_v36 = vrot.slane %v1167_v17, %v1902_v41 }
 0x406   :  { %v848_v38 = vpop.permute.xlu0 %847  ;;  %v918_v39 = vpop.permute.xlu1 %917 }
 0x407   :  { %856 = vst.msk [vmem:[#allocation2 + $0x40] sm:$0xff] %vm46_vm0, %v848_v38  ;;  %v923_v43 = vsel %vm158_vm7, %v916_v7, %v918_v39  ;;  %v924_v45 = vsel %vm158_vm7, %v918_v39, %v920_v30  ;;  %1650 = vmatpush3.bf16.msra.mxu1 %v1047_v37  ;;  %v1023_v55 = vld [vmem:[#allocation2 + $0x70] sm:$0xff] }
 0x408   :  { %1651 = vmatprep.subr.bf16.mxu1 %v1690_v4  ;;  %v1043_v46 = vpack.c.bf16 %v924_v45, %v899_v42  ;;  %v1042_v47 = vpack.c.bf16 %v923_v43, %v898_v40  ;;  %v1594_v45 = vld [vmem:[%s2298_s6 + $0x8] sm:$0xff] }
 0x40a   :  { %v870_v48 = vpop.permute.xlu0 %869  ;;  %v846_v49 = vpop.permute.xlu1 %845  ;;  %1073 = vmatprep.subr.bf16.mxu0 %v1043_v46  ;;  %v1593_v46 = vld [vmem:[%s2299_s5 + $0x8] sm:$0xff] }
 0x40b   :  { %v875_v54 = vsel %vm106_vm9, %v870_v48, %v2109_v62  ;;  %v1026_v56 = vld [vmem:[#allocation2 + $0x88] sm:$0xff]  ;;  %1074 = vmatpush1.bf16.msra.mxu0 %v1042_v47  ;;  %v849_v61 = vsel %vm81_vm8, %v2113_v10, %v846_v49  ;;  %v850_v63 = vsel %vm81_vm8, %v846_v49, %v848_v38 }
 0x40c   :  { %881 = vst.msk [vmem:[#allocation2 + $0x58] sm:$0xff] %vm46_vm0, %v875_v54  ;;  %v1044_v57 = vpack.c.bf16 %v1026_v56, %v1023_v55 }
 0x40e   :  { %v826_v59 = vpop.permute.xlu0 %825  ;;  %1652 = vmatpush3.bf16.msra.mxu1 %v1044_v57  ;;  %v868_v60 = vpop.permute.xlu1 %867  ;;  %v1017_v10 = vld [vmem:[#allocation2 + $0x40] sm:$0xff] }
 0x40f   :  { %v873_v6 = vsel %vm106_vm9, %v2111_v2, %v868_v60  ;;  %v874_v7 = vsel %vm106_vm9, %v868_v60, %v870_v48  ;;  %1653 = vmatprep.subr.bf16.mxu1 %v1690_v4 }
 0x410   :  { %v1040_v62 = vpack.c.bf16 %v874_v7, %v850_v63  ;;  %v1039_v3 = vpack.c.bf16 %v873_v6, %v849_v61 }
 0x412   :  { %v824_v8 = vpop.permute.xlu0 %823  ;;  %v828_v9 = vpop.permute.xlu1 %827  ;;  %1075 = vmatprep.subr.bf16.mxu0 %v1040_v62 }
 0x413   :  { %v829_v11 = vsel %vm60_vm10, %v824_v8, %v826_v59  ;;  %v830_v44 = vsel %vm60_vm10, %v826_v59, %v828_v9  ;;  %836 = vst.msk [vmem:[#allocation2 + $0x28] sm:$0xff] %vm46_vm0, %v828_v9  ;;  %v1020_v58 = vld [vmem:[#allocation2 + $0x58] sm:$0xff]  ;;  %1076 = vmatpush1.bf16.msra.mxu0 %v1039_v3 }
 0x414   :  { %v1041_v12 = vpack.c.bf16 %v1020_v58, %v1017_v10  ;;  %v1037_v2 = vpack.c.bf16 %v830_v44, %v2065_v53  ;;  %v1036_v1 = vpack.c.bf16 %v829_v11, %v2043_v50 }
 0x416   :  { %1654 = vmatpush3.bf16.msra.mxu1 %v1041_v12  ;;  %1077 = vmatprep.subr.bf16.mxu0 %v1037_v2 }
 0x417   :  { %1655 = vmatprep.subr.bf16.mxu1 %v1690_v4  ;;  %1078 = vmatpush1.bf16.msra.mxu0 %v1036_v1 }
 0x41a   :  { %v1014_v14 = vld [vmem:[#allocation2 + $0x28] sm:$0xff]  ;;  %1585 = vmatmul.mubr.msk.bf16.vlgmr.msra.gmra.mxu0 %vm289_vm11, %v1583_v0 }
 0x41b   :  { %v1038_v15 = vpack.c.bf16 %v1014_v14, %v1011_v13  ;;  %1444 = vmatprep.mubr.bf16.mxu0 %v1697_v5  ;;  %v1172_v5 = vrot.slane %v1167_v17, %v1896_v31 }
 0x41d   :  { %1656 = vmatpush3.bf16.msra.mxu1 %v1038_v15 }
 0x41e   :  { %1661 = vmatprep.subr.bf16.mxu1 %v1690_v4 }
 0x41f   :  { %v1149_v16 = vpop.permute.xlu1 %1148  ;;  %v1159_v20 = vpop.permute.xlu0 %1158 }
 0x420   :  { %1658 = vmatmul.mubr.msk.bf16.vlgmr.msra.gmra.mxu1 %vm289_vm11, %v1583_v0 }
 0x421   :  { %1671 = vmatprep.mubr.msk.bf16.mxu1 %vm1699_vm1, %v1690_v4 }
 0x4da   :  { %v1097_v18 = vpop.f32.mrf.mxu0 }
 0x4db   :  { %v1151_v19 = vmul.f32 %v1149_v16, %v1097_v18 }
 0x4dc   :  { %v1099_v21 = vpop.f32.mrf.mxu0 }
 0x4dd   :  { %v1161_v22 = vadd.f32 %v1159_v20, %v1151_v19  ;;  %v1152_v23 = vmul.f32 %v1149_v16, %v1099_v21 }
 0x4de   :  { %v1101_v24 = vpop.f32.mrf.mxu0 }
 0x4df   :  { %v1164_v25 = vmax.f32 %v1161_v22, 0.0  ;;  %v1162_v26 = vadd.f32 %v1159_v20, %v1152_v23 }
 0x4e0   :  { %v1138_v28 = vpop.f32.mrf.mxu1  ;;  %v1102_v29 = vpop.f32.mrf.mxu0 }
 0x4e1   :  { %v1153_v30 = vmul.f32 %v1149_v16, %v1138_v28  ;;  %v2171_v32 = vmul.f32 %v1172_v5, %v1164_v25  ;;  %v1165_v33 = vmax.f32 %v1162_v26, 0.0 }
 0x4e2   :  { %v1659_v34 = vpop.f32.mrf.mxu1 }
 0x4e3   :  { %v1163_v35 = vadd.f32 %v1159_v20, %v1153_v30  ;;  %v2174_v37 = vmul.f32 %v1176_v27, %v1165_v33  ;;  %1342 = vrot.lane.b32.xlu1 %v2171_v32, %s1689_s17  ;;  %1302 = vrot.lane.b32.xlu0 %v2171_v32, %s1691_s24 }
 0x4e4   :  { %v1141_v38 = vpop.f32.mrf.mxu1 }
 0x4e5   :  { %v1166_v39 = vmax.f32 %v1163_v35, 0.0 }
 0x4e6   :  { %v1660_v40 = vpop.f32.mrf.mxu1 }
 0x4e7   :  { %v1186_v42 = vmul.f32 %v1180_v36, %v1166_v39  ;;  %1262 = vrot.lane.b32.xlu0 %v2171_v32, %s1693_s0 }
 0x4e9   :  { %1189 = vst.msk [vmem:[#allocation3 + $0x10] sm:$0xff] %vm46_vm0, %v1186_v42 }
 0x4eb   :  { %1222 = vrot.lane.b32.xlu0 %v2171_v32, %s1695_s27 }
 0x4ef   :  { %1344 = vrot.lane.b32.xlu0 %v2174_v37, %s1689_s17 }
 0x4f0   :  { %v1338_v43 = vld [vmem:[#allocation3 + $0x10] sm:$0xff] }
 0x4f1   :  { %1346 = vrot.lane.b32.xlu1 %v1338_v43, %s1689_s17  ;;  %1195 = vst.msk [vmem:[#allocation2 + $0x10] sm:$0xff] %vm433_vm12, %v1338_v43 }
 0x4f3   :  { %1304 = vrot.lane.b32.xlu0 %v2174_v37, %s1691_s24 }
 0x4f5   :  { %1306 = vrot.lane.b32.xlu1 %v1338_v43, %s1691_s24 }
 0x4f7   :  { %1324 = vrot.lane.b32.xlu0 %v2174_v37, %s1692_s25 }
 0x4f9   :  { %1326 = vrot.lane.b32.xlu1 %v1338_v43, %s1692_s25 }
 0x4fb   :  { %1264 = vrot.lane.b32.xlu0 %v2174_v37, %s1693_s0 }
 0x4fd   :  { %1322 = vrot.lane.b32.xlu1 %v2171_v32, %s1692_s25 }
 0x4ff   :  { %1284 = vrot.lane.b32.xlu0 %v2174_v37, %s1694_s26 }
 0x501   :  { %1266 = vrot.lane.b32.xlu1 %v1338_v43, %s1693_s0 }
 0x503   :  { %1224 = vrot.lane.b32.xlu0 %v2174_v37, %s1695_s27 }
 0x505   :  { %1286 = vrot.lane.b32.xlu1 %v1338_v43, %s1694_s26 }
 0x507   :  { %1244 = vrot.lane.b32.xlu0 %v2174_v37, %s1696_s28 }
 0x509   :  { %1282 = vrot.lane.b32.xlu1 %v2171_v32, %s1694_s26 }
 0x50b   :  { %1204 = vrot.lane.b32.xlu0 %v2174_v37, %s1698_s29 }
 0x50d   :  { %1226 = vrot.lane.b32.xlu1 %v1338_v43, %s1695_s27 }
 0x50f   :  { %1202 = vrot.lane.b32.xlu0 %v2171_v32, %s1698_s29 }
 0x511   :  { %1246 = vrot.lane.b32.xlu1 %v1338_v43, %s1696_s28 }
 0x513   :  { %1507 = vperm.xlu0 %1687, %v1594_v45  }
 0x515   :  { %1242 = vrot.lane.b32.xlu1 %v2171_v32, %s1696_s28 }
 0x517   :  { %1521 = vrot.lane.b32.xlu0 %v2065_v53, %s1689_s17 }
 0x519   :  { %1206 = vrot.lane.b32.xlu1 %v1338_v43, %s1698_s29 }
 0x51d   :  { %1497 = vperm.xlu1 %1688, %v1593_v46  }
 0x521   :  { %1519 = vrot.lane.b32.xlu1 %v2043_v50, %s1689_s17 }
 0x525   :  { %1523 = vrot.lane.b32.xlu1 %v2056_v52, %s1689_s17 }
 0x555   :  { %v1303_v47 = vpop.permute.xlu0 %1302  ;;  %v1343_v54 = vpop.permute.xlu1 %1342 }
 0x559   :  { %v1263_v48 = vpop.permute.xlu0 %1262 }
 0x55d   :  { %v1223_v49 = vpop.permute.xlu0 %1222 }
 0x561   :  { %v1345_v55 = vpop.permute.xlu0 %1344 }
 0x562   :  { %v1348_v53 = vsel %vm236_vm2, %v1343_v54, %v1345_v55 }
 0x563   :  { %v1347_v56 = vpop.permute.xlu1 %1346  ;;  %v1397_v57 = vpack.c.bf16 %v1348_v53, %v1348_v53  ;;  %v1589_v53 = vld [vmem:[%s2300_s4 + $0x4] sm:$0xf] }
 0x564   :  { %1355 = vst.msk [vmem:[#allocation2 + $0xd0] sm:$0xff] %vm433_vm12, %v1347_v56  ;;  %v1349_v59 = vsel %vm236_vm2, %v1345_v55, %v1347_v56  ;;  %v1360_v56 = vld [vmem:[#allocation2 + $0x10] sm:$0xff] }
 0x565   :  { %v1305_v60 = vpop.permute.xlu0 %1304  ;;  %v1398_v61 = vpack.c.bf16 %v1349_v59, %v1349_v59  ;;  %v1404_v52 = vsel %vm293_vm3, %v1397_v57, 0 }
 0x566   :  { %v1308_v50 = vsel %vm184_vm4, %v1303_v47, %v1305_v60 }
 0x567   :  { %v1307_v63 = vpop.permute.xlu1 %1306  ;;  %1590 = vmatprep.subr.msk.bf16.mxu0 %vm293_vm3, %v1398_v61 }
 0x568   :  { %1315 = vst.msk [vmem:[#allocation2 + $0xa0] sm:$0xff] %vm433_vm12, %v1307_v63  ;;  %v1309_v6 = vsel %vm184_vm4, %v1305_v60, %v1307_v63  ;;  %1419 = vmatpush1.bf16.msra.mxu0 %v1404_v52 }
 0x569   :  { %v1325_v7 = vpop.permute.xlu0 %1324 }
 0x56b   :  { %v1327_v62 = vpop.permute.xlu1 %1326  ;;  %v1384_v3 = vld [vmem:[#allocation2 + $0xd0] sm:$0xff] }
 0x56c   :  { %1335 = vst.msk [vmem:[#allocation2 + $0xb8] sm:$0xff] %vm433_vm12, %v1327_v62  ;;  %v1399_v8 = vpack.c.bf16 %v1384_v3, %v1384_v3  ;;  %v1329_v9 = vsel %vm210_vm5, %v1325_v7, %v1327_v62 }
 0x56d   :  { %v1265_v11 = vpop.permute.xlu0 %1264  ;;  %v1395_v44 = vpack.c.bf16 %v1329_v9, %v1309_v6 }
 0x56e   :  { %v1410_v10 = vsel %vm293_vm3, %v1399_v8, 0  ;;  %v1268_v58 = vsel %vm132_vm6, %v1263_v48, %v1265_v11 }
 0x56f   :  { %1662 = vmatpush3.bf16.msra.mxu1 %v1410_v10  ;;  %v1323_v12 = vpop.permute.xlu1 %1322  ;;  %1420 = vmatprep.subr.bf16.mxu0 %v1395_v44  ;;  %v1378_v14 = vld [vmem:[#allocation2 + $0xa0] sm:$0xff] }
 0x570   :  { %v1328_v2 = vsel %vm210_vm5, %v1323_v12, %v1325_v7  ;;  %1663 = vmatprep.subr.bf16.mxu1 %v1690_v4 }
 0x571   :  { %v1285_v1 = vpop.permute.xlu0 %1284  ;;  %v1394_v0 = vpack.c.bf16 %v1328_v2, %v1308_v50 }
 0x573   :  { %v1267_v13 = vpop.permute.xlu1 %1266  ;;  %v1381_v15 = vld [vmem:[#allocation2 + $0xb8] sm:$0xff]  ;;  %1421 = vmatpush1.bf16.msra.mxu0 %v1394_v0 }
 0x574   :  { %1275 = vst.msk [vmem:[#allocation2 + $0x70] sm:$0xff] %vm433_vm12, %v1267_v13  ;;  %v1396_v16 = vpack.c.bf16 %v1381_v15, %v1378_v14  ;;  %v1269_v17 = vsel %vm132_vm6, %v1265_v11, %v1267_v13 }
 0x575   :  { %v1225_v18 = vpop.permute.xlu0 %1224 }
 0x576   :  { %1664 = vmatpush3.bf16.msra.mxu1 %v1396_v16  ;;  %v1228_v19 = vsel %vm81_vm8, %v1223_v49, %v1225_v18 }
 0x577   :  { %v1287_v20 = vpop.permute.xlu1 %1286  ;;  %1665 = vmatprep.subr.bf16.mxu1 %v1690_v4 }
 0x578   :  { %1295 = vst.msk [vmem:[#allocation2 + $0x88] sm:$0xff] %vm433_vm12, %v1287_v20  ;;  %v1289_v21 = vsel %vm158_vm7, %v1285_v1, %v1287_v20 }
 0x579   :  { %v1245_v22 = vpop.permute.xlu0 %1244  ;;  %v1392_v5 = vpack.c.bf16 %v1289_v21, %v1269_v17 }
 0x57b   :  { %v1283_v23 = vpop.permute.xlu1 %1282  ;;  %1422 = vmatprep.subr.bf16.mxu0 %v1392_v5  ;;  %v1372_v28 = vld [vmem:[#allocation2 + $0x70] sm:$0xff] }
 0x57c   :  { %v1288_v24 = vsel %vm158_vm7, %v1283_v23, %v1285_v1 }
 0x57d   :  { %v1205_v25 = vpop.permute.xlu0 %1204  ;;  %v1391_v26 = vpack.c.bf16 %v1288_v24, %v1268_v58 }
 0x57f   :  { %v1227_v27 = vpop.permute.xlu1 %1226  ;;  %v1375_v29 = vld [vmem:[#allocation2 + $0x88] sm:$0xff]  ;;  %1423 = vmatpush1.bf16.msra.mxu0 %v1391_v26 }
 0x580   :  { %1235 = vst.msk [vmem:[#allocation2 + $0x40] sm:$0xff] %vm433_vm12, %v1227_v27  ;;  %v1229_v30 = vsel %vm81_vm8, %v1225_v18, %v1227_v27  ;;  %v1393_v33 = vpack.c.bf16 %v1375_v29, %v1372_v28 }
 0x581   :  { %v1203_v34 = vpop.permute.xlu0 %1202 }
 0x582   :  { %1666 = vmatpush3.bf16.msra.mxu1 %v1393_v33  ;;  %v1208_v35 = vsel %vm60_vm10, %v1203_v34, %v1205_v25 }
 0x583   :  { %v1247_v36 = vpop.permute.xlu1 %1246  ;;  %1667 = vmatprep.subr.bf16.mxu1 %v1690_v4  ;;  %v1385_v55 = vpack.c.bf16 %v1208_v35, %v2171_v32 }
 0x584   :  { %1255 = vst.msk [vmem:[#allocation2 + $0x58] sm:$0xff] %vm433_vm12, %v1247_v36  ;;  %v1249_v38 = vsel %vm106_vm9, %v1245_v22, %v1247_v36 }
 0x585   :  { %v1389_v39 = vpack.c.bf16 %v1249_v38, %v1229_v30 }
 0x587   :  { %v1243_v40 = vpop.permute.xlu1 %1242  ;;  %1424 = vmatprep.subr.bf16.mxu0 %v1389_v39  ;;  %v1366_v46 = vld [vmem:[#allocation2 + $0x40] sm:$0xff] }
 0x588   :  { %v1248_v42 = vsel %vm106_vm9, %v1243_v40, %v1245_v22 }
 0x589   :  { %v1388_v43 = vpack.c.bf16 %v1248_v42, %v1228_v19 }
 0x58b   :  { %v1207_v45 = vpop.permute.xlu1 %1206  ;;  %v1369_v47 = vld [vmem:[#allocation2 + $0x58] sm:$0xff]  ;;  %1425 = vmatpush1.bf16.msra.mxu0 %v1388_v43 }
 0x58c   :  { %v1209_v48 = vsel %vm60_vm10, %v1205_v25, %v1207_v45  ;;  %1215 = vst.msk [vmem:[#allocation2 + $0x28] sm:$0xff] %vm433_vm12, %v1207_v45  ;;  %v1390_v49 = vpack.c.bf16 %v1369_v47, %v1366_v46 }
 0x58d   :  { %v1386_v54 = vpack.c.bf16 %v1209_v48, %v2174_v37 }
 0x58e   :  { %1668 = vmatpush3.bf16.msra.mxu1 %v1390_v49  ;;  %v1508_v60 = vpop.permute.xlu0 %1507 }
 0x58f   :  { %1669 = vmatprep.subr.bf16.mxu1 %v1690_v4  ;;  %1426 = vmatprep.subr.bf16.mxu0 %v1386_v54  ;;  %v1536_v4 = vld [vmem:[%s2301_s8] sm:$0x7] }
 0x590   :  { %1427 = vmatpush1.bf16.msra.mxu0 %v1385_v55  ;;  %v1541_v11 = vrot.slane %v1536_v4, %v1896_v31  ;;  %v1545_v13 = vrot.slane %v1536_v4, %v1911_v51  ;;  %v1549_v20 = vrot.slane %v1536_v4, %v1902_v41 }
 0x592   :  { %v1522_v52 = vpop.permute.xlu0 %1521 }
 0x593   :  { %v1363_v57 = vld [vmem:[#allocation2 + $0x28] sm:$0xff]  ;;  %1591 = vmatmul.mubr.msk.bf16.vlgmr.msra.gmra.mxu0 %vm289_vm11, %v1589_v53 }
 0x594   :  { %v1387_v59 = vpack.c.bf16 %v1363_v57, %v1360_v56 }
 0x596   :  { %1670 = vmatpush3.bf16.msra.mxu1 %v1387_v59 }
 0x598   :  { %v1498_v37 = vpop.permute.xlu1 %1497 }
 0x599   :  { %1672 = vmatmul.mubr.msk.bf16.vlgmr.msra.gmra.mxu1 %vm289_vm11, %v1589_v53 }
 0x59c   :  { %v1520_v61 = vpop.permute.xlu1 %1519 }
 0x59d   :  { %v1525_v3 = vsel %vm236_vm2, %v1520_v61, %v1522_v52 }
 0x5a0   :  { %v1524_v6 = vpop.permute.xlu1 %1523 }
 0x5a1   :  { %v1526_v10 = vsel %vm236_vm2, %v1522_v52, %v1524_v6 }
 0x653   :  { %v1446_v32 = vpop.f32.mrf.mxu0 }
 0x654   :  { %v1500_v50 = vmul.f32 %v1498_v37, %v1446_v32 }
 0x655   :  { %v1448_v63 = vpop.f32.mrf.mxu0 }
 0x656   :  { %v1510_v7 = vadd.f32 %v1508_v60, %v1500_v50  ;;  %v1501_v62 = vmul.f32 %v1498_v37, %v1448_v63 }
 0x657   :  { %v1450_v8 = vpop.f32.mrf.mxu0 }
 0x658   :  { %v1530_v9 = vadd.f32 %v1525_v3, %v1510_v7  ;;  %v1511_v44 = vadd.f32 %v1508_v60, %v1501_v62 }
 0x659   :  { %v1487_v58 = vpop.f32.mrf.mxu1  ;;  %v1451_v12 = vpop.f32.mrf.mxu0 }
 0x65a   :  { %v1502_v2 = vmul.f32 %v1498_v37, %v1487_v58  ;;  %v1533_v1 = vmax.f32 %v1530_v9, 0.0  ;;  %v1531_v0 = vadd.f32 %v1526_v10, %v1511_v44 }
 0x65b   :  { %v1673_v14 = vpop.f32.mrf.mxu1 }
 0x65c   :  { %v1512_v15 = vadd.f32 %v1508_v60, %v1502_v2  ;;  %v1553_v16 = vmul.f32 %v1541_v11, %v1533_v1  ;;  %v1534_v17 = vmax.f32 %v1531_v0, 0.0 }
 0x65d   :  { %v1490_v18 = vpop.f32.mrf.mxu1 }
 0x65e   :  { %v1532_v19 = vadd.f32 %v1524_v6, %v1512_v15  ;;  %v1554_v21 = vmul.f32 %v1545_v13, %v1534_v17  ;;  %1559 = vrot.lane.b32.xlu0 %v1553_v16, %s1700_s11 }
 0x65f   :  { %v1674_v31 = vpop.f32.mrf.mxu1 }
 0x660   :  { %v1535_v22 = vmax.f32 %v1532_v19, 0.0  ;;  %1561 = vrot.lane.b32.xlu1 %v1554_v21, %s1700_s11 }
 0x662   :  { %v1555_v5 = vmul.f32 %v1549_v20, %v1535_v22 }
 0x664   :  { %1563 = vrot.lane.b32.xlu0 %v1555_v5, %s1700_s11 }
 0x6d0   :  { %v1560_v23 = vpop.permute.xlu0 %1559 }
 0x6d1   :  { %1570 = vst.msk [vmem:[%s2293_s9] sm:$0xff] %vm807_vm13, %v1560_v23 }
 0x6d2   :  { %v1562_v51 = vpop.permute.xlu1 %1561 }
 0x6d3   :  { %v1565_v24 = vsel %vm801_vm14, %v1560_v23, %v1562_v51 }
 0x6d4   :  { %1571 = vst [vmem:[%s2293_s9 + $0x8] sm:$0xff] %v1565_v24 }
 0x6d6   :  { %v1564_v41 = vpop.permute.xlu0 %1563 }
 0x6d7   :  { %v1566_v25 = vsel %vm801_vm14, %v1562_v51, %v1564_v41 }
 0x6d8   :  { %1572 = vst.msk [vmem:[%s2293_s9 + $0x10] sm:$0xff] %vm46_vm0, %v1566_v25 }

// kernel: _lambda_.11
= control target key start
LH: loop header
LB: loop body
LE: loop exit
PB: predicated region body
PF: predicated region fallthrough
CT: control target
= control target key end

     0   :  { %vm19_vm0 = vcmask 523264   ;;  %s59_s0 = inlined_call_operand.vmem [shape: f32[2,8,64], index: 0, kind: input, shape index: {}]   ;;  %s60_s1 = inlined_call_operand.vmem [shape: f32[2,8,64], index: 1, kind: input, shape index: {}]   ;;  %s61_s2 = inlined_call_operand.vmem [shape: f32[2,8,64], index: 2, kind: output, shape index: {}]  }
   0x1   :  { %v11_v0 = vld [vmem:[%s59_s0] sm:$0xff]  ;;  %v12_v2 = vld [vmem:[%s59_s0 + $0x8] sm:$0xff] }
   0x2   :  { %v13_v1 = vld [vmem:[%s60_s1] sm:$0xff]  ;;  %v14_v4 = vld [vmem:[%s60_s1 + $0x8] sm:$0xff] }
   0x3   :  { %v15_v3 = vadd.f32 %v13_v1, %v11_v0  ;;  %v16_v5 = vadd.f32 %v14_v4, %v12_v2 }
   0x5   :  { %v17_v6 = vmax.f32 %v15_v3, 0.0  ;;  %v18_v7 = vmax.f32 %v16_v5, 0.0 }
   0x7   :  { %20 = vst.msk [vmem:[%s61_s2] sm:$0xff] %vm19_vm0, %v17_v6  ;;  %21 = vst.msk [vmem:[%s61_s2 + $0x8] sm:$0xff] %vm19_vm0, %v18_v7 }

// kernel: _lambda_.10
= control target key start
LH: loop header
LB: loop body
LE: loop exit
PB: predicated region body
PF: predicated region fallthrough
CT: control target
= control target key end

     0   :  { %s288_s25 = smov 118   ;;  %s289_s26 = smov 119   ;;  %v291_v18 = vmov 0   ;;  %vm123_vm0 = vcmask 965632   ;;  %vm86_vm1 = vcmask 973824   ;;  %vm163_vm2 = vcmask 1043456   ;;  %s407_s0 = inlined_call_operand.vmem [shape: f32[4,8,384], index: 0, kind: input, shape index: {}]   ;;  %s408_s2 = inlined_call_operand.vmem [shape: f32[8,1], index: 2, kind: input, shape index: {}]   ;;  %s409_s3 = inlined_call_operand.vmem [shape: f32[8,1], index: 3, kind: input, shape index: {}]   ;;  %s410_s1 = inlined_call_operand.vmem [shape: bf16[8,72], index: 1, kind: input, shape index: {}]   ;;  %s411_s4 = inlined_call_operand.vmem [shape: f32[8,256], index: 4, kind: output, shape index: {}]  }
   0x1   :  { %v320_v0 = vld [vmem:[%s407_s0] sm:$0xff]  ;;  %v325_v1 = vld [vmem:[%s407_s0 + $0x8] sm:$0xff]  ;;  %v76_v2 = vld [vmem:[%s407_s0 + $0x10] sm:$0xff]  ;;  %s290_s9 = smov 127   ;;  %202 = vmatprep.mubr.bf16.mxu0 %v291_v18  ;;  %286 = vset.pattern.permute.xlu0 %v291_v18  ;;  %vm39_vm3 = vcmask 1039360   ;;  %vm159_vm4 = vcmask 588800  }
   0x2   :  { %v251_v3 = vpack.i.bf16 %v325_v1, %v320_v0  ;;  %v256_v4 = vpack.i.bf16 %v76_v2, %v325_v1  ;;  %v336_v5 = vld [vmem:[%s407_s0 + $0x20] sm:$0xff]  ;;  %v244_v6 = vld [vmem:[%s407_s0 + $0x28] sm:$0xff]  ;;  %v345_v8 = vld [vmem:[%s407_s0 + $0x18] sm:$0xff]  ;;  %v281_v15 = vpack.i.bf16 %v320_v0, %v76_v2  ;;  %287 = vset.pattern.permute.xlu1 %v291_v18 }
   0x3   :  { %v261_v7 = vpack.i.bf16 %v244_v6, %v336_v5  ;;  %v350_v9 = vld [vmem:[%s407_s0 + $0x38] sm:$0xff]  ;;  %v241_v10 = vld [vmem:[%s407_s0 + $0x40] sm:$0xff]  ;;  %v266_v11 = vpack.i.bf16 %v345_v8, %v320_v0  ;;  %v361_v13 = vld [vmem:[%s407_s0 + $0x30] sm:$0xff]  ;;  %v150_v16 = vpack.c.bf16 %v336_v5, %v325_v1  ;;  %v149_v17 = vpack.c.bf16 %v345_v8, %v320_v0 }
   0x4   :  { %252 = vrot.lane.b32.xlu0 %v251_v3, %s288_s25  ;;  %257 = vrot.lane.b32.xlu1 %v256_v4, %s289_s26  ;;  %v271_v12 = vpack.i.bf16 %v241_v10, %v350_v9  ;;  %v276_v14 = vpack.i.bf16 %v325_v1, %v361_v13  ;;  %v211_v19 = vld [vmem:[%s408_s2] sm:$0xff]  ;;  %v238_v45 = vld [vmem:[%s407_s0 + $0x50] sm:$0xff] }
   0x5   :  { %v219_v20 = vld [vmem:[%s409_s3] sm:$0xff]  ;;  %v237_v57 = vld [vmem:[%s407_s0 + $0x48] sm:$0xff] }
   0x8   :  { %121 = vrot.lane.b32.xlu0 %v76_v2, %s288_s25  ;;  %262 = vrot.lane.b32.xlu1 %v261_v7, %s289_s26  ;;  %v130_v2 = vld [vmem:[%s410_s1] sm:$0xf] }
   0xc   :  { %267 = vrot.lane.b32.xlu0 %v266_v11, %s289_s26  ;;  %272 = vrot.lane.b32.xlu1 %v271_v12, %s290_s9 }
  0x10   :  { %277 = vrot.lane.b32.xlu0 %v276_v14, %s290_s9  ;;  %282 = vrot.lane.b32.xlu1 %v281_v15, %s290_s9 }
  0x14   :  { %214 = vperm.xlu0 %286, %v211_v19   ;;  %222 = vperm.xlu1 %287, %v219_v20  }
  0x76   :  { %v253_v21 = vpop.permute.xlu0 %252  ;;  %v258_v22 = vpop.permute.xlu1 %257 }
  0x77   :  { %v255_v23 = vunpack.i.h.bf16 %v253_v21  ;;  %v254_v24 = vunpack.i.l.bf16 %v253_v21  ;;  %v260_v25 = vunpack.i.h.bf16 %v258_v22  ;;  %v259_v26 = vunpack.i.l.bf16 %v258_v22 }
  0x79   :  { %v124_v27 = vsel %vm123_vm0, %v254_v24, %v255_v23  ;;  %v88_v34 = vsel %vm86_vm1, %v259_v26, %v260_v25 }
  0x7a   :  { %v122_v28 = vpop.permute.xlu0 %121  ;;  %v263_v29 = vpop.permute.xlu1 %262  ;;  %v157_v30 = vpack.c.bf16 %v124_v27, %v124_v27 }
  0x7b   :  { %v265_v31 = vunpack.i.h.bf16 %v263_v29  ;;  %v264_v32 = vunpack.i.l.bf16 %v263_v29  ;;  %v125_v33 = vsel %vm123_vm0, %v255_v23, %v122_v28 }
  0x7c   :  { %v158_v35 = vpack.c.bf16 %v125_v33, %v125_v33  ;;  %v165_v39 = vsel %vm163_vm2, %v157_v30, 0 }
  0x7d   :  { %v106_v36 = vsel %vm86_vm1, %v264_v32, %v265_v31 }
  0x7e   :  { %245 = vmatprep.subr.msk.bf16.mxu0 %vm163_vm2, %v158_v35  ;;  %v268_v37 = vpop.permute.xlu0 %267  ;;  %v273_v38 = vpop.permute.xlu1 %272  ;;  %v156_v40 = vpack.c.bf16 %v106_v36, %v88_v34 }
  0x7f   :  { %v270_v41 = vunpack.i.h.bf16 %v268_v37  ;;  %v269_v42 = vunpack.i.l.bf16 %v268_v37  ;;  %v275_v43 = vunpack.i.h.bf16 %v273_v38  ;;  %v274_v44 = vunpack.i.l.bf16 %v273_v38  ;;  %177 = vmatpush1.bf16.msra.mxu0 %v165_v39 }
  0x80   :  { %178 = vmatprep.subr.bf16.mxu0 %v156_v40 }
  0x81   :  { %v87_v46 = vsel %vm86_vm1, %v269_v42, %v259_v26  ;;  %v105_v47 = vsel %vm86_vm1, %v270_v41, %v264_v32  ;;  %v69_v48 = vsel %vm39_vm3, %v274_v44, %v275_v43 }
  0x82   :  { %v278_v49 = vpop.permute.xlu0 %277  ;;  %v283_v50 = vpop.permute.xlu1 %282  ;;  %v155_v51 = vpack.c.bf16 %v105_v47, %v87_v46  ;;  %v154_v52 = vpack.c.bf16 %v69_v48, %v238_v45 }
  0x83   :  { %v280_v53 = vunpack.i.h.bf16 %v278_v49  ;;  %v279_v54 = vunpack.i.l.bf16 %v278_v49  ;;  %v285_v55 = vunpack.i.h.bf16 %v283_v50  ;;  %v284_v56 = vunpack.i.l.bf16 %v283_v50 }
  0x84   :  { %179 = vmatpush1.bf16.msra.mxu0 %v155_v51 }
  0x85   :  { %180 = vmatprep.subr.bf16.mxu0 %v154_v52  ;;  %v68_v58 = vsel %vm39_vm3, %v279_v54, %v274_v44  ;;  %v41_v59 = vsel %vm39_vm3, %v280_v53, %v284_v56  ;;  %v40_v62 = vsel %vm39_vm3, %v285_v55, %v280_v53 }
  0x86   :  { %v153_v60 = vpack.c.bf16 %v68_v58, %v237_v57  ;;  %v152_v61 = vpack.c.bf16 %v350_v9, %v41_v59  ;;  %v151_v63 = vpack.c.bf16 %v361_v13, %v40_v62 }
  0x88   :  { %181 = vmatpush1.bf16.msra.mxu0 %v153_v60 }
  0x89   :  { %182 = vmatprep.subr.bf16.mxu0 %v152_v61 }
  0x8c   :  { %183 = vmatpush1.bf16.msra.mxu0 %v151_v63 }
  0x8d   :  { %184 = vmatprep.subr.bf16.mxu0 %v150_v16 }
  0x8f   :  { %v215_v3 = vpop.permute.xlu0 %214  ;;  %v223_v6 = vpop.permute.xlu1 %222 }
  0x90   :  { %185 = vmatpush1.bf16.msra.mxu0 %v149_v17 }
  0x93   :  { %246 = vmatmul.mubr.msk.bf16.vlgmr.msra.gmra.mxu0 %vm159_vm4, %v130_v2 }
 0x153   :  { %v204_v4 = vpop.f32.mrf.mxu0 }
 0x154   :  { %v217_v7 = vmul.f32 %v215_v3, %v204_v4 }
 0x155   :  { %v206_v9 = vpop.f32.mrf.mxu0 }
 0x156   :  { %v225_v10 = vadd.f32 %v223_v6, %v217_v7  ;;  %v218_v11 = vmul.f32 %v215_v3, %v206_v9 }
 0x157   :  { %v208_v12 = vpop.f32.mrf.mxu0 }
 0x158   :  { %227 = vst [vmem:[%s411_s4] sm:$0xff] %v225_v10  ;;  %v226_v0 = vadd.f32 %v223_v6, %v218_v11 }
 0x159   :  { %v209_v1 = vpop.f32.mrf.mxu0 }
 0x15a   :  { %228 = vst [vmem:[%s411_s4 + $0x8] sm:$0xff] %v226_v0 }

// kernel: _lambda_.6
= control target key start
LH: loop header
LB: loop body
LE: loop exit
PB: predicated region body
PF: predicated region fallthrough
CT: control target
= control target key end

     0   :  { %s3467_s17 = smov 86   ;;  %s3468_s22 = smov 88   ;;  %v3475_v8 = vmov 0   ;;  %vm62_vm0 = vcmask 834560   ;;  %vm449_vm1 = vcmask 703488   ;;  %vm574_vm2 = vcmask 1043456   ;;  %s4948_s0 = inlined_call_operand.vmem [shape: f32[8,1024], index: 0, kind: input, shape index: {}]   ;;  %s4949_s9 = inlined_call_operand.vmem [shape: f32[8,1024], index: 9, kind: output, shape index: {}]   ;;  %s4950_s2 = inlined_call_operand.vmem [shape: f32[2,8,1], index: 2, kind: input, shape index: {}]   ;;  %s4951_s3 = inlined_call_operand.vmem [shape: f32[2,8,1], index: 3, kind: input, shape index: {}]   ;;  %s4952_s1 = inlined_call_operand.vmem [shape: bf16[2,8,72], index: 1, kind: input, shape index: {}]   ;;  %s4953_s7 = inlined_call_operand.vmem [shape: f32[1,870], index: 7, kind: input, shape index: {}]   ;;  %s4954_s6 = inlined_call_operand.vmem [shape: f32[2,8,1], index: 6, kind: input, shape index: {}]   ;;  %s4955_s5 = inlined_call_operand.vmem [shape: f32[2,8,1], index: 5, kind: input, shape index: {}]   ;;  %s4956_s4 = inlined_call_operand.vmem [shape: bf16[2,8,72], index: 4, kind: input, shape index: {}]   ;;  %s4957_s8 = inlined_call_operand.vmem [shape: f32[1,828], index: 8, kind: input, shape index: {}]  }
   0x1   :  { %v3532_v0 = vld [vmem:[%s4948_s0 + $0x10] sm:$0xff]  ;;  %v3537_v1 = vld [vmem:[%s4948_s0] sm:$0xff]  ;;  %v3542_v2 = vld [vmem:[%s4948_s0 + $0x8] sm:$0xff]  ;;  %s3470_s23 = smov 107   ;;  %s3471_s24 = smov 106   ;;  %628 = vmatprep.mubr.bf16.mxu0 %v3475_v8  ;;  %669 = vmatprep.mubr.bf16.mxu1 %v3475_v8  ;;  %vm341_vm3 = vcmask 719872  }
   0x2   :  { %43 = vst [vmem:[%s4949_s9 + $0x10] sm:$0xff] %v3532_v0  ;;  %437 = vrot.lane.b32.xlu1 %v3532_v0, %s3467_s17  ;;  %41 = vst [vmem:[%s4949_s9] sm:$0xff] %v3537_v1  ;;  %433 = vrot.lane.b32.xlu0 %v3537_v1, %s3467_s17  ;;  %s3472_s25 = smov 126   ;;  %s3473_s26 = smov 108   ;;  %vm395_vm4 = vcmask 711680   ;;  %vm239_vm5 = vcmask 875520   ;;  %vm288_vm6 = vcmask 867328  }
   0x3   :  { %42 = vst [vmem:[%s4949_s9 + $0x8] sm:$0xff] %v3542_v2  ;;  %v3563_v3 = vld [vmem:[%s4948_s0 + $0x18] sm:$0xff]  ;;  %v3568_v4 = vld [vmem:[%s4948_s0 + $0x20] sm:$0xff]  ;;  %v3581_v5 = vld [vmem:[%s4948_s0 + $0x28] sm:$0xff]  ;;  %s3474_s27 = smov 127   ;;  %3465 = vset.pattern.permute.xlu1 %v3475_v8  ;;  %3466 = vset.pattern.permute.xlu0 %v3475_v8  ;;  %vm141_vm7 = vcmask 1031168  }
   0x4   :  { %44 = vst [vmem:[%s4949_s9 + $0x18] sm:$0xff] %v3563_v3  ;;  %45 = vst [vmem:[%s4949_s9 + $0x20] sm:$0xff] %v3568_v4  ;;  %v3586_v6 = vld [vmem:[%s4948_s0 + $0x30] sm:$0xff]  ;;  %v3591_v7 = vld [vmem:[%s4948_s0 + $0x38] sm:$0xff]  ;;  %s3469_s0 = smov 87   ;;  %vm190_vm8 = vcmask 883712  }
   0x5   :  { %46 = vst [vmem:[%s4949_s9 + $0x28] sm:$0xff] %v3581_v5  ;;  %47 = vst [vmem:[%s4949_s9 + $0x30] sm:$0xff] %v3586_v6  ;;  %v759_v20 = vld [vmem:[%s4950_s2] sm:$0xff]  ;;  %vm92_vm9 = vcmask 1039360   ;;  %vm570_vm10 = vcmask 588800   ;;  %vm3477_vm11 = vmmov 0  }
   0x6   :  { %48 = vst [vmem:[%s4949_s9 + $0x38] sm:$0xff] %v3591_v7  ;;  %327 = vrot.lane.b32.xlu1 %v3542_v2, %s3468_s22  ;;  %435 = vrot.lane.b32.xlu0 %v3542_v2, %s3467_s17  ;;  %63 = vst.msk [vmem:[#allocation2 + $0x30] sm:$0xff] %vm62_vm0, %v3586_v6  ;;  %v772_v23 = vld [vmem:[%s4951_s3] sm:$0xff]  ;;  %vm856_vm12 = vcmask 490496   ;;  %s3478_s30 = smov 42   ;;  %vm1688_vm13 = vcmask 1047888  }
   0x7   :  { %vm1674_vm14 = vcmask 343040  }
   0xa   :  { %381 = vrot.lane.b32.xlu1 %v3542_v2, %s3469_s0  ;;  %329 = vrot.lane.b32.xlu0 %v3532_v0, %s3468_s22 }
   0xe   :  { %383 = vrot.lane.b32.xlu0 %v3532_v0, %s3469_s0  ;;  %325 = vrot.lane.b32.xlu1 %v3537_v1, %s3468_s22 }
  0x12   :  { %379 = vrot.lane.b32.xlu0 %v3537_v1, %s3469_s0  ;;  %227 = vrot.lane.b32.xlu1 %v3542_v2, %s3470_s23 }
  0x16   :  { %229 = vrot.lane.b32.xlu0 %v3532_v0, %s3470_s23  ;;  %276 = vrot.lane.b32.xlu1 %v3542_v2, %s3471_s24 }
  0x1a   :  { %278 = vrot.lane.b32.xlu0 %v3532_v0, %s3471_s24  ;;  %225 = vrot.lane.b32.xlu1 %v3537_v1, %s3470_s23 }
  0x1e   :  { %274 = vrot.lane.b32.xlu0 %v3537_v1, %s3471_s24  ;;  %129 = vrot.lane.b32.xlu1 %v3542_v2, %s3472_s25 }
  0x22   :  { %131 = vrot.lane.b32.xlu0 %v3532_v0, %s3472_s25  ;;  %178 = vrot.lane.b32.xlu1 %v3542_v2, %s3473_s26 }
  0x26   :  { %180 = vrot.lane.b32.xlu0 %v3532_v0, %s3473_s26  ;;  %127 = vrot.lane.b32.xlu1 %v3537_v1, %s3472_s25 }
  0x2a   :  { %176 = vrot.lane.b32.xlu0 %v3537_v1, %s3473_s26  ;;  %80 = vrot.lane.b32.xlu1 %v3542_v2, %s3474_s27 }
  0x2e   :  { %82 = vrot.lane.b32.xlu0 %v3532_v0, %s3474_s27  ;;  %78 = vrot.lane.b32.xlu1 %v3537_v1, %s3474_s27 }
  0x32   :  { %439 = vrot.lane.b32.xlu0 %v3563_v3, %s3467_s17  ;;  %441 = vrot.lane.b32.xlu1 %v3568_v4, %s3467_s17 }
  0x36   :  { %443 = vrot.lane.b32.xlu0 %v3581_v5, %s3467_s17  ;;  %445 = vrot.lane.b32.xlu1 %v3586_v6, %s3467_s17 }
  0x3a   :  { %331 = vrot.lane.b32.xlu0 %v3563_v3, %s3468_s22  ;;  %333 = vrot.lane.b32.xlu1 %v3568_v4, %s3468_s22 }
  0x3e   :  { %385 = vrot.lane.b32.xlu0 %v3563_v3, %s3469_s0  ;;  %387 = vrot.lane.b32.xlu1 %v3568_v4, %s3469_s0 }
  0x42   :  { %335 = vrot.lane.b32.xlu0 %v3581_v5, %s3468_s22  ;;  %337 = vrot.lane.b32.xlu1 %v3586_v6, %s3468_s22 }
  0x46   :  { %389 = vrot.lane.b32.xlu0 %v3581_v5, %s3469_s0  ;;  %391 = vrot.lane.b32.xlu1 %v3586_v6, %s3469_s0 }
  0x4a   :  { %231 = vrot.lane.b32.xlu0 %v3563_v3, %s3470_s23  ;;  %233 = vrot.lane.b32.xlu1 %v3568_v4, %s3470_s23 }
  0x4e   :  { %280 = vrot.lane.b32.xlu0 %v3563_v3, %s3471_s24  ;;  %282 = vrot.lane.b32.xlu1 %v3568_v4, %s3471_s24 }
  0x52   :  { %235 = vrot.lane.b32.xlu0 %v3581_v5, %s3470_s23  ;;  %237 = vrot.lane.b32.xlu1 %v3586_v6, %s3470_s23 }
  0x56   :  { %284 = vrot.lane.b32.xlu0 %v3581_v5, %s3471_s24  ;;  %286 = vrot.lane.b32.xlu1 %v3586_v6, %s3471_s24 }
  0x5a   :  { %133 = vrot.lane.b32.xlu0 %v3563_v3, %s3472_s25  ;;  %135 = vrot.lane.b32.xlu1 %v3568_v4, %s3472_s25 }
  0x5e   :  { %182 = vrot.lane.b32.xlu0 %v3563_v3, %s3473_s26  ;;  %184 = vrot.lane.b32.xlu1 %v3568_v4, %s3473_s26 }
  0x62   :  { %137 = vrot.lane.b32.xlu0 %v3581_v5, %s3472_s25  ;;  %139 = vrot.lane.b32.xlu1 %v3586_v6, %s3472_s25 }
  0x66   :  { %186 = vrot.lane.b32.xlu0 %v3581_v5, %s3473_s26  ;;  %188 = vrot.lane.b32.xlu1 %v3586_v6, %s3473_s26 }
  0x6a   :  { %84 = vrot.lane.b32.xlu0 %v3563_v3, %s3474_s27  ;;  %86 = vrot.lane.b32.xlu1 %v3568_v4, %s3474_s27 }
  0x6e   :  { %88 = vrot.lane.b32.xlu0 %v3581_v5, %s3474_s27  ;;  %90 = vrot.lane.b32.xlu1 %v3586_v6, %s3474_s27 }
  0x72   :  { %447 = vrot.lane.b32.xlu0 %v3591_v7, %s3467_s17  ;;  %339 = vrot.lane.b32.xlu1 %v3591_v7, %s3468_s22 }
  0x74   :  { %v3723_v9 = vpop.permute.xlu1 %437  ;;  %v434_v10 = vpop.permute.xlu0 %433 }
  0x76   :  { %393 = vrot.lane.b32.xlu0 %v3591_v7, %s3469_s0  ;;  %762 = vperm.xlu1 %3465, %v759_v20  }
  0x78   :  { %v328_v11 = vpop.permute.xlu1 %327  ;;  %v436_v12 = vpop.permute.xlu0 %435 }
  0x79   :  { %v450_v13 = vsel %vm449_vm1, %v434_v10, %v436_v12  ;;  %v451_v14 = vsel %vm449_vm1, %v436_v12, %v3723_v9  ;;  %v3781_v10 = vld [vmem:[%s4952_s1] sm:$0xf] }
  0x7a   :  { %v564_v15 = vpack.c.bf16 %v451_v14, %v451_v14  ;;  %v563_v16 = vpack.c.bf16 %v450_v13, %v450_v13  ;;  %775 = vperm.xlu0 %3466, %v772_v23  }
  0x7c   :  { %v382_v17 = vpop.permute.xlu1 %381  ;;  %v3730_v18 = vpop.permute.xlu0 %329  ;;  %3339 = vmatprep.subr.msk.bf16.mxu0 %vm574_vm2, %v564_v15  ;;  %v576_v19 = vsel %vm574_vm2, %v563_v16, 0 }
  0x7d   :  { %603 = vmatpush1.bf16.msra.mxu0 %v576_v19  ;;  %v343_v24 = vsel %vm341_vm3, %v328_v11, %v3730_v18 }
  0x80   :  { %v3737_v21 = vpop.permute.xlu0 %383  ;;  %v326_v22 = vpop.permute.xlu1 %325 }
  0x81   :  { %v397_v25 = vsel %vm395_vm4, %v382_v17, %v3737_v21  ;;  %v342_v29 = vsel %vm341_vm3, %v326_v22, %v328_v11 }
  0x82   :  { %v557_v26 = vpack.c.bf16 %v397_v25, %v343_v24 }
  0x84   :  { %v380_v27 = vpop.permute.xlu0 %379  ;;  %v228_v28 = vpop.permute.xlu1 %227  ;;  %604 = vmatprep.subr.bf16.mxu0 %v557_v26 }
  0x85   :  { %v396_v30 = vsel %vm395_vm4, %v380_v27, %v382_v17 }
  0x86   :  { %v556_v31 = vpack.c.bf16 %v396_v30, %v342_v29 }
  0x88   :  { %v3748_v32 = vpop.permute.xlu0 %229  ;;  %v277_v33 = vpop.permute.xlu1 %276  ;;  %605 = vmatpush1.bf16.msra.mxu0 %v556_v31 }
  0x89   :  { %v241_v36 = vsel %vm239_vm5, %v228_v28, %v3748_v32 }
  0x8c   :  { %v3750_v34 = vpop.permute.xlu0 %278  ;;  %v226_v35 = vpop.permute.xlu1 %225 }
  0x8d   :  { %v290_v37 = vsel %vm288_vm6, %v277_v33, %v3750_v34  ;;  %v240_v41 = vsel %vm239_vm5, %v226_v35, %v228_v28 }
  0x8e   :  { %v550_v38 = vpack.c.bf16 %v290_v37, %v241_v36 }
  0x90   :  { %v275_v39 = vpop.permute.xlu0 %274  ;;  %v130_v40 = vpop.permute.xlu1 %129  ;;  %606 = vmatprep.subr.bf16.mxu0 %v550_v38 }
  0x91   :  { %v289_v42 = vsel %vm288_vm6, %v275_v39, %v277_v33 }
  0x92   :  { %v549_v43 = vpack.c.bf16 %v289_v42, %v240_v41 }
  0x94   :  { %v3758_v44 = vpop.permute.xlu0 %131  ;;  %v179_v45 = vpop.permute.xlu1 %178  ;;  %607 = vmatpush1.bf16.msra.mxu0 %v549_v43 }
  0x95   :  { %v143_v48 = vsel %vm141_vm7, %v130_v40, %v3758_v44 }
  0x98   :  { %v3760_v46 = vpop.permute.xlu0 %180  ;;  %v128_v47 = vpop.permute.xlu1 %127 }
  0x99   :  { %v192_v49 = vsel %vm190_vm8, %v179_v45, %v3760_v46  ;;  %v142_v53 = vsel %vm141_vm7, %v128_v47, %v130_v40 }
  0x9a   :  { %v543_v50 = vpack.c.bf16 %v192_v49, %v143_v48 }
  0x9c   :  { %v177_v51 = vpop.permute.xlu0 %176  ;;  %v81_v52 = vpop.permute.xlu1 %80  ;;  %608 = vmatprep.subr.bf16.mxu0 %v543_v50 }
  0x9d   :  { %v191_v54 = vsel %vm190_vm8, %v177_v51, %v179_v45 }
  0x9e   :  { %v542_v55 = vpack.c.bf16 %v191_v54, %v142_v53 }
  0xa0   :  { %v3768_v56 = vpop.permute.xlu0 %82  ;;  %v79_v57 = vpop.permute.xlu1 %78  ;;  %609 = vmatpush1.bf16.msra.mxu0 %v542_v55 }
  0xa1   :  { %v94_v58 = vsel %vm92_vm9, %v81_v52, %v3768_v56  ;;  %v93_v59 = vsel %vm92_vm9, %v79_v57, %v81_v52 }
  0xa2   :  { %v536_v60 = vpack.c.bf16 %v94_v58, %v3542_v2  ;;  %v535_v61 = vpack.c.bf16 %v93_v59, %v3537_v1 }
  0xa4   :  { %v440_v62 = vpop.permute.xlu0 %439  ;;  %v442_v63 = vpop.permute.xlu1 %441  ;;  %610 = vmatprep.subr.bf16.mxu0 %v536_v60 }
  0xa5   :  { %v452_v6 = vsel %vm449_vm1, %v3723_v9, %v440_v62  ;;  %v453_v7 = vsel %vm449_vm1, %v440_v62, %v442_v63  ;;  %611 = vmatpush1.bf16.msra.mxu0 %v535_v61 }
  0xa6   :  { %v566_v11 = vpack.c.bf16 %v453_v7, %v453_v7  ;;  %v565_v12 = vpack.c.bf16 %v452_v6, %v452_v6 }
  0xa8   :  { %v444_v2 = vpop.permute.xlu0 %443  ;;  %v3783_v13 = vpop.permute.xlu1 %445  ;;  %3341 = vmatprep.subr.msk.bf16.mxu1 %vm574_vm2, %v566_v11  ;;  %v582_v1 = vsel %vm574_vm2, %v565_v12, 0  ;;  %3340 = vmatmul.mubr.msk.bf16.vlgmr.msra.gmra.mxu0 %vm570_vm10, %v3781_v10 }
  0xa9   :  { %v454_v9 = vsel %vm449_vm1, %v442_v63, %v444_v2  ;;  %v455_v14 = vsel %vm449_vm1, %v444_v2, %v3783_v13  ;;  %644 = vmatpush1.bf16.msra.mxu1 %v582_v1  ;;  %710 = vmatprep.mubr.bf16.mxu0 %v3475_v8 }
  0xaa   :  { %v568_v15 = vpack.c.bf16 %v455_v14, %v455_v14  ;;  %v567_v16 = vpack.c.bf16 %v454_v9, %v454_v9 }
  0xac   :  { %v332_v17 = vpop.permute.xlu0 %331  ;;  %v334_v19 = vpop.permute.xlu1 %333  ;;  %3343 = vmatprep.subr.msk.bf16.mxu0 %vm574_vm2, %v568_v15  ;;  %v588_v20 = vsel %vm574_vm2, %v567_v16, 0 }
  0xad   :  { %685 = vmatpush1.bf16.msra.mxu0 %v588_v20  ;;  %v344_v24 = vsel %vm341_vm3, %v3730_v18, %v332_v17  ;;  %v345_v25 = vsel %vm341_vm3, %v332_v17, %v334_v19 }
  0xb0   :  { %v386_v22 = vpop.permute.xlu0 %385  ;;  %v388_v23 = vpop.permute.xlu1 %387 }
  0xb1   :  { %v398_v26 = vsel %vm395_vm4, %v3737_v21, %v386_v22  ;;  %v399_v27 = vsel %vm395_vm4, %v386_v22, %v388_v23 }
  0xb2   :  { %v559_v28 = vpack.c.bf16 %v399_v27, %v345_v25  ;;  %v558_v29 = vpack.c.bf16 %v398_v26, %v344_v24 }
  0xb4   :  { %v336_v30 = vpop.permute.xlu0 %335  ;;  %v3801_v31 = vpop.permute.xlu1 %337  ;;  %645 = vmatprep.subr.bf16.mxu1 %v559_v28 }
  0xb5   :  { %646 = vmatpush1.bf16.msra.mxu1 %v558_v29  ;;  %v346_v36 = vsel %vm341_vm3, %v334_v19, %v336_v30  ;;  %v347_v18 = vsel %vm341_vm3, %v336_v30, %v3801_v31 }
  0xb8   :  { %v390_v33 = vpop.permute.xlu0 %389  ;;  %v3803_v35 = vpop.permute.xlu1 %391 }
  0xb9   :  { %v400_v37 = vsel %vm395_vm4, %v388_v23, %v390_v33  ;;  %v401_v21 = vsel %vm395_vm4, %v390_v33, %v3803_v35 }
  0xba   :  { %v561_v38 = vpack.c.bf16 %v401_v21, %v347_v18  ;;  %v560_v39 = vpack.c.bf16 %v400_v37, %v346_v36  ;;  %v3476_v21 = vmov 0.0  }
  0xbc   :  { %v232_v40 = vpop.permute.xlu0 %231  ;;  %v234_v41 = vpop.permute.xlu1 %233  ;;  %686 = vmatprep.subr.bf16.mxu0 %v561_v38 }
  0xbd   :  { %687 = vmatpush1.bf16.msra.mxu0 %v560_v39  ;;  %v242_v45 = vsel %vm239_vm5, %v3748_v32, %v232_v40  ;;  %v243_v47 = vsel %vm239_vm5, %v232_v40, %v234_v41 }
  0xc0   :  { %v281_v42 = vpop.permute.xlu0 %280  ;;  %v283_v43 = vpop.permute.xlu1 %282 }
  0xc1   :  { %v291_v48 = vsel %vm288_vm6, %v3750_v34, %v281_v42  ;;  %v292_v49 = vsel %vm288_vm6, %v281_v42, %v283_v43 }
  0xc2   :  { %v552_v50 = vpack.c.bf16 %v292_v49, %v243_v47  ;;  %v551_v51 = vpack.c.bf16 %v291_v48, %v242_v45 }
  0xc4   :  { %v236_v52 = vpop.permute.xlu0 %235  ;;  %v238_v53 = vpop.permute.xlu1 %237  ;;  %647 = vmatprep.subr.bf16.mxu1 %v552_v50  ;;  %v478_v50 = vld [vmem:[#allocation2 + $0x30] sm:$0xff] }
  0xc5   :  { %259 = vst.msk [vmem:[#allocation2 + $0x110] sm:$0xff] %vm62_vm0, %v238_v53  ;;  %648 = vmatpush1.bf16.msra.mxu1 %v551_v51  ;;  %v244_v57 = vsel %vm239_vm5, %v234_v41, %v236_v52  ;;  %v245_v32 = vsel %vm239_vm5, %v236_v52, %v238_v53 }
  0xc8   :  { %v285_v54 = vpop.permute.xlu0 %284  ;;  %v287_v55 = vpop.permute.xlu1 %286 }
  0xc9   :  { %v293_v58 = vsel %vm288_vm6, %v283_v43, %v285_v54  ;;  %v294_v34 = vsel %vm288_vm6, %v285_v54, %v287_v55  ;;  %308 = vst.msk [vmem:[#allocation2 + $0x148] sm:$0xff] %vm62_vm0, %v287_v55  ;;  %v794_v54 = vlaneseq }
  0xca   :  { %v554_v59 = vpack.c.bf16 %v294_v34, %v245_v32  ;;  %v553_v60 = vpack.c.bf16 %v293_v58, %v244_v57 }
  0xcb   :  { %v3870_v55 = vshrl.u32 %v794_v54, 7 }
  0xcc   :  { %v134_v61 = vpop.permute.xlu0 %133  ;;  %v136_v62 = vpop.permute.xlu1 %135  ;;  %688 = vmatprep.subr.bf16.mxu0 %v554_v59  ;;  %v506_v47 = vld [vmem:[#allocation2 + $0x110] sm:$0xff]  ;;  %v3882_v59 = vld [vmem:[%s4953_s7] sm:$0x7f] }
  0xcd   :  { %689 = vmatpush1.bf16.msra.mxu0 %v553_v60  ;;  %v144_v7 = vsel %vm141_vm7, %v3758_v44, %v134_v61  ;;  %v145_v11 = vsel %vm141_vm7, %v134_v61, %v136_v62  ;;  %v3875_v32 = vsub.s32 0, %v3870_v55 }
  0xd0   :  { %v183_v63 = vpop.permute.xlu0 %182  ;;  %v185_v6 = vpop.permute.xlu1 %184  ;;  %v513_v45 = vld [vmem:[#allocation2 + $0x148] sm:$0xff] }
  0xd1   :  { %v193_v12 = vsel %vm190_vm8, %v3760_v46, %v183_v63  ;;  %v194_v2 = vsel %vm190_vm8, %v183_v63, %v185_v6 }
  0xd2   :  { %v545_v1 = vpack.c.bf16 %v194_v2, %v145_v11  ;;  %v544_v9 = vpack.c.bf16 %v193_v12, %v144_v7 }
  0xd4   :  { %v138_v14 = vpop.permute.xlu0 %137  ;;  %v140_v15 = vpop.permute.xlu1 %139  ;;  %649 = vmatprep.subr.bf16.mxu1 %v545_v1  ;;  %v3897_v1 = vsub.s32 1, %v3870_v55 }
  0xd5   :  { %161 = vst.msk [vmem:[#allocation2 + $0xa0] sm:$0xff] %vm62_vm0, %v140_v15  ;;  %650 = vmatpush1.bf16.msra.mxu1 %v544_v9  ;;  %v146_v19 = vsel %vm141_vm7, %v136_v62, %v138_v14  ;;  %v147_v44 = vsel %vm141_vm7, %v138_v14, %v140_v15  ;;  %v797_v62 = vrot.slane %v3882_v59, %v3875_v32 }
  0xd6   :  { %v801_v14 = vrot.slane %v3882_v59, %v3897_v1 }
  0xd8   :  { %v187_v16 = vpop.permute.xlu0 %186  ;;  %v189_v17 = vpop.permute.xlu1 %188 }
  0xd9   :  { %v195_v20 = vsel %vm190_vm8, %v185_v6, %v187_v16  ;;  %v196_v46 = vsel %vm190_vm8, %v187_v16, %v189_v17  ;;  %210 = vst.msk [vmem:[#allocation2 + $0xd8] sm:$0xff] %vm62_vm0, %v189_v17  ;;  %v3912_v16 = vsub.s32 2, %v3870_v55 }
  0xda   :  { %v547_v22 = vpack.c.bf16 %v196_v46, %v147_v44  ;;  %v546_v23 = vpack.c.bf16 %v195_v20, %v146_v19  ;;  %v3916_v44 = vsub.s32 3, %v3870_v55 }
  0xdc   :  { %v85_v24 = vpop.permute.xlu0 %84  ;;  %v87_v25 = vpop.permute.xlu1 %86  ;;  %690 = vmatprep.subr.bf16.mxu0 %v547_v22  ;;  %v492_v49 = vld [vmem:[#allocation2 + $0xa0] sm:$0xff]  ;;  %v805_v22 = vrot.slane %v3882_v59, %v3912_v16 }
  0xdd   :  { %v95_v26 = vsel %vm92_vm9, %v3768_v56, %v85_v24  ;;  %v96_v27 = vsel %vm92_vm9, %v85_v24, %v87_v25  ;;  %691 = vmatpush1.bf16.msra.mxu0 %v546_v23 }
  0xde   :  { %v538_v28 = vpack.c.bf16 %v96_v27, %v3563_v3  ;;  %v537_v29 = vpack.c.bf16 %v95_v26, %v3532_v0 }
  0xe0   :  { %v89_v30 = vpop.permute.xlu0 %88  ;;  %v91_v33 = vpop.permute.xlu1 %90  ;;  %651 = vmatprep.subr.bf16.mxu1 %v538_v28  ;;  %v499_v48 = vld [vmem:[#allocation2 + $0xd8] sm:$0xff]  ;;  %v809_v28 = vrot.slane %v3882_v59, %v3916_v44 }
  0xe1   :  { %v97_v36 = vsel %vm92_vm9, %v87_v25, %v89_v30  ;;  %v98_v18 = vsel %vm92_vm9, %v89_v30, %v91_v33  ;;  %112 = vst.msk [vmem:[#allocation2 + $0x68] sm:$0xff] %vm62_vm0, %v91_v33  ;;  %652 = vmatpush1.bf16.msra.mxu1 %v537_v29  ;;  %v548_v52 = vpack.c.bf16 %v499_v48, %v492_v49 }
  0xe2   :  { %v540_v37 = vpack.c.bf16 %v98_v18, %v3581_v5  ;;  %v539_v56 = vpack.c.bf16 %v97_v36, %v3568_v4  ;;  %3397 = vmatprep.subr.bf16.mxu1 %v3476_v21 }
  0xe4   :  { %v448_v3 = vpop.permute.xlu0 %447  ;;  %v340_v38 = vpop.permute.xlu1 %339  ;;  %3342 = vmatmul.mubr.msk.bf16.vlgmr.msra.gmra.mxu1 %vm570_vm10, %v3781_v10  ;;  %692 = vmatprep.subr.bf16.mxu0 %v540_v37 }
  0xe5   :  { %v456_v0 = vsel %vm449_vm1, %v3783_v13, %v448_v3  ;;  %v348_v39 = vsel %vm341_vm3, %v3801_v31, %v340_v38  ;;  %693 = vmatpush1.bf16.msra.mxu0 %v539_v56  ;;  %3407 = vmatprep.mubr.msk.bf16.mxu1 %vm3477_vm11, %v3476_v21  ;;  %v3952_v3 = vsub.s32 6, %v3870_v55 }
  0xe6   :  { %470 = vst.msk [vmem:[#allocation2 + $0x1f0] sm:$0xff] %vm62_vm0, %v456_v0  ;;  %362 = vst.msk [vmem:[#allocation2 + $0x180] sm:$0xff] %vm62_vm0, %v348_v39 }
  0xe8   :  { %v394_v4 = vpop.permute.xlu0 %393  ;;  %3344 = vmatmul.mubr.msk.bf16.vlgmr.msra.gmra.mxu0 %vm570_vm10, %v3781_v10  ;;  %v485_v51 = vld [vmem:[#allocation2 + $0x68] sm:$0xff] }
  0xe9   :  { %v402_v5 = vsel %vm395_vm4, %v3803_v35, %v394_v4  ;;  %1397 = vmatprep.mubr.bf16.mxu0 %v3475_v8  ;;  %v555_v35 = vpack.c.bf16 %v513_v45, %v506_v47  ;;  %v541_v53 = vpack.c.bf16 %v485_v51, %v478_v50  ;;  %v3978_v45 = vsub.s32 4, %v3870_v55 }
  0xea   :  { %416 = vst.msk [vmem:[#allocation2 + $0x1b8] sm:$0xff] %vm62_vm0, %v402_v5  ;;  %v821_v5 = vrot.slane %v3882_v59, %v3952_v3 }
  0xeb   :  { %v813_v48 = vrot.slane %v3882_v59, %v3978_v45 }
  0xed   :  { %v534_v13 = vld [vmem:[#allocation2 + $0x1f0] sm:$0xff]  ;;  %v520_v41 = vld [vmem:[#allocation2 + $0x180] sm:$0xff] }
  0xee   :  { %v569_v31 = vpack.c.bf16 %v534_v13, %v534_v13 }
  0xf0   :  { %v594_v40 = vsel %vm574_vm2, %v569_v31, 0 }
  0xf1   :  { %3398 = vmatpush3.bf16.msra.mxu1 %v594_v40  ;;  %v527_v42 = vld [vmem:[#allocation2 + $0x1b8] sm:$0xff]  ;;  %v3872_v57 = vpop.permute.xlu1 %762 }
  0xf2   :  { %3399 = vmatprep.subr.bf16.mxu1 %v3476_v21  ;;  %v562_v43 = vpack.c.bf16 %v527_v42, %v520_v41 }
  0xf5   :  { %3400 = vmatpush3.bf16.msra.mxu1 %v562_v43  ;;  %v3877_v34 = vpop.permute.xlu0 %775 }
  0xf6   :  { %3401 = vmatprep.subr.bf16.mxu1 %v3476_v21 }
  0xf9   :  { %3402 = vmatpush3.bf16.msra.mxu1 %v555_v35 }
  0xfa   :  { %3403 = vmatprep.subr.bf16.mxu1 %v3476_v21 }
  0xfd   :  { %3404 = vmatpush3.bf16.msra.mxu1 %v548_v52  ;;  %v4015_v52 = vsub.s32 5, %v3870_v55 }
  0xfe   :  { %3405 = vmatprep.subr.bf16.mxu1 %v3476_v21 }
  0xff   :  { %v817_v54 = vrot.slane %v3882_v59, %v4015_v52  ;;  %v1541_v59 = vld [vmem:[%s4954_s6] sm:$0xff] }
 0x101   :  { %3406 = vmatpush3.bf16.msra.mxu1 %v541_v53 }
 0x104   :  { %3408 = vmatmul.mubr.msk.bf16.vlgmr.msra.gmra.mxu1 %vm570_vm10, %v3781_v10 }
 0x105   :  { %1438 = vmatprep.mubr.bf16.mxu1 %v3475_v8 }
 0x168   :  { %v630_v58 = vpop.f32.mrf.mxu0 }
 0x169   :  { %v765_v10 = vmul.f32 %v3872_v57, %v630_v58 }
 0x16a   :  { %v632_v60 = vpop.f32.mrf.mxu0 }
 0x16b   :  { %v778_v61 = vadd.f32 %v3877_v34, %v765_v10  ;;  %v766_v12 = vmul.f32 %v3872_v57, %v632_v60 }
 0x16c   :  { %v634_v63 = vpop.f32.mrf.mxu0 }
 0x16d   :  { %v785_v6 = vmax.f32 %v778_v61, 0.0  ;;  %v779_v2 = vadd.f32 %v3877_v34, %v766_v12  ;;  %v1555_v61 = vld [vmem:[%s4949_s9 + $0x8] sm:$0xff]  ;;  %v1557_v63 = vld [vmem:[%s4949_s9 + $0x18] sm:$0xff] }
 0x16e   :  { %v635_v7 = vpop.f32.mrf.mxu0  ;;  %v1559_v12 = vld [vmem:[%s4949_s9 + $0x28] sm:$0xff] }
 0x16f   :  { %v3888_v11 = vmul.f32 %v797_v62, %v785_v6  ;;  %v786_v9 = vmax.f32 %v779_v2, 0.0  ;;  %v1528_v62 = vld [vmem:[%s4955_s5] sm:$0xff] }
 0x170   :  { %v1554_v7 = vld [vmem:[%s4949_s9] sm:$0xff] }
 0x171   :  { %1208 = vrot.lane.b32.xlu1 %v3888_v11, %s3467_s17  ;;  %v3905_v15 = vmul.f32 %v801_v14, %v786_v9  ;;  %v1556_v9 = vld [vmem:[%s4949_s9 + $0x10] sm:$0xff] }
 0x175   :  { %1112 = vrot.lane.b32.xlu1 %v3888_v11, %s3468_s22 }
 0x179   :  { %1016 = vrot.lane.b32.xlu1 %v3888_v11, %s3470_s23 }
 0x17d   :  { %920 = vrot.lane.b32.xlu1 %v3888_v11, %s3472_s25 }
 0x181   :  { %872 = vrot.lane.b32.xlu1 %v3888_v11, %s3474_s27 }
 0x185   :  { %1210 = vrot.lane.b32.xlu1 %v3905_v15, %s3467_s17 }
 0x1a4   :  { %v671_v17 = vpop.f32.mrf.mxu1 }
 0x1a5   :  { %v767_v19 = vmul.f32 %v3872_v57, %v671_v17 }
 0x1a6   :  { %v673_v20 = vpop.f32.mrf.mxu1 }
 0x1a7   :  { %v780_v46 = vadd.f32 %v3877_v34, %v767_v19  ;;  %v768_v23 = vmul.f32 %v3872_v57, %v673_v20 }
 0x1a8   :  { %v675_v24 = vpop.f32.mrf.mxu1  ;;  %v712_v25 = vpop.f32.mrf.mxu0 }
 0x1a9   :  { %v787_v26 = vmax.f32 %v780_v46, 0.0  ;;  %v781_v27 = vadd.f32 %v3877_v34, %v768_v23  ;;  %v769_v42 = vmul.f32 %v3872_v57, %v712_v25 }
 0x1aa   :  { %v676_v29 = vpop.f32.mrf.mxu1  ;;  %v714_v30 = vpop.f32.mrf.mxu0 }
 0x1ab   :  { %v3925_v33 = vmul.f32 %v805_v22, %v787_v26  ;;  %v788_v36 = vmax.f32 %v781_v27, 0.0  ;;  %v782_v43 = vadd.f32 %v3877_v34, %v769_v42  ;;  %v770_v50 = vmul.f32 %v3872_v57, %v714_v30  ;;  %v1558_v22 = vld [vmem:[%s4949_s9 + $0x20] sm:$0xff]  ;;  %v1560_v26 = vld [vmem:[%s4949_s9 + $0x30] sm:$0xff] }
 0x1ac   :  { %v716_v18 = vpop.f32.mrf.mxu0 }
 0x1ad   :  { %v3927_v37 = vmul.f32 %v809_v28, %v788_v36  ;;  %1212 = vrot.lane.b32.xlu0 %v3925_v33, %s3467_s17  ;;  %v789_v35 = vmax.f32 %v782_v43, 0.0  ;;  %v783_v51 = vadd.f32 %v3877_v34, %v770_v50 }
 0x1ae   :  { %v717_v56 = vpop.f32.mrf.mxu0 }
 0x1af   :  { %1214 = vrot.lane.b32.xlu1 %v3927_v37, %s3467_s17  ;;  %v3991_v49 = vmul.f32 %v813_v48, %v789_v35  ;;  %v790_v53 = vmax.f32 %v783_v51, 0.0 }
 0x1b1   :  { %1116 = vrot.lane.b32.xlu0 %v3925_v33, %s3468_s22 }
 0x1b3   :  { %1114 = vrot.lane.b32.xlu1 %v3905_v15, %s3468_s22 }
 0x1b5   :  { %1164 = vrot.lane.b32.xlu0 %v3925_v33, %s3469_s0 }
 0x1b7   :  { %1162 = vrot.lane.b32.xlu1 %v3905_v15, %s3469_s0 }
 0x1b9   :  { %1160 = vrot.lane.b32.xlu0 %v3888_v11, %s3469_s0 }
 0x1bb   :  { %1118 = vrot.lane.b32.xlu1 %v3927_v37, %s3468_s22 }
 0x1bd   :  { %1020 = vrot.lane.b32.xlu0 %v3925_v33, %s3470_s23 }
 0x1bf   :  { %1166 = vrot.lane.b32.xlu1 %v3927_v37, %s3469_s0 }
 0x1c1   :  { %1068 = vrot.lane.b32.xlu0 %v3925_v33, %s3471_s24 }
 0x1c3   :  { %1018 = vrot.lane.b32.xlu1 %v3905_v15, %s3470_s23 }
 0x1c4   :  { %v753_v38 = vpop.f32.mrf.mxu1 }
 0x1c5   :  { %v771_v0 = vmul.f32 %v3872_v57, %v753_v38  ;;  %1064 = vrot.lane.b32.xlu0 %v3888_v11, %s3471_s24  ;;  %v4025_v57 = vmul.f32 %v817_v54, %v790_v53 }
 0x1c6   :  { %v3409_v39 = vpop.f32.mrf.mxu1 }
 0x1c7   :  { %v784_v4 = vadd.f32 %v3877_v34, %v771_v0  ;;  %1066 = vrot.lane.b32.xlu1 %v3905_v15, %s3471_s24 }
 0x1c8   :  { %v756_v13 = vpop.f32.mrf.mxu1 }
 0x1c9   :  { %v791_v31 = vmax.f32 %v784_v4, 0.0  ;;  %924 = vrot.lane.b32.xlu0 %v3925_v33, %s3472_s25 }
 0x1ca   :  { %v3410_v40 = vpop.f32.mrf.mxu1 }
 0x1cb   :  { %v835_v41 = vmul.f32 %v821_v5, %v791_v31  ;;  %1022 = vrot.lane.b32.xlu1 %v3927_v37, %s3470_s23 }
 0x1cd   :  { %842 = vst.msk [vmem:[#allocation3 + $0x30] sm:$0xff] %vm62_vm0, %v835_v41  ;;  %972 = vrot.lane.b32.xlu0 %v3925_v33, %s3473_s26 }
 0x1cf   :  { %1070 = vrot.lane.b32.xlu1 %v3927_v37, %s3471_s24 }
 0x1d1   :  { %968 = vrot.lane.b32.xlu0 %v3888_v11, %s3473_s26 }
 0x1d3   :  { %922 = vrot.lane.b32.xlu1 %v3905_v15, %s3472_s25 }
 0x1d4   :  { %v849_v47 = vld [vmem:[#allocation3 + $0x30] sm:$0xff] }
 0x1d5   :  { %876 = vrot.lane.b32.xlu0 %v3925_v33, %s3474_s27  ;;  %857 = vst.msk [vmem:[#allocation2 + $0x30] sm:$0xff] %vm856_vm12, %v849_v47 }
 0x1d7   :  { %970 = vrot.lane.b32.xlu1 %v3905_v15, %s3473_s26 }
 0x1d9   :  { %878 = vrot.lane.b32.xlu0 %v3927_v37, %s3474_s27 }
 0x1db   :  { %926 = vrot.lane.b32.xlu1 %v3927_v37, %s3472_s25 }
 0x1dd   :  { %1216 = vrot.lane.b32.xlu0 %v3991_v49, %s3467_s17 }
 0x1df   :  { %974 = vrot.lane.b32.xlu1 %v3927_v37, %s3473_s26 }
 0x1e1   :  { %1120 = vrot.lane.b32.xlu0 %v3991_v49, %s3468_s22 }
 0x1e3   :  { %874 = vrot.lane.b32.xlu1 %v3905_v15, %s3474_s27  ;;  %v1209_v55 = vpop.permute.xlu1 %1208 }
 0x1e5   :  { %1168 = vrot.lane.b32.xlu0 %v3991_v49, %s3469_s0 }
 0x1e7   :  { %880 = vrot.lane.b32.xlu1 %v3991_v49, %s3474_s27  ;;  %v1113_v58 = vpop.permute.xlu1 %1112 }
 0x1e9   :  { %1024 = vrot.lane.b32.xlu0 %v3991_v49, %s3470_s23 }
 0x1eb   :  { %1220 = vrot.lane.b32.xlu1 %v849_v47, %s3467_s17  ;;  %v1017_v34 = vpop.permute.xlu1 %1016 }
 0x1ed   :  { %1072 = vrot.lane.b32.xlu0 %v3991_v49, %s3471_s24 }
 0x1ef   :  { %1124 = vrot.lane.b32.xlu1 %v849_v47, %s3468_s22  ;;  %v4045_v10 = vpop.permute.xlu1 %920 }
 0x1f1   :  { %928 = vrot.lane.b32.xlu0 %v3991_v49, %s3472_s25 }
 0x1f3   :  { %1172 = vrot.lane.b32.xlu1 %v849_v47, %s3469_s0  ;;  %v4051_v60 = vpop.permute.xlu1 %872 }
 0x1f5   :  { %976 = vrot.lane.b32.xlu0 %v3991_v49, %s3473_s26 }
 0x1f7   :  { %1028 = vrot.lane.b32.xlu1 %v849_v47, %s3470_s23  ;;  %v1211_v6 = vpop.permute.xlu1 %1210 }
 0x1f8   :  { %v1222_v2 = vsel %vm449_vm1, %v1209_v55, %v1211_v6 }
 0x1f9   :  { %1218 = vrot.lane.b32.xlu0 %v4025_v57, %s3467_s17  ;;  %v1334_v17 = vpack.c.bf16 %v1222_v2, %v1222_v2 }
 0x1fb   :  { %1076 = vrot.lane.b32.xlu1 %v849_v47, %s3471_s24  ;;  %v1345_v24 = vsel %vm574_vm2, %v1334_v17, 0 }
 0x1fd   :  { %1122 = vrot.lane.b32.xlu0 %v4025_v57, %s3468_s22 }
 0x1ff   :  { %932 = vrot.lane.b32.xlu1 %v849_v47, %s3472_s25 }
 0x201   :  { %1170 = vrot.lane.b32.xlu0 %v4025_v57, %s3469_s0 }
 0x203   :  { %980 = vrot.lane.b32.xlu1 %v849_v47, %s3473_s26 }
 0x205   :  { %1026 = vrot.lane.b32.xlu0 %v4025_v57, %s3470_s23 }
 0x207   :  { %884 = vrot.lane.b32.xlu1 %v849_v47, %s3474_s27 }
 0x209   :  { %1074 = vrot.lane.b32.xlu0 %v4025_v57, %s3471_s24 }
 0x20b   :  { %1544 = vperm.xlu1 %3465, %v1541_v59  }
 0x20d   :  { %930 = vrot.lane.b32.xlu0 %v4025_v57, %s3472_s25 }
 0x20f   :  { %1570 = vrot.lane.b32.xlu1 %v1555_v61, %s3467_s17 }
 0x211   :  { %978 = vrot.lane.b32.xlu0 %v4025_v57, %s3473_s26 }
 0x213   :  { %1574 = vrot.lane.b32.xlu1 %v1557_v63, %s3467_s17 }
 0x215   :  { %882 = vrot.lane.b32.xlu0 %v4025_v57, %s3474_s27 }
 0x217   :  { %1578 = vrot.lane.b32.xlu1 %v1559_v12, %s3467_s17 }
 0x219   :  { %1531 = vperm.xlu0 %3466, %v1528_v62  }
 0x21d   :  { %1568 = vrot.lane.b32.xlu0 %v1554_v7, %s3467_s17 }
 0x21f   :  { %v1213_v14 = vpop.permute.xlu0 %1212 }
 0x220   :  { %v1223_v19 = vsel %vm449_vm1, %v1211_v6, %v1213_v14 }
 0x221   :  { %v1215_v20 = vpop.permute.xlu1 %1214  ;;  %v1335_v46 = vpack.c.bf16 %v1223_v19, %v1223_v19  ;;  %1572 = vrot.lane.b32.xlu0 %v1556_v9, %s3467_s17 }
 0x222   :  { %v1224_v17 = vsel %vm449_vm1, %v1213_v14, %v1215_v20 }
 0x223   :  { %v4083_v23 = vpop.permute.xlu0 %1116  ;;  %3346 = vmatprep.subr.msk.bf16.mxu0 %vm574_vm2, %v1335_v46 }
 0x224   :  { %1372 = vmatpush1.bf16.msra.mxu0 %v1345_v24 }
 0x225   :  { %v1115_v25 = vpop.permute.xlu1 %1114  ;;  %1576 = vrot.lane.b32.xlu0 %v1558_v22, %s3467_s17  ;;  %v1336_v22 = vpack.c.bf16 %v1224_v17, %v1224_v17 }
 0x226   :  { %v1127_v29 = vsel %vm341_vm3, %v1115_v25, %v4083_v23  ;;  %v1126_v56 = vsel %vm341_vm3, %v1113_v58, %v1115_v25 }
 0x227   :  { %v1165_v27 = vpop.permute.xlu0 %1164 }
 0x229   :  { %v1163_v28 = vpop.permute.xlu1 %1162  ;;  %1580 = vrot.lane.b32.xlu0 %v1560_v26, %s3467_s17 }
 0x22a   :  { %v1175_v30 = vsel %vm395_vm4, %v1163_v28, %v1165_v27 }
 0x22b   :  { %v1161_v36 = vpop.permute.xlu0 %1160  ;;  %v1328_v18 = vpack.c.bf16 %v1175_v30, %v1127_v29 }
 0x22c   :  { %v1174_v38 = vsel %vm395_vm4, %v1161_v36, %v1163_v28  ;;  %v1351_v28 = vsel %vm574_vm2, %v1336_v22, 0 }
 0x22d   :  { %v1119_v0 = vpop.permute.xlu1 %1118  ;;  %1373 = vmatprep.subr.bf16.mxu0 %v1328_v18  ;;  %v1327_v39 = vpack.c.bf16 %v1174_v38, %v1126_v56 }
 0x22f   :  { %v4097_v4 = vpop.permute.xlu0 %1020  ;;  %1374 = vmatpush1.bf16.msra.mxu0 %v1327_v39 }
 0x231   :  { %v1167_v5 = vpop.permute.xlu1 %1166 }
 0x232   :  { %v1176_v36 = vsel %vm395_vm4, %v1165_v27, %v1167_v5 }
 0x233   :  { %v4099_v13 = vpop.permute.xlu0 %1068 }
 0x235   :  { %v1019_v31 = vpop.permute.xlu1 %1018 }
 0x236   :  { %v1030_v42 = vsel %vm239_vm5, %v1017_v34, %v1019_v31  ;;  %v1031_v43 = vsel %vm239_vm5, %v1019_v31, %v4097_v4 }
 0x237   :  { %v1065_v40 = vpop.permute.xlu0 %1064 }
 0x239   :  { %v1067_v41 = vpop.permute.xlu1 %1066 }
 0x23a   :  { %v1078_v47 = vsel %vm288_vm6, %v1065_v40, %v1067_v41  ;;  %v1079_v35 = vsel %vm288_vm6, %v1067_v41, %v4099_v13 }
 0x23b   :  { %v4107_v48 = vpop.permute.xlu0 %924  ;;  %v1321_v50 = vpack.c.bf16 %v1079_v35, %v1031_v43  ;;  %v1320_v51 = vpack.c.bf16 %v1078_v47, %v1030_v42 }
 0x23d   :  { %v1023_v53 = vpop.permute.xlu1 %1022  ;;  %1375 = vmatprep.subr.bf16.mxu0 %v1321_v50 }
 0x23e   :  { %1376 = vmatpush1.bf16.msra.mxu0 %v1320_v51  ;;  %v1032_v43 = vsel %vm239_vm5, %v4097_v4, %v1023_v53 }
 0x23f   :  { %v4109_v54 = vpop.permute.xlu0 %972 }
 0x241   :  { %v1071_v55 = vpop.permute.xlu1 %1070 }
 0x243   :  { %v969_v58 = vpop.permute.xlu0 %968 }
 0x245   :  { %v923_v34 = vpop.permute.xlu1 %922 }
 0x246   :  { %v934_v62 = vsel %vm141_vm7, %v4045_v10, %v923_v34  ;;  %v935_v63 = vsel %vm141_vm7, %v923_v34, %v4107_v48 }
 0x247   :  { %v4111_v59 = vpop.permute.xlu0 %876 }
 0x249   :  { %v971_v61 = vpop.permute.xlu1 %970 }
 0x24a   :  { %v982_v6 = vsel %vm190_vm8, %v969_v58, %v971_v61  ;;  %v983_v7 = vsel %vm190_vm8, %v971_v61, %v4109_v54 }
 0x24b   :  { %v4120_v12 = vpop.permute.xlu0 %878  ;;  %v1314_v2 = vpack.c.bf16 %v983_v7, %v935_v63  ;;  %v1313_v9 = vpack.c.bf16 %v982_v6, %v934_v62 }
 0x24c   :  { %v888_v6 = vsel %vm92_vm9, %v4111_v59, %v4120_v12 }
 0x24d   :  { %v927_v19 = vpop.permute.xlu1 %926  ;;  %1377 = vmatprep.subr.bf16.mxu0 %v1314_v2 }
 0x24e   :  { %1378 = vmatpush1.bf16.msra.mxu0 %v1313_v9  ;;  %v936_v61 = vsel %vm141_vm7, %v4107_v48, %v927_v19 }
 0x24f   :  { %v1217_v46 = vpop.permute.xlu0 %1216 }
 0x250   :  { %v1225_v10 = vsel %vm449_vm1, %v1215_v20, %v1217_v46 }
 0x251   :  { %v975_v24 = vpop.permute.xlu1 %974  ;;  %v1337_v25 = vpack.c.bf16 %v1225_v10, %v1225_v10 }
 0x252   :  { %v984_v58 = vsel %vm190_vm8, %v4109_v54, %v975_v24 }
 0x253   :  { %v4124_v26 = vpop.permute.xlu0 %1120  ;;  %3348 = vmatprep.subr.msk.bf16.mxu1 %vm574_vm2, %v1337_v25  ;;  %v1315_v54 = vpack.c.bf16 %v984_v58, %v936_v61 }
 0x254   :  { %1413 = vmatpush1.bf16.msra.mxu1 %v1351_v28  ;;  %v1129_v38 = vsel %vm341_vm3, %v1119_v0, %v4124_v26 }
 0x255   :  { %v875_v29 = vpop.permute.xlu1 %874 }
 0x256   :  { %v886_v14 = vsel %vm92_vm9, %v4051_v60, %v875_v29  ;;  %v887_v30 = vsel %vm92_vm9, %v875_v29, %v4111_v59  ;;  %v1128_v60 = vsel %vm341_vm3, %v4083_v23, %v1119_v0  ;;  %v1080_v23 = vsel %vm288_vm6, %v4099_v13, %v1071_v55 }
 0x257   :  { %v4133_v18 = vpop.permute.xlu0 %1168  ;;  %v1307_v20 = vpack.c.bf16 %v887_v30, %v3905_v15  ;;  %v1306_v56 = vpack.c.bf16 %v886_v14, %v3888_v11  ;;  %v1329_v27 = vpack.c.bf16 %v1176_v36, %v1128_v60  ;;  %v4148_v15 = vld [vmem:[%s4956_s4] sm:$0xf]  ;;  %v1322_v50 = vpack.c.bf16 %v1080_v23, %v1032_v43 }
 0x258   :  { %v1177_v39 = vsel %vm395_vm4, %v1167_v5, %v4133_v18 }
 0x259   :  { %v4143_v31 = vpop.permute.xlu1 %880  ;;  %1379 = vmatprep.subr.bf16.mxu0 %v1307_v20  ;;  %v1330_v40 = vpack.c.bf16 %v1177_v39, %v1129_v38 }
 0x25a   :  { %1380 = vmatpush1.bf16.msra.mxu0 %v1306_v56  ;;  %v889_v4 = vsel %vm92_vm9, %v4120_v12, %v4143_v31 }
 0x25b   :  { %v4150_v11 = vpop.permute.xlu0 %1024  ;;  %1414 = vmatprep.subr.bf16.mxu1 %v1330_v40  ;;  %v1309_v2 = vpack.c.bf16 %v889_v4, %v3927_v37 }
 0x25c   :  { %1415 = vmatpush1.bf16.msra.mxu1 %v1329_v27  ;;  %v1033_v5 = vsel %vm239_vm5, %v1023_v53, %v4150_v11 }
 0x25d   :  { %v1221_v41 = vpop.permute.xlu1 %1220  ;;  %3347 = vmatmul.mubr.msk.bf16.vlgmr.msra.gmra.mxu0 %vm570_vm10, %v4148_v15 }
 0x25e   :  { %1241 = vst.msk [vmem:[#allocation2 + $0x1f0] sm:$0xff] %vm856_vm12, %v1221_v41  ;;  %1479 = vmatprep.mubr.bf16.mxu0 %v3475_v8 }
 0x25f   :  { %v4158_v0 = vpop.permute.xlu0 %1072 }
 0x260   :  { %v1081_v42 = vsel %vm288_vm6, %v1071_v55, %v4158_v0 }
 0x261   :  { %v1125_v47 = vpop.permute.xlu1 %1124  ;;  %v1323_v35 = vpack.c.bf16 %v1081_v42, %v1033_v5 }
 0x262   :  { %1145 = vst.msk [vmem:[#allocation2 + $0x180] sm:$0xff] %vm856_vm12, %v1125_v47 }
 0x263   :  { %v4167_v51 = vpop.permute.xlu0 %928  ;;  %1416 = vmatprep.subr.bf16.mxu1 %v1323_v35 }
 0x264   :  { %1417 = vmatpush1.bf16.msra.mxu1 %v1322_v50  ;;  %v937_v53 = vsel %vm141_vm7, %v927_v19, %v4167_v51 }
 0x265   :  { %v1173_v13 = vpop.permute.xlu1 %1172  ;;  %v1305_v22 = vld [vmem:[#allocation2 + $0x1f0] sm:$0xff] }
 0x266   :  { %1193 = vst.msk [vmem:[#allocation2 + $0x1b8] sm:$0xff] %vm856_vm12, %v1173_v13  ;;  %v1340_v37 = vpack.c.bf16 %v1305_v22, %v1305_v22 }
 0x267   :  { %v4172_v34 = vpop.permute.xlu0 %976 }
 0x268   :  { %v985_v55 = vsel %vm190_vm8, %v975_v24, %v4172_v34  ;;  %v1308_v24 = vpack.c.bf16 %v888_v6, %v3925_v33  ;;  %v1363_v33 = vsel %vm574_vm2, %v1340_v37, 0 }
 0x269   :  { %v1029_v62 = vpop.permute.xlu1 %1028  ;;  %v1316_v63 = vpack.c.bf16 %v985_v55, %v937_v53  ;;  %v1291_v38 = vld [vmem:[#allocation2 + $0x180] sm:$0xff] }
 0x26a   :  { %1049 = vst.msk [vmem:[#allocation2 + $0x110] sm:$0xff] %vm856_vm12, %v1029_v62 }
 0x26b   :  { %v1219_v7 = vpop.permute.xlu0 %1218  ;;  %1418 = vmatprep.subr.bf16.mxu1 %v1316_v63 }
 0x26c   :  { %v1226_v9 = vsel %vm449_vm1, %v1217_v46, %v1219_v7  ;;  %v1227_v17 = vsel %vm449_vm1, %v1219_v7, %v1221_v41  ;;  %1419 = vmatpush1.bf16.msra.mxu1 %v1315_v54 }
 0x26d   :  { %v1077_v48 = vpop.permute.xlu1 %1076  ;;  %1420 = vmatprep.subr.bf16.mxu1 %v1309_v2  ;;  %v1339_v19 = vpack.c.bf16 %v1227_v17, %v1227_v17  ;;  %v1338_v10 = vpack.c.bf16 %v1226_v9, %v1226_v9  ;;  %v1298_v29 = vld [vmem:[#allocation2 + $0x1b8] sm:$0xff] }
 0x26e   :  { %1097 = vst.msk [vmem:[#allocation2 + $0x148] sm:$0xff] %vm856_vm12, %v1077_v48  ;;  %v1333_v39 = vpack.c.bf16 %v1298_v29, %v1291_v38 }
 0x26f   :  { %v1123_v25 = vpop.permute.xlu0 %1122  ;;  %3350 = vmatprep.subr.msk.bf16.mxu0 %vm574_vm2, %v1339_v19  ;;  %v1357_v59 = vsel %vm574_vm2, %v1338_v10, 0 }
 0x270   :  { %1421 = vmatpush1.bf16.msra.mxu1 %v1308_v24  ;;  %1454 = vmatpush1.bf16.msra.mxu0 %v1357_v59  ;;  %v1130_v46 = vsel %vm341_vm3, %v4124_v26, %v1123_v25  ;;  %v1131_v14 = vsel %vm341_vm3, %v1123_v25, %v1125_v47 }
 0x271   :  { %v933_v12 = vpop.permute.xlu1 %932  ;;  %3411 = vmatprep.subr.bf16.mxu1 %v3476_v21  ;;  %v1277_v27 = vld [vmem:[#allocation2 + $0x110] sm:$0xff] }
 0x272   :  { %953 = vst.msk [vmem:[#allocation2 + $0xa0] sm:$0xff] %vm856_vm12, %v933_v12 }
 0x273   :  { %v1171_v28 = vpop.permute.xlu0 %1170  ;;  %3349 = vmatmul.mubr.msk.bf16.vlgmr.msra.gmra.mxu1 %vm570_vm10, %v4148_v15 }
 0x274   :  { %v1178_v30 = vsel %vm395_vm4, %v4133_v18, %v1171_v28  ;;  %v1179_v36 = vsel %vm395_vm4, %v1171_v28, %v1173_v13  ;;  %3412 = vmatpush3.bf16.msra.mxu1 %v1363_v33  ;;  %3421 = vmatprep.mubr.msk.bf16.mxu1 %vm3477_vm11, %v3476_v21 }
 0x275   :  { %v981_v20 = vpop.permute.xlu1 %980  ;;  %v1332_v26 = vpack.c.bf16 %v1179_v36, %v1131_v14  ;;  %3413 = vmatprep.subr.bf16.mxu1 %v3476_v21  ;;  %v1331_v56 = vpack.c.bf16 %v1178_v30, %v1130_v46  ;;  %v1284_v40 = vld [vmem:[#allocation2 + $0x148] sm:$0xff] }
 0x276   :  { %1001 = vst.msk [vmem:[#allocation2 + $0xd8] sm:$0xff] %vm856_vm12, %v981_v20  ;;  %v1326_v41 = vpack.c.bf16 %v1284_v40, %v1277_v27 }
 0x277   :  { %v1027_v60 = vpop.permute.xlu0 %1026  ;;  %1455 = vmatprep.subr.bf16.mxu0 %v1332_v26 }
 0x278   :  { %1456 = vmatpush1.bf16.msra.mxu0 %v1331_v56  ;;  %3414 = vmatpush3.bf16.msra.mxu1 %v1333_v39  ;;  %v1034_v5 = vsel %vm239_vm5, %v4150_v11, %v1027_v60  ;;  %v1035_v42 = vsel %vm239_vm5, %v1027_v60, %v1029_v62  ;;  %v1249_v11 = vld [vmem:[#allocation2 + $0x30] sm:$0xff] }
 0x279   :  { %v885_v18 = vpop.permute.xlu1 %884  ;;  %3415 = vmatprep.subr.bf16.mxu1 %v3476_v21  ;;  %v1263_v13 = vld [vmem:[#allocation2 + $0xa0] sm:$0xff] }
 0x27a   :  { %905 = vst.msk [vmem:[#allocation2 + $0x68] sm:$0xff] %vm856_vm12, %v885_v18 }
 0x27b   :  { %v1075_v23 = vpop.permute.xlu0 %1074 }
 0x27c   :  { %v1082_v43 = vsel %vm288_vm6, %v4158_v0, %v1075_v23  ;;  %v1083_v47 = vsel %vm288_vm6, %v1075_v23, %v1077_v48  ;;  %3416 = vmatpush3.bf16.msra.mxu1 %v1326_v41 }
 0x27d   :  { %v1325_v35 = vpack.c.bf16 %v1083_v47, %v1035_v42  ;;  %3417 = vmatprep.subr.bf16.mxu1 %v3476_v21  ;;  %v1324_v50 = vpack.c.bf16 %v1082_v43, %v1034_v5  ;;  %v1270_v58 = vld [vmem:[#allocation2 + $0xd8] sm:$0xff] }
 0x27e   :  { %v1319_v4 = vpack.c.bf16 %v1270_v58, %v1263_v13 }
 0x27f   :  { %v931_v53 = vpop.permute.xlu0 %930  ;;  %1457 = vmatprep.subr.bf16.mxu0 %v1325_v35 }
 0x280   :  { %1458 = vmatpush1.bf16.msra.mxu0 %v1324_v50  ;;  %3418 = vmatpush3.bf16.msra.mxu1 %v1319_v4  ;;  %v938_v62 = vsel %vm141_vm7, %v4167_v51, %v931_v53  ;;  %v939_v63 = vsel %vm141_vm7, %v931_v53, %v933_v12 }
 0x281   :  { %3419 = vmatprep.subr.bf16.mxu1 %v3476_v21  ;;  %v1256_v55 = vld [vmem:[#allocation2 + $0x68] sm:$0xff] }
 0x282   :  { %v1312_v61 = vpack.c.bf16 %v1256_v55, %v1249_v11 }
 0x283   :  { %v979_v0 = vpop.permute.xlu0 %978 }
 0x284   :  { %v986_v54 = vsel %vm190_vm8, %v4172_v34, %v979_v0  ;;  %v987_v6 = vsel %vm190_vm8, %v979_v0, %v981_v20  ;;  %3420 = vmatpush3.bf16.msra.mxu1 %v1312_v61 }
 0x285   :  { %v1318_v7 = vpack.c.bf16 %v987_v6, %v939_v63  ;;  %v1317_v2 = vpack.c.bf16 %v986_v54, %v938_v62 }
 0x286   :  { %v4238_v19 = vpop.permute.xlu1 %1544 }
 0x287   :  { %v883_v9 = vpop.permute.xlu0 %882  ;;  %1459 = vmatprep.subr.bf16.mxu0 %v1318_v7  ;;  %3422 = vmatmul.mubr.msk.bf16.vlgmr.msra.gmra.mxu1 %vm570_vm10, %v4148_v15 }
 0x288   :  { %v890_v17 = vsel %vm92_vm9, %v4143_v31, %v883_v9  ;;  %v891_v51 = vsel %vm92_vm9, %v883_v9, %v885_v18  ;;  %1460 = vmatpush1.bf16.msra.mxu0 %v1317_v2  ;;  %2306 = vmatprep.mubr.bf16.mxu1 %v3475_v8 }
 0x289   :  { %v1311_v34 = vpack.c.bf16 %v891_v51, %v4025_v57  ;;  %v1310_v22 = vpack.c.bf16 %v890_v17, %v3991_v49  ;;  %v4244_v49 = vld [vmem:[%s4957_s8] sm:$0x7f] }
 0x28a   :  { %v1571_v10 = vpop.permute.xlu1 %1570  ;;  %v1614_v33 = vrot.slane %v4244_v49, %v3875_v32  ;;  %v1618_v20 = vrot.slane %v4244_v49, %v3897_v1  ;;  %v1622_v50 = vrot.slane %v4244_v49, %v3912_v16  ;;  %v1626_v53 = vrot.slane %v4244_v49, %v3916_v44 }
 0x28b   :  { %1461 = vmatprep.subr.bf16.mxu0 %v1311_v34 }
 0x28c   :  { %1462 = vmatpush1.bf16.msra.mxu0 %v1310_v22 }
 0x28e   :  { %v1575_v60 = vpop.permute.xlu1 %1574 }
 0x28f   :  { %3351 = vmatmul.mubr.msk.bf16.vlgmr.msra.gmra.mxu0 %vm570_vm10, %v4148_v15 }
 0x290   :  { %2265 = vmatprep.mubr.bf16.mxu0 %v3475_v8 }
 0x292   :  { %v1579_v2 = vpop.permute.xlu1 %1578 }
 0x294   :  { %v4236_v48 = vpop.permute.xlu0 %1531 }
 0x298   :  { %v1569_v31 = vpop.permute.xlu0 %1568 }
 0x299   :  { %v1582_v57 = vsel %vm449_vm1, %v1569_v31, %v1571_v10 }
 0x29c   :  { %v1573_v12 = vpop.permute.xlu0 %1572 }
 0x29d   :  { %v1583_v14 = vsel %vm449_vm1, %v1571_v10, %v1573_v12  ;;  %v1584_v23 = vsel %vm449_vm1, %v1573_v12, %v1575_v60 }
 0x2a0   :  { %v1577_v27 = vpop.permute.xlu0 %1576 }
 0x2a1   :  { %v1585_v43 = vsel %vm449_vm1, %v1575_v60, %v1577_v27  ;;  %v1586_v31 = vsel %vm449_vm1, %v1577_v27, %v1579_v2 }
 0x2a4   :  { %v1581_v34 = vpop.permute.xlu0 %1580 }
 0x31d   :  { %v1399_v24 = vpop.f32.mrf.mxu0 }
 0x31e   :  { %v1534_v25 = vmul.f32 %v4236_v48, %v1399_v24 }
 0x31f   :  { %v1401_v59 = vpop.f32.mrf.mxu0 }
 0x320   :  { %v1547_v15 = vadd.f32 %v4238_v19, %v1534_v25  ;;  %v1535_v37 = vmul.f32 %v4236_v48, %v1401_v59  ;;  %v1587_v25 = vsel %vm449_vm1, %v1579_v2, %v1581_v34 }
 0x321   :  { %v1403_v46 = vpop.f32.mrf.mxu0 }
 0x322   :  { %v1548_v28 = vadd.f32 %v4238_v19, %v1535_v37  ;;  %v1595_v29 = vadd.f32 %v1582_v57, %v1547_v15  ;;  %v1630_v37 = vrot.slane %v4244_v49, %v3978_v45 }
 0x323   :  { %v1404_v30 = vpop.f32.mrf.mxu0 }
 0x324   :  { %v1602_v36 = vmax.f32 %v1595_v29, 0.0  ;;  %v1596_v26 = vadd.f32 %v1583_v14, %v1548_v28  ;;  %v1634_v28 = vrot.slane %v4244_v49, %v4015_v52  ;;  %v1638_v14 = vrot.slane %v4244_v49, %v3952_v3 }
 0x326   :  { %v1646_v56 = vmul.f32 %v1614_v33, %v1602_v36  ;;  %v1603_v38 = vmax.f32 %v1596_v26, 0.0 }
 0x328   :  { %v1647_v39 = vmul.f32 %v1618_v20, %v1603_v38  ;;  %1660 = vrot.lane.b32.xlu1 %v1646_v56, %s3478_s30 }
 0x32a   :  { %1662 = vrot.lane.b32.xlu0 %v1647_v39, %s3478_s30 }
 0x333   :  { %v1440_v40 = vpop.f32.mrf.mxu1 }
 0x334   :  { %v1536_v18 = vmul.f32 %v4236_v48, %v1440_v40 }
 0x335   :  { %v1442_v41 = vpop.f32.mrf.mxu1 }
 0x336   :  { %v1549_v5 = vadd.f32 %v4238_v19, %v1536_v18  ;;  %v1537_v42 = vmul.f32 %v4236_v48, %v1442_v41 }
 0x337   :  { %v1444_v47 = vpop.f32.mrf.mxu1 }
 0x338   :  { %v1550_v35 = vadd.f32 %v4238_v19, %v1537_v42  ;;  %v1597_v13 = vadd.f32 %v1584_v23, %v1549_v5 }
 0x339   :  { %v1445_v58 = vpop.f32.mrf.mxu1 }
 0x33a   :  { %v1604_v4 = vmax.f32 %v1597_v13, 0.0  ;;  %v1598_v11 = vadd.f32 %v1585_v43, %v1550_v35  ;;  %v1957_v35 = vld [vmem:[%s4949_s9 + $0x38] sm:$0xff] }
 0x33c   :  { %v1648_v55 = vmul.f32 %v1622_v50, %v1604_v4  ;;  %v1605_v61 = vmax.f32 %v1598_v11, 0.0  ;;  %v3361_v50 = vld [vmem:[%s4950_s2 + $0x8] sm:$0xff] }
 0x33d   :  { %v3362_v4 = vld [vmem:[%s4951_s3 + $0x8] sm:$0xff] }
 0x33e   :  { %v1649_v0 = vmul.f32 %v1626_v53, %v1605_v61  ;;  %1664 = vrot.lane.b32.xlu1 %v1648_v55, %s3478_s30 }
 0x340   :  { %1666 = vrot.lane.b32.xlu0 %v1649_v0, %s3478_s30 }
 0x347   :  { %v1522_v62 = vpop.f32.mrf.mxu1 }
 0x348   :  { %v1540_v6 = vmul.f32 %v4236_v48, %v1522_v62 }
 0x349   :  { %v3423_v63 = vpop.f32.mrf.mxu1 }
 0x34a   :  { %v1553_v17 = vadd.f32 %v4238_v19, %v1540_v6 }
 0x34b   :  { %v1525_v54 = vpop.f32.mrf.mxu1 }
 0x34c   :  { %v1601_v57 = vadd.f32 %v1581_v34, %v1553_v17 }
 0x34d   :  { %v3424_v7 = vpop.f32.mrf.mxu1 }
 0x34f   :  { %v1481_v9 = vpop.f32.mrf.mxu0 }
 0x350   :  { %v1538_v51 = vmul.f32 %v4236_v48, %v1481_v9 }
 0x351   :  { %v1483_v22 = vpop.f32.mrf.mxu0 }
 0x352   :  { %v1551_v10 = vadd.f32 %v4238_v19, %v1538_v51  ;;  %v1539_v24 = vmul.f32 %v4236_v48, %v1483_v22  ;;  %v1608_v48 = vmax.f32 %v1601_v57, 0.0 }
 0x353   :  { %v1485_v59 = vpop.f32.mrf.mxu0 }
 0x354   :  { %v1552_v15 = vadd.f32 %v4238_v19, %v1539_v24  ;;  %v1599_v12 = vadd.f32 %v1586_v31, %v1551_v10  ;;  %v1652_v19 = vmul.f32 %v1638_v14, %v1608_v48 }
 0x355   :  { %v1486_v46 = vpop.f32.mrf.mxu0 }
 0x356   :  { %v1600_v33 = vadd.f32 %v1587_v25, %v1552_v15  ;;  %v1606_v29 = vmax.f32 %v1599_v12, 0.0 }
 0x358   :  { %v1607_v30 = vmax.f32 %v1600_v33, 0.0  ;;  %v1650_v36 = vmul.f32 %v1630_v37, %v1606_v29 }
 0x35a   :  { %v1651_v20 = vmul.f32 %v1634_v28, %v1607_v30  ;;  %1668 = vrot.lane.b32.xlu1 %v1650_v36, %s3478_s30 }
 0x35c   :  { %1670 = vrot.lane.b32.xlu0 %v1651_v20, %s3478_s30 }
 0x35e   :  { %1672 = vrot.lane.b32.xlu1 %v1652_v19, %s3478_s30 }
 0x39a   :  { %v1661_v26 = vpop.permute.xlu1 %1660 }
 0x39b   :  { %1689 = vst.msk [vmem:[%s4949_s9] sm:$0xff] %vm1688_vm13, %v1661_v26 }
 0x39c   :  { %v1663_v49 = vpop.permute.xlu0 %1662 }
 0x39d   :  { %v4291_v56 = vsel %vm1674_vm14, %v1661_v26, %v1663_v49 }
 0x39e   :  { %1690 = vst [vmem:[%s4949_s9 + $0x8] sm:$0xff] %v4291_v56 }
 0x3a2   :  { %v4300_v38 = vld [vmem:[%s4949_s9] sm:$0xff] }
 0x3a3   :  { %1966 = vrot.lane.b32.xlu1 %v4300_v38, %s3468_s22  ;;  %2072 = vrot.lane.b32.xlu0 %v4300_v38, %s3467_s17 }
 0x3a7   :  { %1868 = vrot.lane.b32.xlu1 %v4300_v38, %s3470_s23  ;;  %2019 = vrot.lane.b32.xlu0 %v4300_v38, %s3469_s0 }
 0x3ab   :  { %1772 = vrot.lane.b32.xlu1 %v4300_v38, %s3472_s25  ;;  %1916 = vrot.lane.b32.xlu0 %v4300_v38, %s3471_s24 }
 0x3af   :  { %1724 = vrot.lane.b32.xlu1 %v4300_v38, %s3474_s27  ;;  %1820 = vrot.lane.b32.xlu0 %v4300_v38, %s3473_s26 }
 0x3b0   :  { %v1665_v39 = vpop.permute.xlu1 %1664 }
 0x3b1   :  { %v4319_v60 = vsel %vm1674_vm14, %v1663_v49, %v1665_v39 }
 0x3b2   :  { %1691 = vst [vmem:[%s4949_s9 + $0x10] sm:$0xff] %v4319_v60  ;;  %v1667_v40 = vpop.permute.xlu0 %1666 }
 0x3b3   :  { %v4326_v18 = vsel %vm1674_vm14, %v1665_v39, %v1667_v40  ;;  %2074 = vrot.lane.b32.xlu1 %v4291_v56, %s3467_s17  ;;  %2076 = vrot.lane.b32.xlu0 %v4319_v60, %s3467_s17 }
 0x3b4   :  { %1692 = vst [vmem:[%s4949_s9 + $0x18] sm:$0xff] %v4326_v18 }
 0x3b7   :  { %1968 = vrot.lane.b32.xlu1 %v4291_v56, %s3468_s22  ;;  %1970 = vrot.lane.b32.xlu0 %v4319_v60, %s3468_s22 }
 0x3bb   :  { %2021 = vrot.lane.b32.xlu1 %v4291_v56, %s3469_s0  ;;  %2023 = vrot.lane.b32.xlu0 %v4319_v60, %s3469_s0 }
 0x3bf   :  { %1870 = vrot.lane.b32.xlu1 %v4291_v56, %s3470_s23  ;;  %1872 = vrot.lane.b32.xlu0 %v4319_v60, %s3470_s23 }
 0x3c3   :  { %1918 = vrot.lane.b32.xlu1 %v4291_v56, %s3471_s24  ;;  %1920 = vrot.lane.b32.xlu0 %v4319_v60, %s3471_s24 }
 0x3c7   :  { %1774 = vrot.lane.b32.xlu1 %v4291_v56, %s3472_s25  ;;  %1776 = vrot.lane.b32.xlu0 %v4319_v60, %s3472_s25 }
 0x3cb   :  { %1822 = vrot.lane.b32.xlu1 %v4291_v56, %s3473_s26  ;;  %1824 = vrot.lane.b32.xlu0 %v4319_v60, %s3473_s26 }
 0x3cc   :  { %v1669_v27 = vpop.permute.xlu1 %1668 }
 0x3cd   :  { %v4361_v41 = vsel %vm1674_vm14, %v1667_v40, %v1669_v27 }
 0x3ce   :  { %1693 = vst [vmem:[%s4949_s9 + $0x20] sm:$0xff] %v4361_v41  ;;  %v1671_v23 = vpop.permute.xlu0 %1670 }
 0x3cf   :  { %v4368_v5 = vsel %vm1674_vm14, %v1669_v27, %v1671_v23  ;;  %1726 = vrot.lane.b32.xlu1 %v4291_v56, %s3474_s27  ;;  %1728 = vrot.lane.b32.xlu0 %v4319_v60, %s3474_s27 }
 0x3d0   :  { %1694 = vst [vmem:[%s4949_s9 + $0x28] sm:$0xff] %v4368_v5  ;;  %v1673_v42 = vpop.permute.xlu1 %1672 }
 0x3d1   :  { %v1680_v43 = vsel %vm1674_vm14, %v1671_v23, %v1673_v42 }
 0x3d2   :  { %1695 = vst.msk [vmem:[%s4949_s9 + $0x30] sm:$0xff] %vm62_vm0, %v1680_v43 }
 0x3d3   :  { %2080 = vrot.lane.b32.xlu1 %v4361_v41, %s3467_s17  ;;  %2078 = vrot.lane.b32.xlu0 %v4326_v18, %s3467_s17 }
 0x3d7   :  { %1974 = vrot.lane.b32.xlu1 %v4361_v41, %s3468_s22  ;;  %1972 = vrot.lane.b32.xlu0 %v4326_v18, %s3468_s22 }
 0x3d9   :  { %v2062_v47 = vld [vmem:[%s4949_s9 + $0x30] sm:$0xff] }
 0x3da   :  { %1709 = vst.msk [vmem:[#allocation2 + $0x30] sm:$0xff] %vm62_vm0, %v2062_v47 }
 0x3db   :  { %2027 = vrot.lane.b32.xlu1 %v4361_v41, %s3469_s0  ;;  %2025 = vrot.lane.b32.xlu0 %v4326_v18, %s3469_s0 }
 0x3df   :  { %1876 = vrot.lane.b32.xlu1 %v4361_v41, %s3470_s23  ;;  %1874 = vrot.lane.b32.xlu0 %v4326_v18, %s3470_s23 }
 0x3e3   :  { %1924 = vrot.lane.b32.xlu1 %v4361_v41, %s3471_s24  ;;  %1922 = vrot.lane.b32.xlu0 %v4326_v18, %s3471_s24 }
 0x3e7   :  { %1780 = vrot.lane.b32.xlu1 %v4361_v41, %s3472_s25  ;;  %1778 = vrot.lane.b32.xlu0 %v4326_v18, %s3472_s25 }
 0x3eb   :  { %1828 = vrot.lane.b32.xlu1 %v4361_v41, %s3473_s26  ;;  %1826 = vrot.lane.b32.xlu0 %v4326_v18, %s3473_s26 }
 0x3ef   :  { %1732 = vrot.lane.b32.xlu1 %v4361_v41, %s3474_s27  ;;  %1730 = vrot.lane.b32.xlu0 %v4326_v18, %s3474_s27 }
 0x3f3   :  { %2084 = vrot.lane.b32.xlu1 %v2062_v47, %s3467_s17  ;;  %2082 = vrot.lane.b32.xlu0 %v4368_v5, %s3467_s17 }
 0x3f7   :  { %1978 = vrot.lane.b32.xlu1 %v2062_v47, %s3468_s22  ;;  %1976 = vrot.lane.b32.xlu0 %v4368_v5, %s3468_s22 }
 0x3fb   :  { %2031 = vrot.lane.b32.xlu1 %v2062_v47, %s3469_s0  ;;  %2029 = vrot.lane.b32.xlu0 %v4368_v5, %s3469_s0 }
 0x3ff   :  { %1880 = vrot.lane.b32.xlu1 %v2062_v47, %s3470_s23  ;;  %1878 = vrot.lane.b32.xlu0 %v4368_v5, %s3470_s23 }
 0x403   :  { %1928 = vrot.lane.b32.xlu1 %v2062_v47, %s3471_s24  ;;  %1926 = vrot.lane.b32.xlu0 %v4368_v5, %s3471_s24 }
 0x407   :  { %1784 = vrot.lane.b32.xlu1 %v2062_v47, %s3472_s25  ;;  %1782 = vrot.lane.b32.xlu0 %v4368_v5, %s3472_s25 }
 0x40b   :  { %1832 = vrot.lane.b32.xlu1 %v2062_v47, %s3473_s26  ;;  %1830 = vrot.lane.b32.xlu0 %v4368_v5, %s3473_s26 }
 0x40f   :  { %1736 = vrot.lane.b32.xlu1 %v2062_v47, %s3474_s27  ;;  %1734 = vrot.lane.b32.xlu0 %v4368_v5, %s3474_s27 }
 0x413   :  { %1980 = vrot.lane.b32.xlu1 %v1957_v35, %s3468_s22  ;;  %2086 = vrot.lane.b32.xlu0 %v1957_v35, %s3467_s17 }
 0x415   :  { %v1967_v13 = vpop.permute.xlu1 %1966  ;;  %v2073_v58 = vpop.permute.xlu0 %2072 }
 0x417   :  { %2400 = vperm.xlu1 %3465, %v3361_v50   ;;  %2033 = vrot.lane.b32.xlu0 %v1957_v35, %s3469_s0 }
 0x419   :  { %v1869_v53 = vpop.permute.xlu1 %1868  ;;  %v2020_v11 = vpop.permute.xlu0 %2019 }
 0x41b   :  { %2414 = vperm.xlu0 %3466, %v3362_v4  }
 0x41d   :  { %v1773_v55 = vpop.permute.xlu1 %1772  ;;  %v1917_v61 = vpop.permute.xlu0 %1916 }
 0x421   :  { %v1725_v0 = vpop.permute.xlu1 %1724  ;;  %v1821_v62 = vpop.permute.xlu0 %1820 }
 0x425   :  { %v2075_v63 = vpop.permute.xlu1 %2074  ;;  %v2077_v54 = vpop.permute.xlu0 %2076 }
 0x426   :  { %v2088_v6 = vsel %vm449_vm1, %v2073_v58, %v2075_v63  ;;  %v2089_v7 = vsel %vm449_vm1, %v2075_v63, %v2077_v54 }
 0x427   :  { %v2203_v2 = vpack.c.bf16 %v2089_v7, %v2089_v7  ;;  %v2202_v9 = vpack.c.bf16 %v2088_v6, %v2088_v6 }
 0x429   :  { %v1969_v17 = vpop.permute.xlu1 %1968  ;;  %v4457_v51 = vpop.permute.xlu0 %1970  ;;  %3354 = vmatprep.subr.msk.bf16.mxu0 %vm574_vm2, %v2203_v2  ;;  %v2213_v34 = vsel %vm574_vm2, %v2202_v9, 0 }
 0x42a   :  { %2240 = vmatpush1.bf16.msra.mxu0 %v2213_v34  ;;  %v1982_v10 = vsel %vm341_vm3, %v1967_v13, %v1969_v17  ;;  %v1983_v25 = vsel %vm341_vm3, %v1969_v17, %v4457_v51 }
 0x42d   :  { %v2022_v22 = vpop.permute.xlu1 %2021  ;;  %v2024_v31 = vpop.permute.xlu0 %2023 }
 0x42e   :  { %v2035_v24 = vsel %vm395_vm4, %v2020_v11, %v2022_v22  ;;  %v2036_v59 = vsel %vm395_vm4, %v2022_v22, %v2024_v31 }
 0x42f   :  { %v2196_v57 = vpack.c.bf16 %v2036_v59, %v1983_v25  ;;  %v2195_v15 = vpack.c.bf16 %v2035_v24, %v1982_v10 }
 0x431   :  { %v1871_v37 = vpop.permute.xlu1 %1870  ;;  %v1873_v12 = vpop.permute.xlu0 %1872  ;;  %2241 = vmatprep.subr.bf16.mxu0 %v2196_v57 }
 0x432   :  { %2242 = vmatpush1.bf16.msra.mxu0 %v2195_v15  ;;  %v1882_v33 = vsel %vm239_vm5, %v1869_v53, %v1871_v37  ;;  %v1883_v14 = vsel %vm239_vm5, %v1871_v37, %v1873_v12 }
 0x435   :  { %v1919_v46 = vpop.permute.xlu1 %1918  ;;  %v1921_v28 = vpop.permute.xlu0 %1920 }
 0x436   :  { %v1930_v29 = vsel %vm288_vm6, %v1917_v61, %v1919_v46  ;;  %v1931_v48 = vsel %vm288_vm6, %v1919_v46, %v1921_v28 }
 0x437   :  { %v2189_v30 = vpack.c.bf16 %v1931_v48, %v1883_v14  ;;  %v2188_v36 = vpack.c.bf16 %v1930_v29, %v1882_v33 }
 0x439   :  { %v1775_v20 = vpop.permute.xlu1 %1774  ;;  %v1777_v19 = vpop.permute.xlu0 %1776  ;;  %2243 = vmatprep.subr.bf16.mxu0 %v2189_v30 }
 0x43a   :  { %2244 = vmatpush1.bf16.msra.mxu0 %v2188_v36  ;;  %v1786_v39 = vsel %vm141_vm7, %v1773_v55, %v1775_v20  ;;  %v1787_v27 = vsel %vm141_vm7, %v1775_v20, %v1777_v19  ;;  %v4481_v55 = vld [vmem:[%s4952_s1 + $0x4] sm:$0xf] }
 0x43d   :  { %v1823_v26 = vpop.permute.xlu1 %1822  ;;  %v1825_v49 = vpop.permute.xlu0 %1824 }
 0x43e   :  { %v1834_v40 = vsel %vm190_vm8, %v1821_v62, %v1823_v26  ;;  %v1835_v23 = vsel %vm190_vm8, %v1823_v26, %v1825_v49 }
 0x43f   :  { %v2182_v42 = vpack.c.bf16 %v1835_v23, %v1787_v27  ;;  %v2181_v43 = vpack.c.bf16 %v1834_v40, %v1786_v39 }
 0x441   :  { %v1727_v47 = vpop.permute.xlu1 %1726  ;;  %v1729_v35 = vpop.permute.xlu0 %1728  ;;  %2245 = vmatprep.subr.bf16.mxu0 %v2182_v42 }
 0x442   :  { %v1738_v50 = vsel %vm92_vm9, %v1725_v0, %v1727_v47  ;;  %v1739_v13 = vsel %vm92_vm9, %v1727_v47, %v1729_v35  ;;  %2246 = vmatpush1.bf16.msra.mxu0 %v2181_v43 }
 0x443   :  { %v2175_v58 = vpack.c.bf16 %v1739_v13, %v4291_v56  ;;  %v2174_v4 = vpack.c.bf16 %v1738_v50, %v4300_v38 }
 0x445   :  { %v2081_v53 = vpop.permute.xlu1 %2080  ;;  %v2079_v11 = vpop.permute.xlu0 %2078  ;;  %2247 = vmatprep.subr.bf16.mxu0 %v2175_v58 }
 0x446   :  { %v2090_v61 = vsel %vm449_vm1, %v2077_v54, %v2079_v11  ;;  %v2091_v62 = vsel %vm449_vm1, %v2079_v11, %v2081_v53  ;;  %2248 = vmatpush1.bf16.msra.mxu0 %v2174_v4 }
 0x447   :  { %v2205_v0 = vpack.c.bf16 %v2091_v62, %v2091_v62  ;;  %v2204_v63 = vpack.c.bf16 %v2090_v61, %v2090_v61 }
 0x449   :  { %v4485_v6 = vpop.permute.xlu1 %1974  ;;  %v1973_v56 = vpop.permute.xlu0 %1972  ;;  %3355 = vmatmul.mubr.msk.bf16.vlgmr.msra.gmra.mxu0 %vm570_vm10, %v4481_v55  ;;  %3356 = vmatprep.subr.msk.bf16.mxu1 %vm574_vm2, %v2205_v0  ;;  %v2219_v38 = vsel %vm574_vm2, %v2204_v63, 0 }
 0x44a   :  { %2281 = vmatpush1.bf16.msra.mxu1 %v2219_v38  ;;  %2347 = vmatprep.mubr.bf16.mxu0 %v3475_v8  ;;  %v1984_v2 = vsel %vm341_vm3, %v4457_v51, %v1973_v56  ;;  %v1985_v9 = vsel %vm341_vm3, %v1973_v56, %v4485_v6 }
 0x44d   :  { %v2028_v7 = vpop.permute.xlu1 %2027  ;;  %v2026_v54 = vpop.permute.xlu0 %2025 }
 0x44e   :  { %v2037_v17 = vsel %vm395_vm4, %v2024_v31, %v2026_v54  ;;  %v2038_v34 = vsel %vm395_vm4, %v2026_v54, %v2028_v7 }
 0x44f   :  { %v2198_v22 = vpack.c.bf16 %v2038_v34, %v1985_v9  ;;  %v2197_v10 = vpack.c.bf16 %v2037_v17, %v1984_v2 }
 0x451   :  { %v4498_v24 = vpop.permute.xlu1 %1876  ;;  %v1875_v25 = vpop.permute.xlu0 %1874  ;;  %2282 = vmatprep.subr.bf16.mxu1 %v2198_v22 }
 0x452   :  { %2283 = vmatpush1.bf16.msra.mxu1 %v2197_v10  ;;  %v1884_v15 = vsel %vm239_vm5, %v1873_v12, %v1875_v25  ;;  %v1885_v51 = vsel %vm239_vm5, %v1875_v25, %v4498_v24 }
 0x455   :  { %v4500_v59 = vpop.permute.xlu1 %1924  ;;  %v1923_v57 = vpop.permute.xlu0 %1922 }
 0x456   :  { %v1932_v37 = vsel %vm288_vm6, %v1921_v28, %v1923_v57  ;;  %v1933_v31 = vsel %vm288_vm6, %v1923_v57, %v4500_v59 }
 0x457   :  { %v2191_v46 = vpack.c.bf16 %v1933_v31, %v1885_v51  ;;  %v2190_v33 = vpack.c.bf16 %v1932_v37, %v1884_v15 }
 0x459   :  { %v4508_v29 = vpop.permute.xlu1 %1780  ;;  %v1779_v14 = vpop.permute.xlu0 %1778  ;;  %2284 = vmatprep.subr.bf16.mxu1 %v2191_v46 }
 0x45a   :  { %2285 = vmatpush1.bf16.msra.mxu1 %v2190_v33  ;;  %v1788_v12 = vsel %vm141_vm7, %v1777_v19, %v1779_v14  ;;  %v1789_v36 = vsel %vm141_vm7, %v1779_v14, %v4508_v29 }
 0x45d   :  { %v4510_v48 = vpop.permute.xlu1 %1828  ;;  %v1827_v30 = vpop.permute.xlu0 %1826 }
 0x45e   :  { %v1836_v28 = vsel %vm190_vm8, %v1825_v49, %v1827_v30  ;;  %v1837_v20 = vsel %vm190_vm8, %v1827_v30, %v4510_v48 }
 0x45f   :  { %v2184_v26 = vpack.c.bf16 %v1837_v20, %v1789_v36  ;;  %v2183_v39 = vpack.c.bf16 %v1836_v28, %v1788_v12 }
 0x461   :  { %v4518_v40 = vpop.permute.xlu1 %1732  ;;  %v1731_v27 = vpop.permute.xlu0 %1730  ;;  %2286 = vmatprep.subr.bf16.mxu1 %v2184_v26 }
 0x462   :  { %v1740_v23 = vsel %vm92_vm9, %v1729_v35, %v1731_v27  ;;  %v1741_v42 = vsel %vm92_vm9, %v1731_v27, %v4518_v40  ;;  %2287 = vmatpush1.bf16.msra.mxu1 %v2183_v39 }
 0x463   :  { %v2177_v19 = vpack.c.bf16 %v1741_v42, %v4326_v18  ;;  %v2176_v43 = vpack.c.bf16 %v1740_v23, %v4319_v60 }
 0x465   :  { %v4525_v49 = vpop.permute.xlu1 %2084  ;;  %v2083_v47 = vpop.permute.xlu0 %2082  ;;  %2288 = vmatprep.subr.bf16.mxu1 %v2177_v19 }
 0x466   :  { %v2092_v50 = vsel %vm449_vm1, %v2081_v53, %v2083_v47  ;;  %v2093_v13 = vsel %vm449_vm1, %v2083_v47, %v4525_v49  ;;  %2289 = vmatpush1.bf16.msra.mxu1 %v2176_v43 }
 0x467   :  { %v2207_v58 = vpack.c.bf16 %v2093_v13, %v2093_v13  ;;  %v2206_v35 = vpack.c.bf16 %v2092_v50, %v2092_v50  ;;  %3425 = vmatprep.subr.bf16.mxu1 %v3476_v21 }
 0x469   :  { %v1979_v4 = vpop.permute.xlu1 %1978  ;;  %v1977_v11 = vpop.permute.xlu0 %1976  ;;  %3357 = vmatmul.mubr.msk.bf16.vlgmr.msra.gmra.mxu1 %vm570_vm10, %v4481_v55  ;;  %3358 = vmatprep.subr.msk.bf16.mxu0 %vm574_vm2, %v2207_v58  ;;  %v2225_v60 = vsel %vm574_vm2, %v2206_v35, 0 }
 0x46a   :  { %2322 = vmatpush1.bf16.msra.mxu0 %v2225_v60  ;;  %3435 = vmatprep.mubr.msk.bf16.mxu1 %vm3477_vm11, %v3476_v21  ;;  %v1986_v61 = vsel %vm341_vm3, %v4485_v6, %v1977_v11  ;;  %v1987_v62 = vsel %vm341_vm3, %v1977_v11, %v1979_v4  ;;  %v2117_v60 = vld [vmem:[#allocation2 + $0x30] sm:$0xff] }
 0x46d   :  { %v2032_v18 = vpop.permute.xlu1 %2031  ;;  %v2030_v53 = vpop.permute.xlu0 %2029 }
 0x46e   :  { %v2039_v0 = vsel %vm395_vm4, %v2028_v7, %v2030_v53  ;;  %v2040_v63 = vsel %vm395_vm4, %v2030_v53, %v2032_v18 }
 0x46f   :  { %v2200_v56 = vpack.c.bf16 %v2040_v63, %v1987_v62  ;;  %v2199_v38 = vpack.c.bf16 %v2039_v0, %v1986_v61  ;;  %v4587_v62 = vld [vmem:[%s4953_s7] sm:$0x7f] }
 0x471   :  { %v1881_v54 = vpop.permute.xlu1 %1880  ;;  %v1879_v2 = vpop.permute.xlu0 %1878  ;;  %2323 = vmatprep.subr.bf16.mxu0 %v2200_v56 }
 0x472   :  { %1901 = vst.msk [vmem:[#allocation2 + $0x110] sm:$0xff] %vm62_vm0, %v1881_v54  ;;  %2324 = vmatpush1.bf16.msra.mxu0 %v2199_v38  ;;  %v1886_v6 = vsel %vm239_vm5, %v4498_v24, %v1879_v2  ;;  %v1887_v34 = vsel %vm239_vm5, %v1879_v2, %v1881_v54 }
 0x475   :  { %v1929_v9 = vpop.permute.xlu1 %1928  ;;  %v1927_v17 = vpop.permute.xlu0 %1926 }
 0x476   :  { %1949 = vst.msk [vmem:[#allocation2 + $0x148] sm:$0xff] %vm62_vm0, %v1929_v9  ;;  %v1934_v7 = vsel %vm288_vm6, %v4500_v59, %v1927_v17  ;;  %v1935_v22 = vsel %vm288_vm6, %v1927_v17, %v1929_v9 }
 0x477   :  { %v2193_v10 = vpack.c.bf16 %v1935_v22, %v1887_v34  ;;  %v2192_v25 = vpack.c.bf16 %v1934_v7, %v1886_v6  ;;  %v2440_v6 = vrot.slane %v4587_v62, %v3897_v1 }
 0x479   :  { %v1785_v57 = vpop.permute.xlu1 %1784  ;;  %v1783_v15 = vpop.permute.xlu0 %1782  ;;  %2325 = vmatprep.subr.bf16.mxu0 %v2193_v10  ;;  %v2145_v50 = vld [vmem:[#allocation2 + $0x110] sm:$0xff] }
 0x47a   :  { %1805 = vst.msk [vmem:[#allocation2 + $0xa0] sm:$0xff] %vm62_vm0, %v1785_v57  ;;  %2326 = vmatpush1.bf16.msra.mxu0 %v2192_v25  ;;  %v1790_v24 = vsel %vm141_vm7, %v4508_v29, %v1783_v15  ;;  %v1791_v31 = vsel %vm141_vm7, %v1783_v15, %v1785_v57 }
 0x47d   :  { %v1833_v51 = vpop.permute.xlu1 %1832  ;;  %v1831_v37 = vpop.permute.xlu0 %1830  ;;  %v2152_v47 = vld [vmem:[#allocation2 + $0x148] sm:$0xff] }
 0x47e   :  { %1853 = vst.msk [vmem:[#allocation2 + $0xd8] sm:$0xff] %vm62_vm0, %v1833_v51  ;;  %v1838_v59 = vsel %vm190_vm8, %v4510_v48, %v1831_v37  ;;  %v1839_v46 = vsel %vm190_vm8, %v1831_v37, %v1833_v51  ;;  %v2194_v13 = vpack.c.bf16 %v2152_v47, %v2145_v50  ;;  %v2444_v37 = vrot.slane %v4587_v62, %v3912_v16 }
 0x47f   :  { %v2186_v33 = vpack.c.bf16 %v1839_v46, %v1791_v31  ;;  %v2185_v14 = vpack.c.bf16 %v1838_v59, %v1790_v24 }
 0x481   :  { %v1737_v30 = vpop.permute.xlu1 %1736  ;;  %v1735_v12 = vpop.permute.xlu0 %1734  ;;  %2327 = vmatprep.subr.bf16.mxu0 %v2186_v33  ;;  %v2131_v35 = vld [vmem:[#allocation2 + $0xa0] sm:$0xff]  ;;  %v2448_v33 = vrot.slane %v4587_v62, %v3916_v44 }
 0x482   :  { %1757 = vst.msk [vmem:[#allocation2 + $0x68] sm:$0xff] %vm62_vm0, %v1737_v30  ;;  %v1742_v36 = vsel %vm92_vm9, %v4518_v40, %v1735_v12  ;;  %v1743_v28 = vsel %vm92_vm9, %v1735_v12, %v1737_v30  ;;  %2328 = vmatpush1.bf16.msra.mxu0 %v2185_v14 }
 0x483   :  { %v2179_v29 = vpack.c.bf16 %v1743_v28, %v4368_v5  ;;  %v2178_v20 = vpack.c.bf16 %v1742_v36, %v4361_v41 }
 0x485   :  { %v1981_v48 = vpop.permute.xlu1 %1980  ;;  %v2087_v26 = vpop.permute.xlu0 %2086  ;;  %2329 = vmatprep.subr.bf16.mxu0 %v2179_v29  ;;  %v2138_v58 = vld [vmem:[#allocation2 + $0xd8] sm:$0xff] }
 0x486   :  { %v1988_v39 = vsel %vm341_vm3, %v1979_v4, %v1981_v48  ;;  %v2094_v27 = vsel %vm449_vm1, %v4525_v49, %v2087_v26  ;;  %2330 = vmatpush1.bf16.msra.mxu0 %v2178_v20  ;;  %v2187_v4 = vpack.c.bf16 %v2138_v58, %v2131_v35  ;;  %v2452_v26 = vrot.slane %v4587_v62, %v3978_v45 }
 0x487   :  { %2002 = vst.msk [vmem:[#allocation2 + $0x180] sm:$0xff] %vm62_vm0, %v1988_v39  ;;  %2108 = vst.msk [vmem:[#allocation2 + $0x1f0] sm:$0xff] %vm62_vm0, %v2094_v27  ;;  %v2460_v58 = vrot.slane %v4587_v62, %v3952_v3 }
 0x489   :  { %v2034_v40 = vpop.permute.xlu0 %2033  ;;  %3359 = vmatmul.mubr.msk.bf16.vlgmr.msra.gmra.mxu0 %vm570_vm10, %v4481_v55  ;;  %v2124_v11 = vld [vmem:[#allocation2 + $0x68] sm:$0xff] }
 0x48a   :  { %v2041_v5 = vsel %vm395_vm4, %v2032_v18, %v2034_v40  ;;  %3036 = vmatprep.mubr.bf16.mxu0 %v3475_v8  ;;  %v2180_v18 = vpack.c.bf16 %v2124_v11, %v2117_v60 }
 0x48b   :  { %2055 = vst.msk [vmem:[#allocation2 + $0x1b8] sm:$0xff] %vm62_vm0, %v2041_v5 }
 0x48e   :  { %v2173_v41 = vld [vmem:[#allocation2 + $0x1f0] sm:$0xff]  ;;  %v2159_v19 = vld [vmem:[#allocation2 + $0x180] sm:$0xff] }
 0x48f   :  { %v2208_v23 = vpack.c.bf16 %v2173_v41, %v2173_v41  ;;  %v2456_v41 = vrot.slane %v4587_v62, %v4015_v52 }
 0x491   :  { %v2231_v42 = vsel %vm574_vm2, %v2208_v23, 0 }
 0x492   :  { %3426 = vmatpush3.bf16.msra.mxu1 %v2231_v42  ;;  %v2166_v43 = vld [vmem:[#allocation2 + $0x1b8] sm:$0xff]  ;;  %v4582_v53 = vpop.permute.xlu1 %2400 }
 0x493   :  { %3427 = vmatprep.subr.bf16.mxu1 %v3476_v21  ;;  %v2201_v49 = vpack.c.bf16 %v2166_v43, %v2159_v19 }
 0x496   :  { %3428 = vmatpush3.bf16.msra.mxu1 %v2201_v49  ;;  %v4590_v63 = vpop.permute.xlu0 %2414 }
 0x497   :  { %3429 = vmatprep.subr.bf16.mxu1 %v3476_v21 }
 0x49a   :  { %3430 = vmatpush3.bf16.msra.mxu1 %v2194_v13 }
 0x49b   :  { %3431 = vmatprep.subr.bf16.mxu1 %v3476_v21 }
 0x49e   :  { %3432 = vmatpush3.bf16.msra.mxu1 %v2187_v4 }
 0x49f   :  { %3433 = vmatprep.subr.bf16.mxu1 %v3476_v21 }
 0x4a2   :  { %3434 = vmatpush3.bf16.msra.mxu1 %v2180_v18 }
 0x4a5   :  { %3436 = vmatmul.mubr.msk.bf16.vlgmr.msra.gmra.mxu1 %vm570_vm10, %v4481_v55  ;;  %v2436_v55 = vrot.slane %v4587_v62, %v3875_v32 }
 0x4a6   :  { %3077 = vmatprep.mubr.bf16.mxu1 %v3475_v8 }
 0x509   :  { %v2267_v61 = vpop.f32.mrf.mxu0 }
 0x50a   :  { %v2403_v0 = vmul.f32 %v4582_v53, %v2267_v61 }
 0x50b   :  { %v2269_v56 = vpop.f32.mrf.mxu0 }
 0x50c   :  { %v2417_v38 = vadd.f32 %v4590_v63, %v2403_v0  ;;  %v2404_v54 = vmul.f32 %v4582_v53, %v2269_v56 }
 0x50d   :  { %v2271_v2 = vpop.f32.mrf.mxu0 }
 0x50e   :  { %v2424_v9 = vmax.f32 %v2417_v38, 0.0  ;;  %v2418_v17 = vadd.f32 %v4590_v63, %v2404_v54  ;;  %v3372_v38 = vld [vmem:[%s4954_s6 + $0x8] sm:$0xff] }
 0x50f   :  { %v2272_v34 = vpop.f32.mrf.mxu0 }
 0x510   :  { %v4599_v7 = vmul.f32 %v2436_v55, %v2424_v9  ;;  %v2425_v22 = vmax.f32 %v2418_v17, 0.0  ;;  %v3195_v9 = vld [vmem:[%s4949_s9] sm:$0xff] }
 0x512   :  { %v4601_v10 = vmul.f32 %v2440_v6, %v2425_v22  ;;  %2846 = vrot.lane.b32.xlu1 %v4599_v7, %s3467_s17  ;;  %2750 = vrot.lane.b32.xlu0 %v4599_v7, %s3468_s22  ;;  %v3196_v6 = vld [vmem:[%s4949_s9 + $0x8] sm:$0xff]  ;;  %v3197_v22 = vld [vmem:[%s4949_s9 + $0x10] sm:$0xff] }
 0x516   :  { %2798 = vrot.lane.b32.xlu1 %v4599_v7, %s3469_s0  ;;  %2654 = vrot.lane.b32.xlu0 %v4599_v7, %s3470_s23 }
 0x51a   :  { %2702 = vrot.lane.b32.xlu1 %v4599_v7, %s3471_s24  ;;  %2558 = vrot.lane.b32.xlu0 %v4599_v7, %s3472_s25 }
 0x51e   :  { %2606 = vrot.lane.b32.xlu1 %v4599_v7, %s3473_s26  ;;  %2510 = vrot.lane.b32.xlu0 %v4599_v7, %s3474_s27 }
 0x522   :  { %2848 = vrot.lane.b32.xlu0 %v4601_v10, %s3467_s17 }
 0x526   :  { %2752 = vrot.lane.b32.xlu0 %v4601_v10, %s3468_s22 }
 0x529   :  { %v2308_v25 = vpop.f32.mrf.mxu1 }
 0x52a   :  { %v2405_v57 = vmul.f32 %v4582_v53, %v2308_v25  ;;  %2800 = vrot.lane.b32.xlu0 %v4601_v10, %s3469_s0 }
 0x52b   :  { %v2310_v15 = vpop.f32.mrf.mxu1 }
 0x52c   :  { %v2419_v51 = vadd.f32 %v4590_v63, %v2405_v57  ;;  %v2406_v24 = vmul.f32 %v4582_v53, %v2310_v15  ;;  %v3198_v15 = vld [vmem:[%s4949_s9 + $0x18] sm:$0xff] }
 0x52d   :  { %v2312_v31 = vpop.f32.mrf.mxu1 }
 0x52e   :  { %v2426_v59 = vmax.f32 %v2419_v51, 0.0  ;;  %v2420_v46 = vadd.f32 %v4590_v63, %v2406_v24  ;;  %2656 = vrot.lane.b32.xlu0 %v4601_v10, %s3470_s23 }
 0x52f   :  { %v2313_v14 = vpop.f32.mrf.mxu1 }
 0x530   :  { %v4635_v30 = vmul.f32 %v2444_v37, %v2426_v59  ;;  %v2427_v12 = vmax.f32 %v2420_v46, 0.0  ;;  %v3199_v37 = vld [vmem:[%s4949_s9 + $0x20] sm:$0xff]  ;;  %v3200_v59 = vld [vmem:[%s4949_s9 + $0x28] sm:$0xff] }
 0x532   :  { %v4637_v36 = vmul.f32 %v2448_v33, %v2427_v12  ;;  %2850 = vrot.lane.b32.xlu1 %v4635_v30, %s3467_s17  ;;  %2704 = vrot.lane.b32.xlu0 %v4601_v10, %s3471_s24  ;;  %v3201_v33 = vld [vmem:[%s4949_s9 + $0x30] sm:$0xff] }
 0x536   :  { %2754 = vrot.lane.b32.xlu1 %v4635_v30, %s3468_s22  ;;  %2560 = vrot.lane.b32.xlu0 %v4601_v10, %s3472_s25 }
 0x53a   :  { %2802 = vrot.lane.b32.xlu1 %v4635_v30, %s3469_s0  ;;  %2608 = vrot.lane.b32.xlu0 %v4601_v10, %s3473_s26 }
 0x53e   :  { %2658 = vrot.lane.b32.xlu1 %v4635_v30, %s3470_s23  ;;  %2512 = vrot.lane.b32.xlu0 %v4601_v10, %s3474_s27 }
 0x542   :  { %2706 = vrot.lane.b32.xlu1 %v4635_v30, %s3471_s24  ;;  %2852 = vrot.lane.b32.xlu0 %v4637_v36, %s3467_s17 }
 0x546   :  { %2562 = vrot.lane.b32.xlu1 %v4635_v30, %s3472_s25  ;;  %2756 = vrot.lane.b32.xlu0 %v4637_v36, %s3468_s22 }
 0x549   :  { %v2349_v28 = vpop.f32.mrf.mxu0 }
 0x54a   :  { %v2407_v29 = vmul.f32 %v4582_v53, %v2349_v28  ;;  %2610 = vrot.lane.b32.xlu1 %v4635_v30, %s3473_s26  ;;  %2804 = vrot.lane.b32.xlu0 %v4637_v36, %s3469_s0 }
 0x54b   :  { %v2351_v20 = vpop.f32.mrf.mxu0 }
 0x54c   :  { %v2421_v48 = vadd.f32 %v4590_v63, %v2407_v29  ;;  %v2408_v39 = vmul.f32 %v4582_v53, %v2351_v20 }
 0x54d   :  { %v2353_v27 = vpop.f32.mrf.mxu0 }
 0x54e   :  { %v2428_v40 = vmax.f32 %v2421_v48, 0.0  ;;  %v2422_v5 = vadd.f32 %v4590_v63, %v2408_v39  ;;  %2514 = vrot.lane.b32.xlu1 %v4635_v30, %s3474_s27  ;;  %2660 = vrot.lane.b32.xlu0 %v4637_v36, %s3470_s23 }
 0x54f   :  { %v2354_v23 = vpop.f32.mrf.mxu0 }
 0x550   :  { %v4679_v42 = vmul.f32 %v2452_v26, %v2428_v40  ;;  %v2429_v19 = vmax.f32 %v2422_v5, 0.0 }
 0x552   :  { %v4681_v43 = vmul.f32 %v2456_v41, %v2429_v19  ;;  %2516 = vrot.lane.b32.xlu1 %v4637_v36, %s3474_s27  ;;  %2708 = vrot.lane.b32.xlu0 %v4637_v36, %s3471_s24 }
 0x556   :  { %2564 = vrot.lane.b32.xlu0 %v4637_v36, %s3472_s25  ;;  %2854 = vrot.lane.b32.xlu1 %v4679_v42, %s3467_s17 }
 0x55a   :  { %2612 = vrot.lane.b32.xlu0 %v4637_v36, %s3473_s26  ;;  %2758 = vrot.lane.b32.xlu1 %v4679_v42, %s3468_s22 }
 0x55e   :  { %2806 = vrot.lane.b32.xlu1 %v4679_v42, %s3469_s0  ;;  %2518 = vrot.lane.b32.xlu0 %v4679_v42, %s3474_s27 }
 0x562   :  { %2662 = vrot.lane.b32.xlu1 %v4679_v42, %s3470_s23 }
 0x565   :  { %v2390_v49 = vpop.f32.mrf.mxu1 }
 0x566   :  { %v2409_v47 = vmul.f32 %v4582_v53, %v2390_v49  ;;  %2710 = vrot.lane.b32.xlu1 %v4679_v42, %s3471_s24 }
 0x567   :  { %v3437_v50 = vpop.f32.mrf.mxu1 }
 0x568   :  { %v2423_v13 = vadd.f32 %v4590_v63, %v2409_v47  ;;  %v3371_v63 = vld [vmem:[%s4955_s5 + $0x8] sm:$0xff] }
 0x569   :  { %v2393_v35 = vpop.f32.mrf.mxu1 }
 0x56a   :  { %v2430_v4 = vmax.f32 %v2423_v13, 0.0  ;;  %2566 = vrot.lane.b32.xlu1 %v4679_v42, %s3472_s25 }
 0x56b   :  { %v3438_v11 = vpop.f32.mrf.mxu1 }
 0x56c   :  { %v2474_v60 = vmul.f32 %v2460_v58, %v2430_v4 }
 0x56e   :  { %2481 = vst.msk [vmem:[#allocation3 + $0x30] sm:$0xff] %vm62_vm0, %v2474_v60  ;;  %2614 = vrot.lane.b32.xlu1 %v4679_v42, %s3473_s26 }
 0x572   :  { %2856 = vrot.lane.b32.xlu1 %v4681_v43, %s3467_s17 }
 0x575   :  { %v2838_v18 = vld [vmem:[#allocation3 + $0x30] sm:$0xff] }
 0x576   :  { %2858 = vrot.lane.b32.xlu0 %v2838_v18, %s3467_s17  ;;  %2760 = vrot.lane.b32.xlu1 %v4681_v43, %s3468_s22  ;;  %2495 = vst.msk [vmem:[#allocation2 + $0x30] sm:$0xff] %vm856_vm12, %v2838_v18 }
 0x57a   :  { %2762 = vrot.lane.b32.xlu0 %v2838_v18, %s3468_s22  ;;  %2808 = vrot.lane.b32.xlu1 %v4681_v43, %s3469_s0 }
 0x57e   :  { %2810 = vrot.lane.b32.xlu0 %v2838_v18, %s3469_s0  ;;  %2664 = vrot.lane.b32.xlu1 %v4681_v43, %s3470_s23 }
 0x582   :  { %2666 = vrot.lane.b32.xlu0 %v2838_v18, %s3470_s23  ;;  %2712 = vrot.lane.b32.xlu1 %v4681_v43, %s3471_s24 }
 0x584   :  { %v2751_v53 = vpop.permute.xlu0 %2750  ;;  %v2847_v0 = vpop.permute.xlu1 %2846 }
 0x586   :  { %2714 = vrot.lane.b32.xlu0 %v2838_v18, %s3471_s24  ;;  %2568 = vrot.lane.b32.xlu1 %v4681_v43, %s3472_s25 }
 0x588   :  { %v2655_v61 = vpop.permute.xlu0 %2654  ;;  %v2799_v55 = vpop.permute.xlu1 %2798 }
 0x58a   :  { %2570 = vrot.lane.b32.xlu0 %v2838_v18, %s3472_s25  ;;  %2616 = vrot.lane.b32.xlu1 %v4681_v43, %s3473_s26 }
 0x58c   :  { %v2559_v62 = vpop.permute.xlu0 %2558  ;;  %v2703_v25 = vpop.permute.xlu1 %2702 }
 0x58e   :  { %2618 = vrot.lane.b32.xlu0 %v2838_v18, %s3473_s26  ;;  %2520 = vrot.lane.b32.xlu1 %v4681_v43, %s3474_s27 }
 0x590   :  { %v2511_v56 = vpop.permute.xlu0 %2510  ;;  %v2607_v24 = vpop.permute.xlu1 %2606 }
 0x592   :  { %2522 = vrot.lane.b32.xlu0 %v2838_v18, %s3474_s27  ;;  %3171 = vperm.xlu1 %3465, %v3371_v63  }
 0x594   :  { %v2849_v54 = vpop.permute.xlu0 %2848 }
 0x595   :  { %v2860_v2 = vsel %vm449_vm1, %v2847_v0, %v2849_v54 }
 0x596   :  { %3185 = vperm.xlu0 %3466, %v3372_v38   ;;  %3209 = vrot.lane.b32.xlu1 %v3195_v9, %s3467_s17  ;;  %v2973_v28 = vpack.c.bf16 %v2860_v2, %v2860_v2 }
 0x598   :  { %v2753_v17 = vpop.permute.xlu0 %2752  ;;  %v2984_v27 = vsel %vm574_vm2, %v2973_v28, 0 }
 0x599   :  { %v2764_v34 = vsel %vm341_vm3, %v2751_v53, %v2753_v17 }
 0x59a   :  { %3211 = vrot.lane.b32.xlu0 %v3196_v6, %s3467_s17  ;;  %3213 = vrot.lane.b32.xlu1 %v3197_v22, %s3467_s17 }
 0x59c   :  { %v2801_v57 = vpop.permute.xlu0 %2800 }
 0x59d   :  { %v2812_v51 = vsel %vm395_vm4, %v2799_v55, %v2801_v57 }
 0x59e   :  { %3215 = vrot.lane.b32.xlu0 %v3198_v15, %s3467_s17  ;;  %3217 = vrot.lane.b32.xlu1 %v3199_v37, %s3467_s17  ;;  %v2966_v50 = vpack.c.bf16 %v2812_v51, %v2764_v34 }
 0x5a0   :  { %v2657_v31 = vpop.permute.xlu0 %2656 }
 0x5a1   :  { %v2668_v46 = vsel %vm239_vm5, %v2655_v61, %v2657_v31 }
 0x5a2   :  { %3219 = vrot.lane.b32.xlu0 %v3200_v59, %s3467_s17  ;;  %3221 = vrot.lane.b32.xlu1 %v3201_v33, %s3467_s17 }
 0x5a4   :  { %v2851_v14 = vpop.permute.xlu1 %2850  ;;  %v2705_v12 = vpop.permute.xlu0 %2704 }
 0x5a5   :  { %v2861_v29 = vsel %vm449_vm1, %v2849_v54, %v2851_v14  ;;  %v2716_v20 = vsel %vm288_vm6, %v2703_v25, %v2705_v12 }
 0x5a6   :  { %v2974_v48 = vpack.c.bf16 %v2861_v29, %v2861_v29 }
 0x5a8   :  { %v2755_v26 = vpop.permute.xlu1 %2754  ;;  %v2561_v39 = vpop.permute.xlu0 %2560  ;;  %3364 = vmatprep.subr.msk.bf16.mxu0 %vm574_vm2, %v2974_v48 }
 0x5a9   :  { %v2765_v40 = vsel %vm341_vm3, %v2753_v17, %v2755_v26  ;;  %v2572_v5 = vsel %vm141_vm7, %v2559_v62, %v2561_v39  ;;  %3011 = vmatpush1.bf16.msra.mxu0 %v2984_v27  ;;  %v2959_v62 = vpack.c.bf16 %v2716_v20, %v2668_v46  ;;  %v4800_v46 = vld [vmem:[%s4956_s4 + $0x4] sm:$0xf] }
 0x5ac   :  { %v2803_v41 = vpop.permute.xlu1 %2802  ;;  %v2609_v23 = vpop.permute.xlu0 %2608 }
 0x5ad   :  { %v2813_v19 = vsel %vm395_vm4, %v2801_v57, %v2803_v41  ;;  %v2620_v49 = vsel %vm190_vm8, %v2607_v24, %v2609_v23 }
 0x5ae   :  { %v2967_v47 = vpack.c.bf16 %v2813_v19, %v2765_v40  ;;  %v2952_v6 = vpack.c.bf16 %v2620_v49, %v2572_v5 }
 0x5b0   :  { %v2659_v13 = vpop.permute.xlu1 %2658  ;;  %v2513_v58 = vpop.permute.xlu0 %2512  ;;  %3012 = vmatprep.subr.bf16.mxu0 %v2967_v47 }
 0x5b1   :  { %v2669_v35 = vsel %vm239_vm5, %v2657_v31, %v2659_v13  ;;  %v2524_v4 = vsel %vm92_vm9, %v2511_v56, %v2513_v58  ;;  %3013 = vmatpush1.bf16.msra.mxu0 %v2966_v50 }
 0x5b2   :  { %v2945_v51 = vpack.c.bf16 %v2524_v4, %v4599_v7 }
 0x5b4   :  { %v2707_v11 = vpop.permute.xlu1 %2706  ;;  %v2853_v60 = vpop.permute.xlu0 %2852 }
 0x5b5   :  { %v2717_v18 = vsel %vm288_vm6, %v2705_v12, %v2707_v11  ;;  %v2862_v53 = vsel %vm449_vm1, %v2851_v14, %v2853_v60 }
 0x5b6   :  { %v2960_v61 = vpack.c.bf16 %v2717_v18, %v2669_v35 }
 0x5b8   :  { %v2563_v0 = vpop.permute.xlu1 %2562  ;;  %v2757_v63 = vpop.permute.xlu0 %2756  ;;  %3014 = vmatprep.subr.bf16.mxu0 %v2960_v61 }
 0x5b9   :  { %v2573_v38 = vsel %vm141_vm7, %v2561_v39, %v2563_v0  ;;  %v2766_v55 = vsel %vm341_vm3, %v2755_v26, %v2757_v63  ;;  %3015 = vmatpush1.bf16.msra.mxu0 %v2959_v62 }
 0x5bc   :  { %v2611_v54 = vpop.permute.xlu1 %2610  ;;  %v2805_v2 = vpop.permute.xlu0 %2804 }
 0x5bd   :  { %v2621_v56 = vsel %vm190_vm8, %v2609_v23, %v2611_v54  ;;  %v2814_v9 = vsel %vm395_vm4, %v2803_v41, %v2805_v2 }
 0x5be   :  { %v2953_v17 = vpack.c.bf16 %v2621_v56, %v2573_v38  ;;  %v2968_v23 = vpack.c.bf16 %v2814_v9, %v2766_v55 }
 0x5c0   :  { %v2515_v34 = vpop.permute.xlu1 %2514  ;;  %v2661_v22 = vpop.permute.xlu0 %2660  ;;  %3016 = vmatprep.subr.bf16.mxu0 %v2953_v17 }
 0x5c1   :  { %v2525_v25 = vsel %vm92_vm9, %v2513_v58, %v2515_v34  ;;  %v2670_v57 = vsel %vm239_vm5, %v2659_v13, %v2661_v22  ;;  %3017 = vmatpush1.bf16.msra.mxu0 %v2952_v6 }
 0x5c2   :  { %v2946_v15 = vpack.c.bf16 %v2525_v25, %v4601_v10  ;;  %v2975_v10 = vpack.c.bf16 %v2862_v53, %v2862_v53 }
 0x5c4   :  { %v2517_v37 = vpop.permute.xlu1 %2516  ;;  %v2709_v24 = vpop.permute.xlu0 %2708  ;;  %3018 = vmatprep.subr.bf16.mxu0 %v2946_v15  ;;  %v2990_v48 = vsel %vm574_vm2, %v2975_v10, 0 }
 0x5c5   :  { %v2526_v31 = vsel %vm92_vm9, %v2515_v34, %v2517_v37  ;;  %v2718_v59 = vsel %vm288_vm6, %v2707_v11, %v2709_v24  ;;  %3019 = vmatpush1.bf16.msra.mxu0 %v2945_v51 }
 0x5c6   :  { %v2961_v58 = vpack.c.bf16 %v2718_v59, %v2670_v57 }
 0x5c8   :  { %v2565_v33 = vpop.permute.xlu0 %2564  ;;  %v2855_v14 = vpop.permute.xlu1 %2854  ;;  %3365 = vmatmul.mubr.msk.bf16.vlgmr.msra.gmra.mxu0 %vm570_vm10, %v4800_v46 }
 0x5c9   :  { %v2574_v7 = vsel %vm141_vm7, %v2563_v0, %v2565_v33  ;;  %v2863_v12 = vsel %vm449_vm1, %v2853_v60, %v2855_v14  ;;  %3118 = vmatprep.mubr.bf16.mxu0 %v3475_v8 }
 0x5ca   :  { %v2976_v28 = vpack.c.bf16 %v2863_v12, %v2863_v12 }
 0x5cc   :  { %v2613_v29 = vpop.permute.xlu0 %2612  ;;  %v2759_v20 = vpop.permute.xlu1 %2758  ;;  %3366 = vmatprep.subr.msk.bf16.mxu1 %vm574_vm2, %v2976_v28 }
 0x5cd   :  { %v2622_v26 = vsel %vm190_vm8, %v2611_v54, %v2613_v29  ;;  %v2767_v39 = vsel %vm341_vm3, %v2757_v63, %v2759_v20  ;;  %3052 = vmatpush1.bf16.msra.mxu1 %v2990_v48  ;;  %v2947_v63 = vpack.c.bf16 %v2526_v31, %v4635_v30 }
 0x5ce   :  { %v2954_v53 = vpack.c.bf16 %v2622_v26, %v2574_v7 }
 0x5d0   :  { %v2807_v27 = vpop.permute.xlu1 %2806  ;;  %v4811_v40 = vpop.permute.xlu0 %2518 }
 0x5d1   :  { %v2815_v5 = vsel %vm395_vm4, %v2805_v2, %v2807_v27  ;;  %v2527_v8 = vsel %vm92_vm9, %v2517_v37, %v4811_v40 }
 0x5d2   :  { %v2969_v41 = vpack.c.bf16 %v2815_v5, %v2767_v39  ;;  %v2948_v62 = vpack.c.bf16 %v2527_v8, %v4637_v36 }
 0x5d4   :  { %v2663_v19 = vpop.permute.xlu1 %2662  ;;  %3053 = vmatprep.subr.bf16.mxu1 %v2969_v41 }
 0x5d5   :  { %v2671_v49 = vsel %vm239_vm5, %v2661_v22, %v2663_v19  ;;  %3054 = vmatpush1.bf16.msra.mxu1 %v2968_v23 }
 0x5d8   :  { %v2711_v47 = vpop.permute.xlu1 %2710 }
 0x5d9   :  { %v2719_v50 = vsel %vm288_vm6, %v2709_v24, %v2711_v47 }
 0x5da   :  { %v2962_v13 = vpack.c.bf16 %v2719_v50, %v2671_v49 }
 0x5dc   :  { %v2567_v35 = vpop.permute.xlu1 %2566  ;;  %3055 = vmatprep.subr.bf16.mxu1 %v2962_v13 }
 0x5dd   :  { %v2575_v4 = vsel %vm141_vm7, %v2565_v33, %v2567_v35  ;;  %3056 = vmatpush1.bf16.msra.mxu1 %v2961_v58 }
 0x5e0   :  { %v4819_v11 = vpop.permute.xlu1 %2614 }
 0x5e1   :  { %v2623_v60 = vsel %vm190_vm8, %v2613_v29, %v4819_v11 }
 0x5e2   :  { %v2955_v18 = vpack.c.bf16 %v2623_v60, %v2575_v4 }
 0x5e4   :  { %v2857_v61 = vpop.permute.xlu1 %2856  ;;  %3057 = vmatprep.subr.bf16.mxu1 %v2955_v18 }
 0x5e5   :  { %v2864_v0 = vsel %vm449_vm1, %v2855_v14, %v2857_v61  ;;  %3058 = vmatpush1.bf16.msra.mxu1 %v2954_v53 }
 0x5e6   :  { %3059 = vmatprep.subr.bf16.mxu1 %v2948_v62  ;;  %v2977_v54 = vpack.c.bf16 %v2864_v0, %v2864_v0 }
 0x5e8   :  { %v2859_v38 = vpop.permute.xlu0 %2858  ;;  %v2761_v55 = vpop.permute.xlu1 %2760  ;;  %v2996_v6 = vsel %vm574_vm2, %v2977_v54, 0 }
 0x5e9   :  { %2879 = vst.msk [vmem:[#allocation2 + $0x1f0] sm:$0xff] %vm856_vm12, %v2859_v38  ;;  %v2865_v2 = vsel %vm449_vm1, %v2857_v61, %v2859_v38  ;;  %v2768_v56 = vsel %vm341_vm3, %v2759_v20, %v2761_v55  ;;  %3060 = vmatpush1.bf16.msra.mxu1 %v2947_v63  ;;  %v2888_v38 = vld [vmem:[#allocation2 + $0x30] sm:$0xff] }
 0x5ea   :  { %v2978_v9 = vpack.c.bf16 %v2865_v2, %v2865_v2  ;;  %3439 = vmatprep.subr.bf16.mxu1 %v3476_v21 }
 0x5ec   :  { %v2763_v36 = vpop.permute.xlu0 %2762  ;;  %v2809_v17 = vpop.permute.xlu1 %2808  ;;  %3368 = vmatprep.subr.msk.bf16.mxu0 %vm574_vm2, %v2978_v9  ;;  %3367 = vmatmul.mubr.msk.bf16.vlgmr.msra.gmra.mxu1 %vm570_vm10, %v4800_v46 }
 0x5ed   :  { %2783 = vst.msk [vmem:[#allocation2 + $0x180] sm:$0xff] %vm856_vm12, %v2763_v36  ;;  %v2769_v30 = vsel %vm341_vm3, %v2761_v55, %v2763_v36  ;;  %v2816_v34 = vsel %vm395_vm4, %v2807_v27, %v2809_v17  ;;  %3093 = vmatpush1.bf16.msra.mxu0 %v2996_v6  ;;  %3449 = vmatprep.mubr.msk.bf16.mxu1 %vm3477_vm11, %v3476_v21 }
 0x5ee   :  { %v2970_v59 = vpack.c.bf16 %v2816_v34, %v2768_v56 }
 0x5f0   :  { %v2811_v22 = vpop.permute.xlu0 %2810  ;;  %v2665_v25 = vpop.permute.xlu1 %2664  ;;  %v2944_v57 = vld [vmem:[#allocation2 + $0x1f0] sm:$0xff] }
 0x5f1   :  { %2831 = vst.msk [vmem:[#allocation2 + $0x1b8] sm:$0xff] %vm856_vm12, %v2811_v22  ;;  %v2817_v15 = vsel %vm395_vm4, %v2809_v17, %v2811_v22  ;;  %v2672_v51 = vsel %vm239_vm5, %v2663_v19, %v2665_v25  ;;  %v2979_v37 = vpack.c.bf16 %v2944_v57, %v2944_v57 }
 0x5f2   :  { %v2971_v24 = vpack.c.bf16 %v2817_v15, %v2769_v30 }
 0x5f3   :  { %v3002_v31 = vsel %vm574_vm2, %v2979_v37, 0 }
 0x5f4   :  { %v2667_v33 = vpop.permute.xlu0 %2666  ;;  %v2713_v14 = vpop.permute.xlu1 %2712  ;;  %3440 = vmatpush3.bf16.msra.mxu1 %v3002_v31  ;;  %3094 = vmatprep.subr.bf16.mxu0 %v2971_v24  ;;  %v2930_v29 = vld [vmem:[#allocation2 + $0x180] sm:$0xff] }
 0x5f5   :  { %2687 = vst.msk [vmem:[#allocation2 + $0x110] sm:$0xff] %vm856_vm12, %v2667_v33  ;;  %v2673_v10 = vsel %vm239_vm5, %v2665_v25, %v2667_v33  ;;  %v2720_v7 = vsel %vm288_vm6, %v2711_v47, %v2713_v14  ;;  %3441 = vmatprep.subr.bf16.mxu1 %v3476_v21  ;;  %3095 = vmatpush1.bf16.msra.mxu0 %v2970_v59 }
 0x5f6   :  { %v2963_v5 = vpack.c.bf16 %v2720_v7, %v2672_v51 }
 0x5f8   :  { %v2715_v12 = vpop.permute.xlu0 %2714  ;;  %v2569_v28 = vpop.permute.xlu1 %2568  ;;  %v2937_v20 = vld [vmem:[#allocation2 + $0x1b8] sm:$0xff] }
 0x5f9   :  { %2735 = vst.msk [vmem:[#allocation2 + $0x148] sm:$0xff] %vm856_vm12, %v2715_v12  ;;  %v2721_v48 = vsel %vm288_vm6, %v2713_v14, %v2715_v12  ;;  %v2576_v26 = vsel %vm141_vm7, %v2567_v35, %v2569_v28  ;;  %v2972_v39 = vpack.c.bf16 %v2937_v20, %v2930_v29 }
 0x5fa   :  { %v2964_v27 = vpack.c.bf16 %v2721_v48, %v2673_v10 }
 0x5fb   :  { %3442 = vmatpush3.bf16.msra.mxu1 %v2972_v39 }
 0x5fc   :  { %v2571_v8 = vpop.permute.xlu0 %2570  ;;  %3443 = vmatprep.subr.bf16.mxu1 %v3476_v21  ;;  %v2617_v41 = vpop.permute.xlu1 %2616  ;;  %3096 = vmatprep.subr.bf16.mxu0 %v2964_v27  ;;  %v2916_v47 = vld [vmem:[#allocation2 + $0x110] sm:$0xff] }
 0x5fd   :  { %2591 = vst.msk [vmem:[#allocation2 + $0xa0] sm:$0xff] %vm856_vm12, %v2571_v8  ;;  %v2577_v23 = vsel %vm141_vm7, %v2569_v28, %v2571_v8  ;;  %v2624_v19 = vsel %vm190_vm8, %v4819_v11, %v2617_v41  ;;  %3097 = vmatpush1.bf16.msra.mxu0 %v2963_v5 }
 0x5fe   :  { %v2956_v18 = vpack.c.bf16 %v2624_v19, %v2576_v26 }
 0x600   :  { %v2619_v49 = vpop.permute.xlu0 %2618  ;;  %v2923_v50 = vld [vmem:[#allocation2 + $0x148] sm:$0xff]  ;;  %v2521_v13 = vpop.permute.xlu1 %2520 }
 0x601   :  { %2639 = vst.msk [vmem:[#allocation2 + $0xd8] sm:$0xff] %vm856_vm12, %v2619_v49  ;;  %v2625_v58 = vsel %vm190_vm8, %v2617_v41, %v2619_v49  ;;  %v2965_v35 = vpack.c.bf16 %v2923_v50, %v2916_v47  ;;  %v2528_v4 = vsel %vm92_vm9, %v4811_v40, %v2521_v13 }
 0x602   :  { %v2957_v60 = vpack.c.bf16 %v2625_v58, %v2577_v23  ;;  %v2949_v62 = vpack.c.bf16 %v2528_v4, %v4679_v42 }
 0x603   :  { %3444 = vmatpush3.bf16.msra.mxu1 %v2965_v35 }
 0x604   :  { %v2523_v53 = vpop.permute.xlu0 %2522  ;;  %3445 = vmatprep.subr.bf16.mxu1 %v3476_v21  ;;  %3098 = vmatprep.subr.bf16.mxu0 %v2957_v60  ;;  %v2902_v0 = vld [vmem:[#allocation2 + $0xa0] sm:$0xff] }
 0x605   :  { %2543 = vst.msk [vmem:[#allocation2 + $0x68] sm:$0xff] %vm856_vm12, %v2523_v53  ;;  %v2529_v11 = vsel %vm92_vm9, %v2521_v13, %v2523_v53  ;;  %3099 = vmatpush1.bf16.msra.mxu0 %v2956_v18 }
 0x606   :  { %v2950_v61 = vpack.c.bf16 %v2529_v11, %v4681_v43 }
 0x608   :  { %v2909_v63 = vld [vmem:[#allocation2 + $0xd8] sm:$0xff]  ;;  %3100 = vmatprep.subr.bf16.mxu0 %v2950_v61 }
 0x609   :  { %v2958_v40 = vpack.c.bf16 %v2909_v63, %v2902_v0  ;;  %3101 = vmatpush1.bf16.msra.mxu0 %v2949_v62 }
 0x60b   :  { %3446 = vmatpush3.bf16.msra.mxu1 %v2958_v40 }
 0x60c   :  { %3447 = vmatprep.subr.bf16.mxu1 %v3476_v21  ;;  %v2895_v55 = vld [vmem:[#allocation2 + $0x68] sm:$0xff]  ;;  %3369 = vmatmul.mubr.msk.bf16.vlgmr.msra.gmra.mxu0 %vm570_vm10, %v4800_v46  ;;  %v4877_v21 = vld [vmem:[%s4957_s8] sm:$0x7f] }
 0x60d   :  { %v2951_v54 = vpack.c.bf16 %v2895_v55, %v2888_v38  ;;  %v4869_v43 = vpop.permute.xlu1 %3171  ;;  %v3255_v57 = vrot.slane %v4877_v21, %v3875_v32  ;;  %v3259_v59 = vrot.slane %v4877_v21, %v3897_v1  ;;  %v3263_v27 = vrot.slane %v4877_v21, %v3912_v16 }
 0x60e   :  { %v3267_v49 = vrot.slane %v4877_v21, %v3916_v44  ;;  %v3271_v62 = vrot.slane %v4877_v21, %v3978_v45 }
 0x60f   :  { %3448 = vmatpush3.bf16.msra.mxu1 %v2951_v54 }
 0x611   :  { %v4871_v42 = vpop.permute.xlu0 %3185  ;;  %v3210_v2 = vpop.permute.xlu1 %3209 }
 0x612   :  { %3450 = vmatmul.mubr.msk.bf16.vlgmr.msra.gmra.mxu1 %vm570_vm10, %v4800_v46 }
 0x615   :  { %v3212_v9 = vpop.permute.xlu0 %3211  ;;  %v3214_v6 = vpop.permute.xlu1 %3213 }
 0x616   :  { %v3223_v34 = vsel %vm449_vm1, %v3210_v2, %v3212_v9  ;;  %v3224_v51 = vsel %vm449_vm1, %v3212_v9, %v3214_v6 }
 0x619   :  { %v3216_v12 = vpop.permute.xlu0 %3215  ;;  %v3218_v29 = vpop.permute.xlu1 %3217 }
 0x61a   :  { %v3225_v26 = vsel %vm449_vm1, %v3214_v6, %v3216_v12  ;;  %v3226_v8 = vsel %vm449_vm1, %v3216_v12, %v3218_v29 }
 0x61d   :  { %v3220_v35 = vpop.permute.xlu0 %3219  ;;  %v3222_v60 = vpop.permute.xlu1 %3221 }
 0x61e   :  { %v3227_v11 = vsel %vm449_vm1, %v3218_v29, %v3220_v35  ;;  %v3228_v63 = vsel %vm449_vm1, %v3220_v35, %v3222_v60 }
 0x688   :  { %v3038_v56 = vpop.f32.mrf.mxu0 }
 0x689   :  { %v3174_v36 = vmul.f32 %v4869_v43, %v3038_v56  ;;  %v3275_v56 = vrot.slane %v4877_v21, %v4015_v52 }
 0x68a   :  { %v3040_v17 = vpop.f32.mrf.mxu0 }
 0x68b   :  { %v3188_v30 = vadd.f32 %v4871_v42, %v3174_v36  ;;  %v3175_v46 = vmul.f32 %v4869_v43, %v3040_v17 }
 0x68c   :  { %v3042_v22 = vpop.f32.mrf.mxu0 }
 0x68d   :  { %v3236_v25 = vadd.f32 %v3223_v34, %v3188_v30  ;;  %v3189_v15 = vadd.f32 %v4871_v42, %v3175_v46  ;;  %v3279_v46 = vrot.slane %v4877_v21, %v3952_v3 }
 0x68e   :  { %v3043_v37 = vpop.f32.mrf.mxu0 }
 0x68f   :  { %v3243_v24 = vmax.f32 %v3236_v25, 0.0  ;;  %v3237_v31 = vadd.f32 %v3224_v51, %v3189_v15 }
 0x691   :  { %v3287_v33 = vmul.f32 %v3255_v57, %v3243_v24  ;;  %v3244_v14 = vmax.f32 %v3237_v31, 0.0 }
 0x693   :  { %v3288_v10 = vmul.f32 %v3259_v59, %v3244_v14  ;;  %3301 = vrot.lane.b32.xlu0 %v3287_v33, %s3478_s30 }
 0x695   :  { %3303 = vrot.lane.b32.xlu1 %v3288_v10, %s3478_s30 }
 0x6ac   :  { %v3079_v7 = vpop.f32.mrf.mxu1 }
 0x6ad   :  { %v3176_v32 = vmul.f32 %v4869_v43, %v3079_v7 }
 0x6ae   :  { %v3081_v28 = vpop.f32.mrf.mxu1 }
 0x6af   :  { %v3190_v20 = vadd.f32 %v4871_v42, %v3176_v32  ;;  %v3177_v48 = vmul.f32 %v4869_v43, %v3081_v28 }
 0x6b0   :  { %v3083_v1 = vpop.f32.mrf.mxu1 }
 0x6b1   :  { %v3238_v39 = vadd.f32 %v3225_v26, %v3190_v20  ;;  %v3191_v5 = vadd.f32 %v4871_v42, %v3177_v48 }
 0x6b2   :  { %v3084_v41 = vpop.f32.mrf.mxu1 }
 0x6b3   :  { %v3245_v23 = vmax.f32 %v3238_v39, 0.0  ;;  %v3239_v19 = vadd.f32 %v3226_v8, %v3191_v5 }
 0x6b5   :  { %v3289_v47 = vmul.f32 %v3263_v27, %v3245_v23  ;;  %v3246_v50 = vmax.f32 %v3239_v19, 0.0 }
 0x6b7   :  { %v3290_v13 = vmul.f32 %v3267_v49, %v3246_v50  ;;  %3305 = vrot.lane.b32.xlu0 %v3289_v47, %s3478_s30 }
 0x6b9   :  { %3307 = vrot.lane.b32.xlu1 %v3290_v13, %s3478_s30 }
 0x6cc   :  { %v3120_v58 = vpop.f32.mrf.mxu0 }
 0x6cd   :  { %v3178_v16 = vmul.f32 %v4869_v43, %v3120_v58 }
 0x6ce   :  { %v3122_v4 = vpop.f32.mrf.mxu0 }
 0x6cf   :  { %v3192_v18 = vadd.f32 %v4871_v42, %v3178_v16  ;;  %v3179_v53 = vmul.f32 %v4869_v43, %v3122_v4 }
 0x6d0   :  { %v3124_v44 = vpop.f32.mrf.mxu0 }
 0x6d1   :  { %v3240_v61 = vadd.f32 %v3227_v11, %v3192_v18  ;;  %v3193_v0 = vadd.f32 %v4871_v42, %v3179_v53 }
 0x6d2   :  { %v3161_v40 = vpop.f32.mrf.mxu1  ;;  %v3125_v38 = vpop.f32.mrf.mxu0 }
 0x6d3   :  { %v3180_v55 = vmul.f32 %v4869_v43, %v3161_v40  ;;  %v3247_v54 = vmax.f32 %v3240_v61, 0.0  ;;  %v3241_v2 = vadd.f32 %v3228_v63, %v3193_v0 }
 0x6d4   :  { %v3451_v9 = vpop.f32.mrf.mxu1 }
 0x6d5   :  { %v3194_v36 = vadd.f32 %v4871_v42, %v3180_v55  ;;  %v3291_v17 = vmul.f32 %v3271_v62, %v3247_v54  ;;  %v3248_v6 = vmax.f32 %v3241_v2, 0.0 }
 0x6d6   :  { %v3164_v30 = vpop.f32.mrf.mxu1 }
 0x6d7   :  { %v3242_v45 = vadd.f32 %v3222_v60, %v3194_v36  ;;  %v3292_v34 = vmul.f32 %v3275_v56, %v3248_v6  ;;  %3309 = vrot.lane.b32.xlu0 %v3291_v17, %s3478_s30 }
 0x6d8   :  { %v3452_v22 = vpop.f32.mrf.mxu1 }
 0x6d9   :  { %v3249_v43 = vmax.f32 %v3242_v45, 0.0  ;;  %3311 = vrot.lane.b32.xlu1 %v3292_v34, %s3478_s30 }
 0x6db   :  { %v3293_v25 = vmul.f32 %v3279_v46, %v3249_v43 }
 0x6dd   :  { %3313 = vrot.lane.b32.xlu0 %v3293_v25, %s3478_s30 }
 0x705   :  { %v3302_v52 = vpop.permute.xlu0 %3301 }
 0x706   :  { %3328 = vst.msk [vmem:[%s4949_s9] sm:$0xff] %vm1688_vm13, %v3302_v52 }
 0x707   :  { %v3304_v42 = vpop.permute.xlu1 %3303 }
 0x708   :  { %v3315_v57 = vsel %vm1674_vm14, %v3302_v52, %v3304_v42 }
 0x709   :  { %3329 = vst [vmem:[%s4949_s9 + $0x8] sm:$0xff] %v3315_v57 }
 0x729   :  { %v3306_v3 = vpop.permute.xlu0 %3305 }
 0x72a   :  { %v3316_v21 = vsel %vm1674_vm14, %v3304_v42, %v3306_v3 }
 0x72b   :  { %3330 = vst [vmem:[%s4949_s9 + $0x10] sm:$0xff] %v3316_v21  ;;  %v3308_v15 = vpop.permute.xlu1 %3307 }
 0x72c   :  { %v3317_v51 = vsel %vm1674_vm14, %v3306_v3, %v3308_v15 }
 0x72d   :  { %3331 = vst [vmem:[%s4949_s9 + $0x18] sm:$0xff] %v3317_v51 }
 0x749   :  { %v3310_v37 = vpop.permute.xlu0 %3309 }
 0x74a   :  { %v3318_v24 = vsel %vm1674_vm14, %v3308_v15, %v3310_v37 }
 0x74b   :  { %3332 = vst [vmem:[%s4949_s9 + $0x20] sm:$0xff] %v3318_v24  ;;  %v3312_v31 = vpop.permute.xlu1 %3311 }
 0x74c   :  { %v3319_v59 = vsel %vm1674_vm14, %v3310_v37, %v3312_v31 }
 0x74d   :  { %3333 = vst [vmem:[%s4949_s9 + $0x28] sm:$0xff] %v3319_v59 }
 0x74f   :  { %v3314_v33 = vpop.permute.xlu0 %3313 }
 0x750   :  { %v3320_v14 = vsel %vm1674_vm14, %v3312_v31, %v3314_v33 }
 0x751   :  { %3334 = vst.msk [vmem:[%s4949_s9 + $0x30] sm:$0xff] %vm62_vm0, %v3320_v14 }

</bundles_post_ra>
